<compile_context>
chip_gen: v6e
topology: v6e:2x2x1
jax: 0.10.0
libtpu: 0.0.40
codegen_flags: <defaults>
</compile_context>

<pallas_src>
import functools

import jax
import jax.numpy as jnp
import numpy as np
from jax.experimental import pallas as pl
from jax.experimental.pallas import tpu as pltpu

NUM_CLASSES = 11   # len(tonic.datasets.DVSGesture.classes)
POOL = 2           # 128 // frame_size with frame_size = 64
LANE = 128         # padded gate / hidden / class width (one vreg lane tile)


# ----------------------------------------------------------------------------
# Fused kernel: L stacked GRU layers + final fc + mean over time, one batch
# block (BB rows) per grid step.  All feature dims are zero-padded to LANE.
# ----------------------------------------------------------------------------
def fused_gru_fc_kernel(x_ref, wih_ref, whh_ref, bih_ref, bhh_ref,
                        fcw_ref, fcb_ref, seq_ref, lin_ref, logit_ref):
    """Shapes (all lane-padded to LANE=128):
      x_ref    : (BB, T, LANE)        padded input sequence (this batch block)
      wih_ref  : (L, LANE, 3*LANE)    input->gate weights, gate g in cols [g*LANE, g*LANE+H)
      whh_ref  : (L, LANE, 3*LANE)    hidden->gate weights
      bih_ref  : (L, 1, 3*LANE)
      bhh_ref  : (L, 1, 3*LANE)
      fcw_ref  : (LANE, LANE)         fc weight, valid block [:H, :NUM_CLASSES]
      fcb_ref  : (1, LANE)
      seq_ref  : (BB, L, T, LANE)     per-layer GRU outputs (-> output_gate / hidden)
      lin_ref  : (BB, T, LANE)        fc(lstm_out) per timestep (-> linear_out)
      logit_ref: (BB, 1, LANE)        mean over time of lin (-> logits)
    """
    BB, T, HP = x_ref.shape
    L = wih_ref.shape[0]

    for l in range(L):                                   # static: L == 2
        src = x_ref[...] if l == 0 else seq_ref[:, l - 1, :, :]   # (BB, T, HP)
        wih = wih_ref[l]                                 # (HP, 3*HP)
        whh = whh_ref[l]                                 # (HP, 3*HP)
        bih = bih_ref[l]                                 # (1, 3*HP)
        bhh = bhh_ref[l]                                 # (1, 3*HP)

        # Input projection hoisted off the recurrence (no dependence on h):
        # one (BB*T, HP) x (HP, 3*HP) matmul per layer.
        gi_all = (jnp.dot(src.reshape(BB * T, HP), wih,
                          preferred_element_type=jnp.float32) + bih
                  ).reshape(BB, T, 3 * HP)

        h = jnp.zeros((BB, HP), jnp.float32)
        for t in range(T):                               # statically unrolled serial loop
            gi = gi_all[:, t, :]                         # (BB, 3*HP) static slice
            gh = jnp.dot(h, whh, preferred_element_type=jnp.float32) + bhh
            # Gate slices land on 128-lane vreg boundaries.
            r = jax.nn.sigmoid(gi[:, 0:HP] + gh[:, 0:HP])
            z = jax.nn.sigmoid(gi[:, HP:2 * HP] + gh[:, HP:2 * HP])
            n = jnp.tanh(gi[:, 2 * HP:3 * HP] + r * gh[:, 2 * HP:3 * HP])
            h = (1.0 - z) * n + z * h
            seq_ref[:, l, t, :] = h                      # lane-dense (width 128) store

    # Final fc on the whole last-layer sequence + mean over time.
    last = seq_ref[:, L - 1, :, :]                       # (BB, T, HP)
    lin = (jnp.dot(last.reshape(BB * T, HP), fcw_ref[...],
                   preferred_element_type=jnp.float32) + fcb_ref[...]
           ).reshape(BB, T, HP)
    lin_ref[...] = lin
    logit_ref[...] = jnp.mean(lin, axis=1, keepdims=True)


def fused_call(x_pad, wih, whh, bih, bhh, fcw, fcb, *, block_b):
    Bp, T, HP = x_pad.shape
    L = wih.shape[0]
    return pl.pallas_call(
        fused_gru_fc_kernel,
        out_shape=(
            jax.ShapeDtypeStruct((Bp, L, T, HP), jnp.float32),   # per-layer GRU outputs
            jax.ShapeDtypeStruct((Bp, T, HP), jnp.float32),      # linear_out (padded)
            jax.ShapeDtypeStruct((Bp, 1, HP), jnp.float32),      # logits (padded)
        ),
        grid_spec=pltpu.PrefetchScalarGridSpec(
            num_scalar_prefetch=0,
            grid=(Bp // block_b,),                               # batch-block axis only
            in_specs=[
                pl.BlockSpec((block_b, T, HP), lambda b: (b, 0, 0)),
                pl.BlockSpec((L, HP, 3 * HP), lambda b: (0, 0, 0)),
                pl.BlockSpec((L, HP, 3 * HP), lambda b: (0, 0, 0)),
                pl.BlockSpec((L, 1, 3 * HP), lambda b: (0, 0, 0)),
                pl.BlockSpec((L, 1, 3 * HP), lambda b: (0, 0, 0)),
                pl.BlockSpec((HP, HP), lambda b: (0, 0)),
                pl.BlockSpec((1, HP), lambda b: (0, 0)),
            ],
            out_specs=[
                pl.BlockSpec((block_b, L, T, HP), lambda b: (b, 0, 0, 0)),
                pl.BlockSpec((block_b, T, HP), lambda b: (b, 0, 0)),
                pl.BlockSpec((block_b, 1, HP), lambda b: (b, 0, 0)),
            ],
        ),
        compiler_params=pltpu.CompilerParams(
            # v7x: batch blocks spread across TensorCores; single-core chips just loop.
            dimension_semantics=("parallel",),
        ),
    )(x_pad, wih, whh, bih, bhh, fcw, fcb)


# ----------------------------------------------------------------------------
# Full forward (mirrors EGRUDDVSOptimizedModel.forward for the GRU config).
# ----------------------------------------------------------------------------
@functools.partial(jax.jit, static_argnames=("hidden_dim",))
def egru_dvs_forward(inputs, packed, *, hidden_dim):
    B, T, C, H, W = inputs.shape
    Hp, Wp = H // POOL, W // POOL
    D = Hp * Wp
    assert D <= LANE and hidden_dim <= LANE and NUM_CLASSES <= LANE

    # Preprocessing (MaxPool2d(2) + MergeEvents('mean') + flatten) stays in XLA:
    # pure reshape + reductions, no strided relayout, off the GRU critical path.
    x = inputs.reshape(B, T, C, Hp, POOL, Wp, POOL)
    feat = jnp.max(x, axis=(4, 6)).mean(axis=2).reshape(B, T, D)     # (B, T, D)
    x_pad = jnp.pad(feat, ((0, 0), (0, 0), (0, LANE - D)))           # lane-dense (B, T, 128)

    # Batch blocking: share one serial recurrence chain across up to 8 rows.
    block_b = B if B <= 8 else 8
    Bp = ((B + block_b - 1) // block_b) * block_b
    if Bp != B:
        x_pad = jnp.pad(x_pad, ((0, Bp - B), (0, 0), (0, 0)))

    seq_out, lin_out, logit_out = fused_call(
        x_pad, packed["wih"], packed["whh"], packed["bih"], packed["bhh"],
        packed["fc_w"], packed["fc_b"], block_b=block_b)

    Hd = hidden_dim
    output_gate = seq_out[:B, :, :, :Hd]               # (B, L, T, H)
    hidden = seq_out[:B, :, T - 1:T, :Hd]              # (B, L, 1, H)  == h_n per layer
    linear_out = lin_out[:B, :, :NUM_CLASSES]          # (B, T, NUM_CLASSES)
    logits = logit_out[:B, 0, :NUM_CLASSES]            # (B, NUM_CLASSES)
    return logits, hidden, output_gate, linear_out


# ----------------------------------------------------------------------------
# Parameter init (PyTorch-style uniform ranges) and lane-padded packing.
# ----------------------------------------------------------------------------
def init_params(key, input_dim, hidden_dim, num_layers):
    params = {"gru_layers": []}
    scale = 1.0 / np.sqrt(hidden_dim)
    din = input_dim
    for _ in range(num_layers):
        key, k1, k2, k3, k4 = jax.random.split(key, 5)
        params["gru_layers"].append({
            "wih_t": jax.random.uniform(k1, (din, 3 * hidden_dim), jnp.float32, -scale, scale),
            "whh_t": jax.random.uniform(k2, (hidden_dim, 3 * hidden_dim), jnp.float32, -scale, scale),
            "bih": jax.random.uniform(k3, (1, 3 * hidden_dim), jnp.float32, -scale, scale),
            "bhh": jax.random.uniform(k4, (1, 3 * hidden_dim), jnp.float32, -scale, scale),
        })
        din = hidden_dim
    key, k1, k2 = jax.random.split(key, 3)
    params["fc_w"] = jax.random.uniform(k1, (hidden_dim, NUM_CLASSES), jnp.float32, -scale, scale)
    params["fc_b"] = jax.random.uniform(k2, (1, NUM_CLASSES), jnp.float32, -scale, scale)
    return params


def pack_params(params, hidden_dim):
    """Zero-pad every gate / hidden / class dim to LANE=128 and stack layers."""
    L = len(params["gru_layers"])
    H = hidden_dim
    wih = np.zeros((L, LANE, 3 * LANE), np.float32)
    whh = np.zeros((L, LANE, 3 * LANE), np.float32)
    bih = np.zeros((L, 1, 3 * LANE), np.float32)
    bhh = np.zeros((L, 1, 3 * LANE), np.float32)
    for l, layer in enumerate(params["gru_layers"]):
        wih_t = np.asarray(layer["wih_t"])      # (Din, 3H), gate order r, z, n
        whh_t = np.asarray(layer["whh_t"])      # (H, 3H)
        b_ih = np.asarray(layer["bih"])         # (1, 3H)
        b_hh = np.asarray(layer["bhh"])
        din = wih_t.shape[0]
        assert din <= LANE and H <= LANE
        for g in range(3):
            wih[l, :din, g * LANE:g * LANE + H] = wih_t[:, g * H:(g + 1) * H]
            whh[l, :H, g * LANE:g * LANE + H] = whh_t[:, g * H:(g + 1) * H]
            bih[l, 0, g * LANE:g * LANE + H] = b_ih[0, g * H:(g + 1) * H]
            bhh[l, 0, g * LANE:g * LANE + H] = b_hh[0, g * H:(g + 1) * H]
    fcw = np.zeros((LANE, LANE), np.float32)
    fcb = np.zeros((1, LANE), np.float32)
    fcw[:H, :NUM_CLASSES] = np.asarray(params["fc_w"])
    fcb[0, :NUM_CLASSES] = np.asarray(params["fc_b"])[0]
    return {
        "wih": jnp.asarray(wih), "whh": jnp.asarray(whh),
        "bih": jnp.asarray(bih), "bhh": jnp.asarray(bhh),
        "fc_w": jnp.asarray(fcw), "fc_b": jnp.asarray(fcb),
    }


# ----------------------------------------------------------------------------
# Pure-JAX reference (unpadded weights) for the correctness check.
# ----------------------------------------------------------------------------
def ref_forward(inputs, params):
    B, T, C, H, W = inputs.shape
    x = inputs.reshape(B, T, C, H // POOL, POOL, W // POOL, POOL)
    feat = jnp.max(x, axis=(4, 6)).mean(axis=2).reshape(B, T, -1)
    cur = feat
    gates, hiddens = [], []
    for layer in params["gru_layers"]:
        Hd = layer["whh_t"].shape[0]
        h = jnp.zeros((B, Hd), jnp.float32)
        outs = []
        for t in range(T):
            gi = cur[:, t] @ layer["wih_t"] + layer["bih"][0]
            gh = h @ layer["whh_t"] + layer["bhh"][0]
            r = jax.nn.sigmoid(gi[:, :Hd] + gh[:, :Hd])
            z = jax.nn.sigmoid(gi[:, Hd:2 * Hd] + gh[:, Hd:2 * Hd])
            n = jnp.tanh(gi[:, 2 * Hd:] + r * gh[:, 2 * Hd:])
            h = (1.0 - z) * n + z * h
            outs.append(h)
        cur = jnp.stack(outs, axis=1)                    # (B, T, H)
        gates.append(cur)
        hiddens.append(h)
    lin = cur @ params["fc_w"] + params["fc_b"][0]       # (B, T, C)
    logits = lin.mean(axis=1)
    output_gate = jnp.stack(gates, axis=1)               # (B, L, T, H)
    hidden = jnp.stack(hiddens, axis=1)[:, :, None, :]   # (B, L, 1, H)
    return logits, hidden, output_gate, lin


if __name__ == "__main__":
    # Small shapes: batch=2, seq=8, polarity channels=2, spatial 16x16.
    B, T, C, H, W = 2, 8, 2, 16, 16
    HIDDEN = 32          # n_units=32, unit_size=1
    NUM_LAYERS = 2
    INPUT_DIM = (H // POOL) * (W // POOL)   # 64 after maxpool + flatten (mean merge -> 1 channel)

    key = jax.random.PRNGKey(0)
    key, k_in = jax.random.split(key)
    # Binary event counts, mimicking DVS frames.
    inputs = (jax.random.uniform(k_in, (B, T, C, H, W)) < 0.3).astype(jnp.float32)

    params = init_params(key, INPUT_DIM, HIDDEN, NUM_LAYERS)
    packed = pack_params(params, HIDDEN)

    logits, hidden, output_gate, linear_out = egru_dvs_forward(inputs, packed, hidden_dim=HIDDEN)
    jax.block_until_ready(logits)

    # Sanity check against pure-JAX (unpadded) reference.
    r_logits, r_hidden, r_gate, r_lin = ref_forward(inputs, params)
    assert logits.shape == (B, NUM_CLASSES)
    assert linear_out.shape == (B, T, NUM_CLASSES)
    assert hidden.shape == (B, NUM_LAYERS, 1, HIDDEN)
    assert output_gate.shape == (B, NUM_LAYERS, T, HIDDEN)
    np.testing.assert_allclose(np.asarray(logits), np.asarray(r_logits), rtol=1e-3, atol=1e-4)
    np.testing.assert_allclose(np.asarray(linear_out), np.asarray(r_lin), rtol=1e-3, atol=1e-4)
    np.testing.assert_allclose(np.asarray(output_gate), np.asarray(r_gate), rtol=1e-3, atol=1e-4)
    np.testing.assert_allclose(np.asarray(hidden), np.asarray(r_hidden), rtol=1e-3, atol=1e-4)

    # TODO(synk): the EGRU (evnn) recurrence and the use_cnn=True AlexNet branch are
    # config paths not exercised by this GRU / flatten-frame configuration.
    print("KERNEL_OK")
</pallas_src>

<mosaic_0001>
module attributes {stable_mosaic.version = 11 : i64} {
  func.func @fused_gru_fc_kernel(%arg0: i32, %arg1: memref<2x8x128xf32, #tpu.memory_space<vmem>>, %arg2: memref<2x128x384xf32, #tpu.memory_space<vmem>>, %arg3: memref<2x128x384xf32, #tpu.memory_space<vmem>>, %arg4: memref<2x1x384xf32, #tpu.memory_space<vmem>>, %arg5: memref<2x1x384xf32, #tpu.memory_space<vmem>>, %arg6: memref<128x128xf32, #tpu.memory_space<vmem>>, %arg7: memref<1x128xf32, #tpu.memory_space<vmem>>, %arg8: memref<2x2x8x128xf32, #tpu.memory_space<vmem>>, %arg9: memref<2x8x128xf32, #tpu.memory_space<vmem>>, %arg10: memref<2x1x128xf32, #tpu.memory_space<vmem>>) attributes {dimension_semantics = [#tpu.dimension_semantics<parallel>], iteration_bounds = array<i64: 1>, scalar_prefetch = 0 : i64, scratch_operands = 0 : i64, tpu.core_type = #tpu.core_type<tc>, window_params = [{transform_indices = @transform_0, window_bounds = array<i64: 2, 8, 128>}, {pipeline_mode = #tpu.pipeline_mode<synchronous>, transform_indices = @transform_1, window_bounds = array<i64: 2, 128, 384>}, {pipeline_mode = #tpu.pipeline_mode<synchronous>, transform_indices = @transform_2, window_bounds = array<i64: 2, 128, 384>}, {pipeline_mode = #tpu.pipeline_mode<synchronous>, transform_indices = @transform_3, window_bounds = array<i64: 2, 1, 384>}, {pipeline_mode = #tpu.pipeline_mode<synchronous>, transform_indices = @transform_4, window_bounds = array<i64: 2, 1, 384>}, {pipeline_mode = #tpu.pipeline_mode<synchronous>, transform_indices = @transform_5, window_bounds = array<i64: 128, 128>}, {pipeline_mode = #tpu.pipeline_mode<synchronous>, transform_indices = @transform_6, window_bounds = array<i64: 1, 128>}, {transform_indices = @transform_7, window_bounds = array<i64: 2, 2, 8, 128>}, {transform_indices = @transform_8, window_bounds = array<i64: 2, 8, 128>}, {transform_indices = @transform_9, window_bounds = array<i64: 2, 1, 128>}]} {
    %c0 = arith.constant 0 : index
    %c0_0 = arith.constant 0 : index
    %c0_1 = arith.constant 0 : index
    %0 = vector.load %arg1[%c0, %c0_0, %c0_1] : memref<2x8x128xf32, #tpu.memory_space<vmem>>, vector<2x8x128xf32>
    %c0_2 = arith.constant 0 : index
    %c0_3 = arith.constant 0 : index
    %c0_4 = arith.constant 0 : index
    %1 = vector.load %arg2[%c0_2, %c0_3, %c0_4] : memref<2x128x384xf32, #tpu.memory_space<vmem>>, vector<1x128x384xf32>
    %2 = vector.shape_cast %1 : vector<1x128x384xf32> to vector<128x384xf32>
    %c0_5 = arith.constant 0 : index
    %c0_6 = arith.constant 0 : index
    %c0_7 = arith.constant 0 : index
    %3 = vector.load %arg3[%c0_5, %c0_6, %c0_7] : memref<2x128x384xf32, #tpu.memory_space<vmem>>, vector<1x128x384xf32>
    %4 = vector.shape_cast %3 : vector<1x128x384xf32> to vector<128x384xf32>
    %c0_8 = arith.constant 0 : index
    %c0_9 = arith.constant 0 : index
    %c0_10 = arith.constant 0 : index
    %5 = vector.load %arg4[%c0_8, %c0_9, %c0_10] : memref<2x1x384xf32, #tpu.memory_space<vmem>>, vector<1x1x384xf32>
    %6 = vector.shape_cast %5 : vector<1x1x384xf32> to vector<1x384xf32>
    %c0_11 = arith.constant 0 : index
    %c0_12 = arith.constant 0 : index
    %c0_13 = arith.constant 0 : index
    %7 = vector.load %arg5[%c0_11, %c0_12, %c0_13] : memref<2x1x384xf32, #tpu.memory_space<vmem>>, vector<1x1x384xf32>
    %8 = vector.shape_cast %7 : vector<1x1x384xf32> to vector<1x384xf32>
    %9 = vector.shape_cast %0 : vector<2x8x128xf32> to vector<16x128xf32>
    %cst = arith.constant dense<0.000000e+00> : vector<16x384xf32>
    %10 = tpu.matmul %9, %2, %cst {dimension_numbers = #tpu.dot_dimension_numbers<[1], [0], [0], [1], [0, 0, 1, 1], [], []>} : vector<16x128xf32>, vector<128x384xf32>, vector<16x384xf32> -> vector<16x384xf32>
    %11 = vector.broadcast %6 : vector<1x384xf32> to vector<16x384xf32>
    %12 = arith.addf %10, %11 : vector<16x384xf32>
    %13 = vector.shape_cast %12 : vector<16x384xf32> to vector<2x8x384xf32>
    %cst_14 = arith.constant 0.000000e+00 : f32
    %14 = vector.broadcast %cst_14 : f32 to vector<2x128xf32>
    %15 = vector.extract_strided_slice %13 {offsets = [0, 0, 0], sizes = [2, 1, 384], strides = [1, 1, 1]} : vector<2x8x384xf32> to vector<2x1x384xf32>
    %16 = vector.shape_cast %15 : vector<2x1x384xf32> to vector<2x384xf32>
    %cst_15 = arith.constant dense<0.000000e+00> : vector<2x384xf32>
    %17 = tpu.matmul %14, %4, %cst_15 {dimension_numbers = #tpu.dot_dimension_numbers<[1], [0], [0], [1], [0, 0, 1, 1], [], []>} : vector<2x128xf32>, vector<128x384xf32>, vector<2x384xf32> -> vector<2x384xf32>
    %18 = vector.broadcast %8 : vector<1x384xf32> to vector<2x384xf32>
    %19 = arith.addf %17, %18 : vector<2x384xf32>
    %20 = vector.extract_strided_slice %16 {offsets = [0, 0], sizes = [2, 128], strides = [1, 1]} : vector<2x384xf32> to vector<2x128xf32>
    %21 = vector.extract_strided_slice %19 {offsets = [0, 0], sizes = [2, 128], strides = [1, 1]} : vector<2x384xf32> to vector<2x128xf32>
    %22 = arith.addf %20, %21 : vector<2x128xf32>
    %23 = arith.negf %22 : vector<2x128xf32>
    %24 = math.exp %23 : vector<2x128xf32>
    %cst_16 = arith.constant 1.000000e+00 : f32
    %25 = vector.broadcast %cst_16 : f32 to vector<2x128xf32>
    %26 = arith.addf %25, %24 : vector<2x128xf32>
    %27 = arith.divf %25, %26 : vector<2x128xf32>
    %28 = vector.extract_strided_slice %16 {offsets = [0, 128], sizes = [2, 128], strides = [1, 1]} : vector<2x384xf32> to vector<2x128xf32>
    %29 = vector.extract_strided_slice %19 {offsets = [0, 128], sizes = [2, 128], strides = [1, 1]} : vector<2x384xf32> to vector<2x128xf32>
    %30 = arith.addf %28, %29 : vector<2x128xf32>
    %31 = arith.negf %30 : vector<2x128xf32>
    %32 = math.exp %31 : vector<2x128xf32>
    %cst_17 = arith.constant 1.000000e+00 : f32
    %33 = vector.broadcast %cst_17 : f32 to vector<2x128xf32>
    %34 = arith.addf %33, %32 : vector<2x128xf32>
    %35 = arith.divf %33, %34 : vector<2x128xf32>
    %36 = vector.extract_strided_slice %16 {offsets = [0, 256], sizes = [2, 128], strides = [1, 1]} : vector<2x384xf32> to vector<2x128xf32>
    %37 = vector.extract_strided_slice %19 {offsets = [0, 256], sizes = [2, 128], strides = [1, 1]} : vector<2x384xf32> to vector<2x128xf32>
    %38 = arith.mulf %27, %37 : vector<2x128xf32>
    %39 = arith.addf %36, %38 : vector<2x128xf32>
    %40 = math.tanh %39 : vector<2x128xf32>
    %cst_18 = arith.constant 1.000000e+00 : f32
    %41 = vector.broadcast %cst_18 : f32 to vector<2x128xf32>
    %42 = arith.subf %41, %35 : vector<2x128xf32>
    %43 = arith.mulf %42, %40 : vector<2x128xf32>
    %44 = arith.mulf %35, %14 : vector<2x128xf32>
    %45 = arith.addf %43, %44 : vector<2x128xf32>
    %c0_19 = arith.constant 0 : index
    %c0_20 = arith.constant 0 : index
    %c0_21 = arith.constant 0 : index
    %c0_22 = arith.constant 0 : index
    %46 = vector.load %arg8[%c0_19, %c0_20, %c0_21, %c0_22] : memref<2x2x8x128xf32, #tpu.memory_space<vmem>>, vector<2x1x1x128xf32>
    %47 = vector.shape_cast %46 : vector<2x1x1x128xf32> to vector<2x128xf32>
    %48 = vector.shape_cast %45 : vector<2x128xf32> to vector<2x1x1x128xf32>
    tpu.vector_store %arg8[%c0_19, %c0_20, %c0_21, %c0_22], %48 {strides = array<i32>} : memref<2x2x8x128xf32, #tpu.memory_space<vmem>>, vector<2x1x1x128xf32>,
    %49 = vector.extract_strided_slice %13 {offsets = [0, 1, 0], sizes = [2, 1, 384], strides = [1, 1, 1]} : vector<2x8x384xf32> to vector<2x1x384xf32>
    %50 = vector.shape_cast %49 : vector<2x1x384xf32> to vector<2x384xf32>
    %cst_23 = arith.constant dense<0.000000e+00> : vector<2x384xf32>
    %51 = tpu.matmul %45, %4, %cst_23 {dimension_numbers = #tpu.dot_dimension_numbers<[1], [0], [0], [1], [0, 0, 1, 1], [], []>} : vector<2x128xf32>, vector<128x384xf32>, vector<2x384xf32> -> vector<2x384xf32>
    %52 = vector.broadcast %8 : vector<1x384xf32> to vector<2x384xf32>
    %53 = arith.addf %51, %52 : vector<2x384xf32>
    %54 = vector.extract_strided_slice %50 {offsets = [0, 0], sizes = [2, 128], strides = [1, 1]} : vector<2x384xf32> to vector<2x128xf32>
    %55 = vector.extract_strided_slice %53 {offsets = [0, 0], sizes = [2, 128], strides = [1, 1]} : vector<2x384xf32> to vector<2x128xf32>
    %56 = arith.addf %54, %55 : vector<2x128xf32>
    %57 = arith.negf %56 : vector<2x128xf32>
    %58 = math.exp %57 : vector<2x128xf32>
    %cst_24 = arith.constant 1.000000e+00 : f32
    %59 = vector.broadcast %cst_24 : f32 to vector<2x128xf32>
    %60 = arith.addf %59, %58 : vector<2x128xf32>
    %61 = arith.divf %59, %60 : vector<2x128xf32>
    %62 = vector.extract_strided_slice %50 {offsets = [0, 128], sizes = [2, 128], strides = [1, 1]} : vector<2x384xf32> to vector<2x128xf32>
    %63 = vector.extract_strided_slice %53 {offsets = [0, 128], sizes = [2, 128], strides = [1, 1]} : vector<2x384xf32> to vector<2x128xf32>
    %64 = arith.addf %62, %63 : vector<2x128xf32>
    %65 = arith.negf %64 : vector<2x128xf32>
    %66 = math.exp %65 : vector<2x128xf32>
    %cst_25 = arith.constant 1.000000e+00 : f32
    %67 = vector.broadcast %cst_25 : f32 to vector<2x128xf32>
    %68 = arith.addf %67, %66 : vector<2x128xf32>
    %69 = arith.divf %67, %68 : vector<2x128xf32>
    %70 = vector.extract_strided_slice %50 {offsets = [0, 256], sizes = [2, 128], strides = [1, 1]} : vector<2x384xf32> to vector<2x128xf32>
    %71 = vector.extract_strided_slice %53 {offsets = [0, 256], sizes = [2, 128], strides = [1, 1]} : vector<2x384xf32> to vector<2x128xf32>
    %72 = arith.mulf %61, %71 : vector<2x128xf32>
    %73 = arith.addf %70, %72 : vector<2x128xf32>
    %74 = math.tanh %73 : vector<2x128xf32>
    %cst_26 = arith.constant 1.000000e+00 : f32
    %75 = vector.broadcast %cst_26 : f32 to vector<2x128xf32>
    %76 = arith.subf %75, %69 : vector<2x128xf32>
    %77 = arith.mulf %76, %74 : vector<2x128xf32>
    %78 = arith.mulf %69, %45 : vector<2x128xf32>
    %79 = arith.addf %77, %78 : vector<2x128xf32>
    %c0_27 = arith.constant 0 : index
    %c0_28 = arith.constant 0 : index
    %c1 = arith.constant 1 : index
    %c0_29 = arith.constant 0 : index
    %80 = vector.load %arg8[%c0_27, %c0_28, %c1, %c0_29] : memref<2x2x8x128xf32, #tpu.memory_space<vmem>>, vector<2x1x1x128xf32>
    %81 = vector.shape_cast %80 : vector<2x1x1x128xf32> to vector<2x128xf32>
    %82 = vector.shape_cast %79 : vector<2x128xf32> to vector<2x1x1x128xf32>
    tpu.vector_store %arg8[%c0_27, %c0_28, %c1, %c0_29], %82 {strides = array<i32>} : memref<2x2x8x128xf32, #tpu.memory_space<vmem>>, vector<2x1x1x128xf32>,
    %83 = vector.extract_strided_slice %13 {offsets = [0, 2, 0], sizes = [2, 1, 384], strides = [1, 1, 1]} : vector<2x8x384xf32> to vector<2x1x384xf32>
    %84 = vector.shape_cast %83 : vector<2x1x384xf32> to vector<2x384xf32>
    %cst_30 = arith.constant dense<0.000000e+00> : vector<2x384xf32>
    %85 = tpu.matmul %79, %4, %cst_30 {dimension_numbers = #tpu.dot_dimension_numbers<[1], [0], [0], [1], [0, 0, 1, 1], [], []>} : vector<2x128xf32>, vector<128x384xf32>, vector<2x384xf32> -> vector<2x384xf32>
    %86 = vector.broadcast %8 : vector<1x384xf32> to vector<2x384xf32>
    %87 = arith.addf %85, %86 : vector<2x384xf32>
    %88 = vector.extract_strided_slice %84 {offsets = [0, 0], sizes = [2, 128], strides = [1, 1]} : vector<2x384xf32> to vector<2x128xf32>
    %89 = vector.extract_strided_slice %87 {offsets = [0, 0], sizes = [2, 128], strides = [1, 1]} : vector<2x384xf32> to vector<2x128xf32>
    %90 = arith.addf %88, %89 : vector<2x128xf32>
    %91 = arith.negf %90 : vector<2x128xf32>
    %92 = math.exp %91 : vector<2x128xf32>
    %cst_31 = arith.constant 1.000000e+00 : f32
    %93 = vector.broadcast %cst_31 : f32 to vector<2x128xf32>
    %94 = arith.addf %93, %92 : vector<2x128xf32>
    %95 = arith.divf %93, %94 : vector<2x128xf32>
    %96 = vector.extract_strided_slice %84 {offsets = [0, 128], sizes = [2, 128], strides = [1, 1]} : vector<2x384xf32> to vector<2x128xf32>
    %97 = vector.extract_strided_slice %87 {offsets = [0, 128], sizes = [2, 128], strides = [1, 1]} : vector<2x384xf32> to vector<2x128xf32>
    %98 = arith.addf %96, %97 : vector<2x128xf32>
    %99 = arith.negf %98 : vector<2x128xf32>
    %100 = math.exp %99 : vector<2x128xf32>
    %cst_32 = arith.constant 1.000000e+00 : f32
    %101 = vector.broadcast %cst_32 : f32 to vector<2x128xf32>
    %102 = arith.addf %101, %100 : vector<2x128xf32>
    %103 = arith.divf %101, %102 : vector<2x128xf32>
    %104 = vector.extract_strided_slice %84 {offsets = [0, 256], sizes = [2, 128], strides = [1, 1]} : vector<2x384xf32> to vector<2x128xf32>
    %105 = vector.extract_strided_slice %87 {offsets = [0, 256], sizes = [2, 128], strides = [1, 1]} : vector<2x384xf32> to vector<2x128xf32>
    %106 = arith.mulf %95, %105 : vector<2x128xf32>
    %107 = arith.addf %104, %106 : vector<2x128xf32>
    %108 = math.tanh %107 : vector<2x128xf32>
    %cst_33 = arith.constant 1.000000e+00 : f32
    %109 = vector.broadcast %cst_33 : f32 to vector<2x128xf32>
    %110 = arith.subf %109, %103 : vector<2x128xf32>
    %111 = arith.mulf %110, %108 : vector<2x128xf32>
    %112 = arith.mulf %103, %79 : vector<2x128xf32>
    %113 = arith.addf %111, %112 : vector<2x128xf32>
    %c0_34 = arith.constant 0 : index
    %c0_35 = arith.constant 0 : index
    %c2 = arith.constant 2 : index
    %c0_36 = arith.constant 0 : index
    %114 = vector.load %arg8[%c0_34, %c0_35, %c2, %c0_36] : memref<2x2x8x128xf32, #tpu.memory_space<vmem>>, vector<2x1x1x128xf32>
    %115 = vector.shape_cast %114 : vector<2x1x1x128xf32> to vector<2x128xf32>
    %116 = vector.shape_cast %113 : vector<2x128xf32> to vector<2x1x1x128xf32>
    tpu.vector_store %arg8[%c0_34, %c0_35, %c2, %c0_36], %116 {strides = array<i32>} : memref<2x2x8x128xf32, #tpu.memory_space<vmem>>, vector<2x1x1x128xf32>,
    %117 = vector.extract_strided_slice %13 {offsets = [0, 3, 0], sizes = [2, 1, 384], strides = [1, 1, 1]} : vector<2x8x384xf32> to vector<2x1x384xf32>
    %118 = vector.shape_cast %117 : vector<2x1x384xf32> to vector<2x384xf32>
    %cst_37 = arith.constant dense<0.000000e+00> : vector<2x384xf32>
    %119 = tpu.matmul %113, %4, %cst_37 {dimension_numbers = #tpu.dot_dimension_numbers<[1], [0], [0], [1], [0, 0, 1, 1], [], []>} : vector<2x128xf32>, vector<128x384xf32>, vector<2x384xf32> -> vector<2x384xf32>
    %120 = vector.broadcast %8 : vector<1x384xf32> to vector<2x384xf32>
    %121 = arith.addf %119, %120 : vector<2x384xf32>
    %122 = vector.extract_strided_slice %118 {offsets = [0, 0], sizes = [2, 128], strides = [1, 1]} : vector<2x384xf32> to vector<2x128xf32>
    %123 = vector.extract_strided_slice %121 {offsets = [0, 0], sizes = [2, 128], strides = [1, 1]} : vector<2x384xf32> to vector<2x128xf32>
    %124 = arith.addf %122, %123 : vector<2x128xf32>
    %125 = arith.negf %124 : vector<2x128xf32>
    %126 = math.exp %125 : vector<2x128xf32>
    %cst_38 = arith.constant 1.000000e+00 : f32
    %127 = vector.broadcast %cst_38 : f32 to vector<2x128xf32>
    %128 = arith.addf %127, %126 : vector<2x128xf32>
    %129 = arith.divf %127, %128 : vector<2x128xf32>
    %130 = vector.extract_strided_slice %118 {offsets = [0, 128], sizes = [2, 128], strides = [1, 1]} : vector<2x384xf32> to vector<2x128xf32>
    %131 = vector.extract_strided_slice %121 {offsets = [0, 128], sizes = [2, 128], strides = [1, 1]} : vector<2x384xf32> to vector<2x128xf32>
    %132 = arith.addf %130, %131 : vector<2x128xf32>
    %133 = arith.negf %132 : vector<2x128xf32>
    %134 = math.exp %133 : vector<2x128xf32>
    %cst_39 = arith.constant 1.000000e+00 : f32
    %135 = vector.broadcast %cst_39 : f32 to vector<2x128xf32>
    %136 = arith.addf %135, %134 : vector<2x128xf32>
    %137 = arith.divf %135, %136 : vector<2x128xf32>
    %138 = vector.extract_strided_slice %118 {offsets = [0, 256], sizes = [2, 128], strides = [1, 1]} : vector<2x384xf32> to vector<2x128xf32>
    %139 = vector.extract_strided_slice %121 {offsets = [0, 256], sizes = [2, 128], strides = [1, 1]} : vector<2x384xf32> to vector<2x128xf32>
    %140 = arith.mulf %129, %139 : vector<2x128xf32>
    %141 = arith.addf %138, %140 : vector<2x128xf32>
    %142 = math.tanh %141 : vector<2x128xf32>
    %cst_40 = arith.constant 1.000000e+00 : f32
    %143 = vector.broadcast %cst_40 : f32 to vector<2x128xf32>
    %144 = arith.subf %143, %137 : vector<2x128xf32>
    %145 = arith.mulf %144, %142 : vector<2x128xf32>
    %146 = arith.mulf %137, %113 : vector<2x128xf32>
    %147 = arith.addf %145, %146 : vector<2x128xf32>
    %c0_41 = arith.constant 0 : index
    %c0_42 = arith.constant 0 : index
    %c3 = arith.constant 3 : index
    %c0_43 = arith.constant 0 : index
    %148 = vector.load %arg8[%c0_41, %c0_42, %c3, %c0_43] : memref<2x2x8x128xf32, #tpu.memory_space<vmem>>, vector<2x1x1x128xf32>
    %149 = vector.shape_cast %148 : vector<2x1x1x128xf32> to vector<2x128xf32>
    %150 = vector.shape_cast %147 : vector<2x128xf32> to vector<2x1x1x128xf32>
    tpu.vector_store %arg8[%c0_41, %c0_42, %c3, %c0_43], %150 {strides = array<i32>} : memref<2x2x8x128xf32, #tpu.memory_space<vmem>>, vector<2x1x1x128xf32>,
    %151 = vector.extract_strided_slice %13 {offsets = [0, 4, 0], sizes = [2, 1, 384], strides = [1, 1, 1]} : vector<2x8x384xf32> to vector<2x1x384xf32>
    %152 = vector.shape_cast %151 : vector<2x1x384xf32> to vector<2x384xf32>
    %cst_44 = arith.constant dense<0.000000e+00> : vector<2x384xf32>
    %153 = tpu.matmul %147, %4, %cst_44 {dimension_numbers = #tpu.dot_dimension_numbers<[1], [0], [0], [1], [0, 0, 1, 1], [], []>} : vector<2x128xf32>, vector<128x384xf32>, vector<2x384xf32> -> vector<2x384xf32>
    %154 = vector.broadcast %8 : vector<1x384xf32> to vector<2x384xf32>
    %155 = arith.addf %153, %154 : vector<2x384xf32>
    %156 = vector.extract_strided_slice %152 {offsets = [0, 0], sizes = [2, 128], strides = [1, 1]} : vector<2x384xf32> to vector<2x128xf32>
    %157 = vector.extract_strided_slice %155 {offsets = [0, 0], sizes = [2, 128], strides = [1, 1]} : vector<2x384xf32> to vector<2x128xf32>
    %158 = arith.addf %156, %157 : vector<2x128xf32>
    %159 = arith.negf %158 : vector<2x128xf32>
    %160 = math.exp %159 : vector<2x128xf32>
    %cst_45 = arith.constant 1.000000e+00 : f32
    %161 = vector.broadcast %cst_45 : f32 to vector<2x128xf32>
    %162 = arith.addf %161, %160 : vector<2x128xf32>
    %163 = arith.divf %161, %162 : vector<2x128xf32>
    %164 = vector.extract_strided_slice %152 {offsets = [0, 128], sizes = [2, 128], strides = [1, 1]} : vector<2x384xf32> to vector<2x128xf32>
    %165 = vector.extract_strided_slice %155 {offsets = [0, 128], sizes = [2, 128], strides = [1, 1]} : vector<2x384xf32> to vector<2x128xf32>
    %166 = arith.addf %164, %165 : vector<2x128xf32>
    %167 = arith.negf %166 : vector<2x128xf32>
    %168 = math.exp %167 : vector<2x128xf32>
    %cst_46 = arith.constant 1.000000e+00 : f32
    %169 = vector.broadcast %cst_46 : f32 to vector<2x128xf32>
    %170 = arith.addf %169, %168 : vector<2x128xf32>
    %171 = arith.divf %169, %170 : vector<2x128xf32>
    %172 = vector.extract_strided_slice %152 {offsets = [0, 256], sizes = [2, 128], strides = [1, 1]} : vector<2x384xf32> to vector<2x128xf32>
    %173 = vector.extract_strided_slice %155 {offsets = [0, 256], sizes = [2, 128], strides = [1, 1]} : vector<2x384xf32> to vector<2x128xf32>
    %174 = arith.mulf %163, %173 : vector<2x128xf32>
    %175 = arith.addf %172, %174 : vector<2x128xf32>
    %176 = math.tanh %175 : vector<2x128xf32>
    %cst_47 = arith.constant 1.000000e+00 : f32
    %177 = vector.broadcast %cst_47 : f32 to vector<2x128xf32>
    %178 = arith.subf %177, %171 : vector<2x128xf32>
    %179 = arith.mulf %178, %176 : vector<2x128xf32>
    %180 = arith.mulf %171, %147 : vector<2x128xf32>
    %181 = arith.addf %179, %180 : vector<2x128xf32>
    %c0_48 = arith.constant 0 : index
    %c0_49 = arith.constant 0 : index
    %c4 = arith.constant 4 : index
    %c0_50 = arith.constant 0 : index
    %182 = vector.load %arg8[%c0_48, %c0_49, %c4, %c0_50] : memref<2x2x8x128xf32, #tpu.memory_space<vmem>>, vector<2x1x1x128xf32>
    %183 = vector.shape_cast %182 : vector<2x1x1x128xf32> to vector<2x128xf32>
    %184 = vector.shape_cast %181 : vector<2x128xf32> to vector<2x1x1x128xf32>
    tpu.vector_store %arg8[%c0_48, %c0_49, %c4, %c0_50], %184 {strides = array<i32>} : memref<2x2x8x128xf32, #tpu.memory_space<vmem>>, vector<2x1x1x128xf32>,
    %185 = vector.extract_strided_slice %13 {offsets = [0, 5, 0], sizes = [2, 1, 384], strides = [1, 1, 1]} : vector<2x8x384xf32> to vector<2x1x384xf32>
    %186 = vector.shape_cast %185 : vector<2x1x384xf32> to vector<2x384xf32>
    %cst_51 = arith.constant dense<0.000000e+00> : vector<2x384xf32>
    %187 = tpu.matmul %181, %4, %cst_51 {dimension_numbers = #tpu.dot_dimension_numbers<[1], [0], [0], [1], [0, 0, 1, 1], [], []>} : vector<2x128xf32>, vector<128x384xf32>, vector<2x384xf32> -> vector<2x384xf32>
    %188 = vector.broadcast %8 : vector<1x384xf32> to vector<2x384xf32>
    %189 = arith.addf %187, %188 : vector<2x384xf32>
    %190 = vector.extract_strided_slice %186 {offsets = [0, 0], sizes = [2, 128], strides = [1, 1]} : vector<2x384xf32> to vector<2x128xf32>
    %191 = vector.extract_strided_slice %189 {offsets = [0, 0], sizes = [2, 128], strides = [1, 1]} : vector<2x384xf32> to vector<2x128xf32>
    %192 = arith.addf %190, %191 : vector<2x128xf32>
    %193 = arith.negf %192 : vector<2x128xf32>
    %194 = math.exp %193 : vector<2x128xf32>
    %cst_52 = arith.constant 1.000000e+00 : f32
    %195 = vector.broadcast %cst_52 : f32 to vector<2x128xf32>
    %196 = arith.addf %195, %194 : vector<2x128xf32>
    %197 = arith.divf %195, %196 : vector<2x128xf32>
    %198 = vector.extract_strided_slice %186 {offsets = [0, 128], sizes = [2, 128], strides = [1, 1]} : vector<2x384xf32> to vector<2x128xf32>
    %199 = vector.extract_strided_slice %189 {offsets = [0, 128], sizes = [2, 128], strides = [1, 1]} : vector<2x384xf32> to vector<2x128xf32>
    %200 = arith.addf %198, %199 : vector<2x128xf32>
    %201 = arith.negf %200 : vector<2x128xf32>
    %202 = math.exp %201 : vector<2x128xf32>
    %cst_53 = arith.constant 1.000000e+00 : f32
    %203 = vector.broadcast %cst_53 : f32 to vector<2x128xf32>
    %204 = arith.addf %203, %202 : vector<2x128xf32>
    %205 = arith.divf %203, %204 : vector<2x128xf32>
    %206 = vector.extract_strided_slice %186 {offsets = [0, 256], sizes = [2, 128], strides = [1, 1]} : vector<2x384xf32> to vector<2x128xf32>
    %207 = vector.extract_strided_slice %189 {offsets = [0, 256], sizes = [2, 128], strides = [1, 1]} : vector<2x384xf32> to vector<2x128xf32>
    %208 = arith.mulf %197, %207 : vector<2x128xf32>
    %209 = arith.addf %206, %208 : vector<2x128xf32>
    %210 = math.tanh %209 : vector<2x128xf32>
    %cst_54 = arith.constant 1.000000e+00 : f32
    %211 = vector.broadcast %cst_54 : f32 to vector<2x128xf32>
    %212 = arith.subf %211, %205 : vector<2x128xf32>
    %213 = arith.mulf %212, %210 : vector<2x128xf32>
    %214 = arith.mulf %205, %181 : vector<2x128xf32>
    %215 = arith.addf %213, %214 : vector<2x128xf32>
    %c0_55 = arith.constant 0 : index
    %c0_56 = arith.constant 0 : index
    %c5 = arith.constant 5 : index
    %c0_57 = arith.constant 0 : index
    %216 = vector.load %arg8[%c0_55, %c0_56, %c5, %c0_57] : memref<2x2x8x128xf32, #tpu.memory_space<vmem>>, vector<2x1x1x128xf32>
    %217 = vector.shape_cast %216 : vector<2x1x1x128xf32> to vector<2x128xf32>
    %218 = vector.shape_cast %215 : vector<2x128xf32> to vector<2x1x1x128xf32>
    tpu.vector_store %arg8[%c0_55, %c0_56, %c5, %c0_57], %218 {strides = array<i32>} : memref<2x2x8x128xf32, #tpu.memory_space<vmem>>, vector<2x1x1x128xf32>,
    %219 = vector.extract_strided_slice %13 {offsets = [0, 6, 0], sizes = [2, 1, 384], strides = [1, 1, 1]} : vector<2x8x384xf32> to vector<2x1x384xf32>
    %220 = vector.shape_cast %219 : vector<2x1x384xf32> to vector<2x384xf32>
    %cst_58 = arith.constant dense<0.000000e+00> : vector<2x384xf32>
    %221 = tpu.matmul %215, %4, %cst_58 {dimension_numbers = #tpu.dot_dimension_numbers<[1], [0], [0], [1], [0, 0, 1, 1], [], []>} : vector<2x128xf32>, vector<128x384xf32>, vector<2x384xf32> -> vector<2x384xf32>
    %222 = vector.broadcast %8 : vector<1x384xf32> to vector<2x384xf32>
    %223 = arith.addf %221, %222 : vector<2x384xf32>
    %224 = vector.extract_strided_slice %220 {offsets = [0, 0], sizes = [2, 128], strides = [1, 1]} : vector<2x384xf32> to vector<2x128xf32>
    %225 = vector.extract_strided_slice %223 {offsets = [0, 0], sizes = [2, 128], strides = [1, 1]} : vector<2x384xf32> to vector<2x128xf32>
    %226 = arith.addf %224, %225 : vector<2x128xf32>
    %227 = arith.negf %226 : vector<2x128xf32>
    %228 = math.exp %227 : vector<2x128xf32>
    %cst_59 = arith.constant 1.000000e+00 : f32
    %229 = vector.broadcast %cst_59 : f32 to vector<2x128xf32>
    %230 = arith.addf %229, %228 : vector<2x128xf32>
    %231 = arith.divf %229, %230 : vector<2x128xf32>
    %232 = vector.extract_strided_slice %220 {offsets = [0, 128], sizes = [2, 128], strides = [1, 1]} : vector<2x384xf32> to vector<2x128xf32>
    %233 = vector.extract_strided_slice %223 {offsets = [0, 128], sizes = [2, 128], strides = [1, 1]} : vector<2x384xf32> to vector<2x128xf32>
    %234 = arith.addf %232, %233 : vector<2x128xf32>
    %235 = arith.negf %234 : vector<2x128xf32>
    %236 = math.exp %235 : vector<2x128xf32>
    %cst_60 = arith.constant 1.000000e+00 : f32
    %237 = vector.broadcast %cst_60 : f32 to vector<2x128xf32>
    %238 = arith.addf %237, %236 : vector<2x128xf32>
    %239 = arith.divf %237, %238 : vector<2x128xf32>
    %240 = vector.extract_strided_slice %220 {offsets = [0, 256], sizes = [2, 128], strides = [1, 1]} : vector<2x384xf32> to vector<2x128xf32>
    %241 = vector.extract_strided_slice %223 {offsets = [0, 256], sizes = [2, 128], strides = [1, 1]} : vector<2x384xf32> to vector<2x128xf32>
    %242 = arith.mulf %231, %241 : vector<2x128xf32>
    %243 = arith.addf %240, %242 : vector<2x128xf32>
    %244 = math.tanh %243 : vector<2x128xf32>
    %cst_61 = arith.constant 1.000000e+00 : f32
    %245 = vector.broadcast %cst_61 : f32 to vector<2x128xf32>
    %246 = arith.subf %245, %239 : vector<2x128xf32>
    %247 = arith.mulf %246, %244 : vector<2x128xf32>
    %248 = arith.mulf %239, %215 : vector<2x128xf32>
    %249 = arith.addf %247, %248 : vector<2x128xf32>
    %c0_62 = arith.constant 0 : index
    %c0_63 = arith.constant 0 : index
    %c6 = arith.constant 6 : index
    %c0_64 = arith.constant 0 : index
    %250 = vector.load %arg8[%c0_62, %c0_63, %c6, %c0_64] : memref<2x2x8x128xf32, #tpu.memory_space<vmem>>, vector<2x1x1x128xf32>
    %251 = vector.shape_cast %250 : vector<2x1x1x128xf32> to vector<2x128xf32>
    %252 = vector.shape_cast %249 : vector<2x128xf32> to vector<2x1x1x128xf32>
    tpu.vector_store %arg8[%c0_62, %c0_63, %c6, %c0_64], %252 {strides = array<i32>} : memref<2x2x8x128xf32, #tpu.memory_space<vmem>>, vector<2x1x1x128xf32>,
    %253 = vector.extract_strided_slice %13 {offsets = [0, 7, 0], sizes = [2, 1, 384], strides = [1, 1, 1]} : vector<2x8x384xf32> to vector<2x1x384xf32>
    %254 = vector.shape_cast %253 : vector<2x1x384xf32> to vector<2x384xf32>
    %cst_65 = arith.constant dense<0.000000e+00> : vector<2x384xf32>
    %255 = tpu.matmul %249, %4, %cst_65 {dimension_numbers = #tpu.dot_dimension_numbers<[1], [0], [0], [1], [0, 0, 1, 1], [], []>} : vector<2x128xf32>, vector<128x384xf32>, vector<2x384xf32> -> vector<2x384xf32>
    %256 = vector.broadcast %8 : vector<1x384xf32> to vector<2x384xf32>
    %257 = arith.addf %255, %256 : vector<2x384xf32>
    %258 = vector.extract_strided_slice %254 {offsets = [0, 0], sizes = [2, 128], strides = [1, 1]} : vector<2x384xf32> to vector<2x128xf32>
    %259 = vector.extract_strided_slice %257 {offsets = [0, 0], sizes = [2, 128], strides = [1, 1]} : vector<2x384xf32> to vector<2x128xf32>
    %260 = arith.addf %258, %259 : vector<2x128xf32>
    %261 = arith.negf %260 : vector<2x128xf32>
    %262 = math.exp %261 : vector<2x128xf32>
    %cst_66 = arith.constant 1.000000e+00 : f32
    %263 = vector.broadcast %cst_66 : f32 to vector<2x128xf32>
    %264 = arith.addf %263, %262 : vector<2x128xf32>
    %265 = arith.divf %263, %264 : vector<2x128xf32>
    %266 = vector.extract_strided_slice %254 {offsets = [0, 128], sizes = [2, 128], strides = [1, 1]} : vector<2x384xf32> to vector<2x128xf32>
    %267 = vector.extract_strided_slice %257 {offsets = [0, 128], sizes = [2, 128], strides = [1, 1]} : vector<2x384xf32> to vector<2x128xf32>
    %268 = arith.addf %266, %267 : vector<2x128xf32>
    %269 = arith.negf %268 : vector<2x128xf32>
    %270 = math.exp %269 : vector<2x128xf32>
    %cst_67 = arith.constant 1.000000e+00 : f32
    %271 = vector.broadcast %cst_67 : f32 to vector<2x128xf32>
    %272 = arith.addf %271, %270 : vector<2x128xf32>
    %273 = arith.divf %271, %272 : vector<2x128xf32>
    %274 = vector.extract_strided_slice %254 {offsets = [0, 256], sizes = [2, 128], strides = [1, 1]} : vector<2x384xf32> to vector<2x128xf32>
    %275 = vector.extract_strided_slice %257 {offsets = [0, 256], sizes = [2, 128], strides = [1, 1]} : vector<2x384xf32> to vector<2x128xf32>
    %276 = arith.mulf %265, %275 : vector<2x128xf32>
    %277 = arith.addf %274, %276 : vector<2x128xf32>
    %278 = math.tanh %277 : vector<2x128xf32>
    %cst_68 = arith.constant 1.000000e+00 : f32
    %279 = vector.broadcast %cst_68 : f32 to vector<2x128xf32>
    %280 = arith.subf %279, %273 : vector<2x128xf32>
    %281 = arith.mulf %280, %278 : vector<2x128xf32>
    %282 = arith.mulf %273, %249 : vector<2x128xf32>
    %283 = arith.addf %281, %282 : vector<2x128xf32>
    %c0_69 = arith.constant 0 : index
    %c0_70 = arith.constant 0 : index
    %c7 = arith.constant 7 : index
    %c0_71 = arith.constant 0 : index
    %284 = vector.load %arg8[%c0_69, %c0_70, %c7, %c0_71] : memref<2x2x8x128xf32, #tpu.memory_space<vmem>>, vector<2x1x1x128xf32>
    %285 = vector.shape_cast %284 : vector<2x1x1x128xf32> to vector<2x128xf32>
    %286 = vector.shape_cast %283 : vector<2x128xf32> to vector<2x1x1x128xf32>
    tpu.vector_store %arg8[%c0_69, %c0_70, %c7, %c0_71], %286 {strides = array<i32>} : memref<2x2x8x128xf32, #tpu.memory_space<vmem>>, vector<2x1x1x128xf32>,
    %c0_72 = arith.constant 0 : index
    %c0_73 = arith.constant 0 : index
    %c0_74 = arith.constant 0 : index
    %c0_75 = arith.constant 0 : index
    %287 = vector.load %arg8[%c0_72, %c0_73, %c0_74, %c0_75] : memref<2x2x8x128xf32, #tpu.memory_space<vmem>>, vector<2x1x8x128xf32>
    %288 = vector.shape_cast %287 : vector<2x1x8x128xf32> to vector<2x8x128xf32>
    %c1_76 = arith.constant 1 : index
    %c0_77 = arith.constant 0 : index
    %c0_78 = arith.constant 0 : index
    %289 = vector.load %arg2[%c1_76, %c0_77, %c0_78] : memref<2x128x384xf32, #tpu.memory_space<vmem>>, vector<1x128x384xf32>
    %290 = vector.shape_cast %289 : vector<1x128x384xf32> to vector<128x384xf32>
    %c1_79 = arith.constant 1 : index
    %c0_80 = arith.constant 0 : index
    %c0_81 = arith.constant 0 : index
    %291 = vector.load %arg3[%c1_79, %c0_80, %c0_81] : memref<2x128x384xf32, #tpu.memory_space<vmem>>, vector<1x128x384xf32>
    %292 = vector.shape_cast %291 : vector<1x128x384xf32> to vector<128x384xf32>
    %c1_82 = arith.constant 1 : index
    %c0_83 = arith.constant 0 : index
    %c0_84 = arith.constant 0 : index
    %293 = vector.load %arg4[%c1_82, %c0_83, %c0_84] : memref<2x1x384xf32, #tpu.memory_space<vmem>>, vector<1x1x384xf32>
    %294 = vector.shape_cast %293 : vector<1x1x384xf32> to vector<1x384xf32>
    %c1_85 = arith.constant 1 : index
    %c0_86 = arith.constant 0 : index
    %c0_87 = arith.constant 0 : index
    %295 = vector.load %arg5[%c1_85, %c0_86, %c0_87] : memref<2x1x384xf32, #tpu.memory_space<vmem>>, vector<1x1x384xf32>
    %296 = vector.shape_cast %295 : vector<1x1x384xf32> to vector<1x384xf32>
    %297 = vector.shape_cast %288 : vector<2x8x128xf32> to vector<16x128xf32>
    %cst_88 = arith.constant dense<0.000000e+00> : vector<16x384xf32>
    %298 = tpu.matmul %297, %290, %cst_88 {dimension_numbers = #tpu.dot_dimension_numbers<[1], [0], [0], [1], [0, 0, 1, 1], [], []>} : vector<16x128xf32>, vector<128x384xf32>, vector<16x384xf32> -> vector<16x384xf32>
    %299 = vector.broadcast %294 : vector<1x384xf32> to vector<16x384xf32>
    %300 = arith.addf %298, %299 : vector<16x384xf32>
    %301 = vector.shape_cast %300 : vector<16x384xf32> to vector<2x8x384xf32>
    %cst_89 = arith.constant 0.000000e+00 : f32
    %302 = vector.broadcast %cst_89 : f32 to vector<2x128xf32>
    %303 = vector.extract_strided_slice %301 {offsets = [0, 0, 0], sizes = [2, 1, 384], strides = [1, 1, 1]} : vector<2x8x384xf32> to vector<2x1x384xf32>
    %304 = vector.shape_cast %303 : vector<2x1x384xf32> to vector<2x384xf32>
    %cst_90 = arith.constant dense<0.000000e+00> : vector<2x384xf32>
    %305 = tpu.matmul %302, %292, %cst_90 {dimension_numbers = #tpu.dot_dimension_numbers<[1], [0], [0], [1], [0, 0, 1, 1], [], []>} : vector<2x128xf32>, vector<128x384xf32>, vector<2x384xf32> -> vector<2x384xf32>
    %306 = vector.broadcast %296 : vector<1x384xf32> to vector<2x384xf32>
    %307 = arith.addf %305, %306 : vector<2x384xf32>
    %308 = vector.extract_strided_slice %304 {offsets = [0, 0], sizes = [2, 128], strides = [1, 1]} : vector<2x384xf32> to vector<2x128xf32>
    %309 = vector.extract_strided_slice %307 {offsets = [0, 0], sizes = [2, 128], strides = [1, 1]} : vector<2x384xf32> to vector<2x128xf32>
    %310 = arith.addf %308, %309 : vector<2x128xf32>
    %311 = arith.negf %310 : vector<2x128xf32>
    %312 = math.exp %311 : vector<2x128xf32>
    %cst_91 = arith.constant 1.000000e+00 : f32
    %313 = vector.broadcast %cst_91 : f32 to vector<2x128xf32>
    %314 = arith.addf %313, %312 : vector<2x128xf32>
    %315 = arith.divf %313, %314 : vector<2x128xf32>
    %316 = vector.extract_strided_slice %304 {offsets = [0, 128], sizes = [2, 128], strides = [1, 1]} : vector<2x384xf32> to vector<2x128xf32>
    %317 = vector.extract_strided_slice %307 {offsets = [0, 128], sizes = [2, 128], strides = [1, 1]} : vector<2x384xf32> to vector<2x128xf32>
    %318 = arith.addf %316, %317 : vector<2x128xf32>
    %319 = arith.negf %318 : vector<2x128xf32>
    %320 = math.exp %319 : vector<2x128xf32>
    %cst_92 = arith.constant 1.000000e+00 : f32
    %321 = vector.broadcast %cst_92 : f32 to vector<2x128xf32>
    %322 = arith.addf %321, %320 : vector<2x128xf32>
    %323 = arith.divf %321, %322 : vector<2x128xf32>
    %324 = vector.extract_strided_slice %304 {offsets = [0, 256], sizes = [2, 128], strides = [1, 1]} : vector<2x384xf32> to vector<2x128xf32>
    %325 = vector.extract_strided_slice %307 {offsets = [0, 256], sizes = [2, 128], strides = [1, 1]} : vector<2x384xf32> to vector<2x128xf32>
    %326 = arith.mulf %315, %325 : vector<2x128xf32>
    %327 = arith.addf %324, %326 : vector<2x128xf32>
    %328 = math.tanh %327 : vector<2x128xf32>
    %cst_93 = arith.constant 1.000000e+00 : f32
    %329 = vector.broadcast %cst_93 : f32 to vector<2x128xf32>
    %330 = arith.subf %329, %323 : vector<2x128xf32>
    %331 = arith.mulf %330, %328 : vector<2x128xf32>
    %332 = arith.mulf %323, %302 : vector<2x128xf32>
    %333 = arith.addf %331, %332 : vector<2x128xf32>
    %c0_94 = arith.constant 0 : index
    %c1_95 = arith.constant 1 : index
    %c0_96 = arith.constant 0 : index
    %c0_97 = arith.constant 0 : index
    %334 = vector.load %arg8[%c0_94, %c1_95, %c0_96, %c0_97] : memref<2x2x8x128xf32, #tpu.memory_space<vmem>>, vector<2x1x1x128xf32>
    %335 = vector.shape_cast %334 : vector<2x1x1x128xf32> to vector<2x128xf32>
    %336 = vector.shape_cast %333 : vector<2x128xf32> to vector<2x1x1x128xf32>
    tpu.vector_store %arg8[%c0_94, %c1_95, %c0_96, %c0_97], %336 {strides = array<i32>} : memref<2x2x8x128xf32, #tpu.memory_space<vmem>>, vector<2x1x1x128xf32>,
    %337 = vector.extract_strided_slice %301 {offsets = [0, 1, 0], sizes = [2, 1, 384], strides = [1, 1, 1]} : vector<2x8x384xf32> to vector<2x1x384xf32>
    %338 = vector.shape_cast %337 : vector<2x1x384xf32> to vector<2x384xf32>
    %cst_98 = arith.constant dense<0.000000e+00> : vector<2x384xf32>
    %339 = tpu.matmul %333, %292, %cst_98 {dimension_numbers = #tpu.dot_dimension_numbers<[1], [0], [0], [1], [0, 0, 1, 1], [], []>} : vector<2x128xf32>, vector<128x384xf32>, vector<2x384xf32> -> vector<2x384xf32>
    %340 = vector.broadcast %296 : vector<1x384xf32> to vector<2x384xf32>
    %341 = arith.addf %339, %340 : vector<2x384xf32>
    %342 = vector.extract_strided_slice %338 {offsets = [0, 0], sizes = [2, 128], strides = [1, 1]} : vector<2x384xf32> to vector<2x128xf32>
    %343 = vector.extract_strided_slice %341 {offsets = [0, 0], sizes = [2, 128], strides = [1, 1]} : vector<2x384xf32> to vector<2x128xf32>
    %344 = arith.addf %342, %343 : vector<2x128xf32>
    %345 = arith.negf %344 : vector<2x128xf32>
    %346 = math.exp %345 : vector<2x128xf32>
    %cst_99 = arith.constant 1.000000e+00 : f32
    %347 = vector.broadcast %cst_99 : f32 to vector<2x128xf32>
    %348 = arith.addf %347, %346 : vector<2x128xf32>
    %349 = arith.divf %347, %348 : vector<2x128xf32>
    %350 = vector.extract_strided_slice %338 {offsets = [0, 128], sizes = [2, 128], strides = [1, 1]} : vector<2x384xf32> to vector<2x128xf32>
    %351 = vector.extract_strided_slice %341 {offsets = [0, 128], sizes = [2, 128], strides = [1, 1]} : vector<2x384xf32> to vector<2x128xf32>
    %352 = arith.addf %350, %351 : vector<2x128xf32>
    %353 = arith.negf %352 : vector<2x128xf32>
    %354 = math.exp %353 : vector<2x128xf32>
    %cst_100 = arith.constant 1.000000e+00 : f32
    %355 = vector.broadcast %cst_100 : f32 to vector<2x128xf32>
    %356 = arith.addf %355, %354 : vector<2x128xf32>
    %357 = arith.divf %355, %356 : vector<2x128xf32>
    %358 = vector.extract_strided_slice %338 {offsets = [0, 256], sizes = [2, 128], strides = [1, 1]} : vector<2x384xf32> to vector<2x128xf32>
    %359 = vector.extract_strided_slice %341 {offsets = [0, 256], sizes = [2, 128], strides = [1, 1]} : vector<2x384xf32> to vector<2x128xf32>
    %360 = arith.mulf %349, %359 : vector<2x128xf32>
    %361 = arith.addf %358, %360 : vector<2x128xf32>
    %362 = math.tanh %361 : vector<2x128xf32>
    %cst_101 = arith.constant 1.000000e+00 : f32
    %363 = vector.broadcast %cst_101 : f32 to vector<2x128xf32>
    %364 = arith.subf %363, %357 : vector<2x128xf32>
    %365 = arith.mulf %364, %362 : vector<2x128xf32>
    %366 = arith.mulf %357, %333 : vector<2x128xf32>
    %367 = arith.addf %365, %366 : vector<2x128xf32>
    %c0_102 = arith.constant 0 : index
    %c1_103 = arith.constant 1 : index
    %c1_104 = arith.constant 1 : index
    %c0_105 = arith.constant 0 : index
    %368 = vector.load %arg8[%c0_102, %c1_103, %c1_104, %c0_105] : memref<2x2x8x128xf32, #tpu.memory_space<vmem>>, vector<2x1x1x128xf32>
    %369 = vector.shape_cast %368 : vector<2x1x1x128xf32> to vector<2x128xf32>
    %370 = vector.shape_cast %367 : vector<2x128xf32> to vector<2x1x1x128xf32>
    tpu.vector_store %arg8[%c0_102, %c1_103, %c1_104, %c0_105], %370 {strides = array<i32>} : memref<2x2x8x128xf32, #tpu.memory_space<vmem>>, vector<2x1x1x128xf32>,
    %371 = vector.extract_strided_slice %301 {offsets = [0, 2, 0], sizes = [2, 1, 384], strides = [1, 1, 1]} : vector<2x8x384xf32> to vector<2x1x384xf32>
    %372 = vector.shape_cast %371 : vector<2x1x384xf32> to vector<2x384xf32>
    %cst_106 = arith.constant dense<0.000000e+00> : vector<2x384xf32>
    %373 = tpu.matmul %367, %292, %cst_106 {dimension_numbers = #tpu.dot_dimension_numbers<[1], [0], [0], [1], [0, 0, 1, 1], [], []>} : vector<2x128xf32>, vector<128x384xf32>, vector<2x384xf32> -> vector<2x384xf32>
    %374 = vector.broadcast %296 : vector<1x384xf32> to vector<2x384xf32>
    %375 = arith.addf %373, %374 : vector<2x384xf32>
    %376 = vector.extract_strided_slice %372 {offsets = [0, 0], sizes = [2, 128], strides = [1, 1]} : vector<2x384xf32> to vector<2x128xf32>
    %377 = vector.extract_strided_slice %375 {offsets = [0, 0], sizes = [2, 128], strides = [1, 1]} : vector<2x384xf32> to vector<2x128xf32>
    %378 = arith.addf %376, %377 : vector<2x128xf32>
    %379 = arith.negf %378 : vector<2x128xf32>
    %380 = math.exp %379 : vector<2x128xf32>
    %cst_107 = arith.constant 1.000000e+00 : f32
    %381 = vector.broadcast %cst_107 : f32 to vector<2x128xf32>
    %382 = arith.addf %381, %380 : vector<2x128xf32>
    %383 = arith.divf %381, %382 : vector<2x128xf32>
    %384 = vector.extract_strided_slice %372 {offsets = [0, 128], sizes = [2, 128], strides = [1, 1]} : vector<2x384xf32> to vector<2x128xf32>
    %385 = vector.extract_strided_slice %375 {offsets = [0, 128], sizes = [2, 128], strides = [1, 1]} : vector<2x384xf32> to vector<2x128xf32>
    %386 = arith.addf %384, %385 : vector<2x128xf32>
    %387 = arith.negf %386 : vector<2x128xf32>
    %388 = math.exp %387 : vector<2x128xf32>
    %cst_108 = arith.constant 1.000000e+00 : f32
    %389 = vector.broadcast %cst_108 : f32 to vector<2x128xf32>
    %390 = arith.addf %389, %388 : vector<2x128xf32>
    %391 = arith.divf %389, %390 : vector<2x128xf32>
    %392 = vector.extract_strided_slice %372 {offsets = [0, 256], sizes = [2, 128], strides = [1, 1]} : vector<2x384xf32> to vector<2x128xf32>
    %393 = vector.extract_strided_slice %375 {offsets = [0, 256], sizes = [2, 128], strides = [1, 1]} : vector<2x384xf32> to vector<2x128xf32>
    %394 = arith.mulf %383, %393 : vector<2x128xf32>
    %395 = arith.addf %392, %394 : vector<2x128xf32>
    %396 = math.tanh %395 : vector<2x128xf32>
    %cst_109 = arith.constant 1.000000e+00 : f32
    %397 = vector.broadcast %cst_109 : f32 to vector<2x128xf32>
    %398 = arith.subf %397, %391 : vector<2x128xf32>
    %399 = arith.mulf %398, %396 : vector<2x128xf32>
    %400 = arith.mulf %391, %367 : vector<2x128xf32>
    %401 = arith.addf %399, %400 : vector<2x128xf32>
    %c0_110 = arith.constant 0 : index
    %c1_111 = arith.constant 1 : index
    %c2_112 = arith.constant 2 : index
    %c0_113 = arith.constant 0 : index
    %402 = vector.load %arg8[%c0_110, %c1_111, %c2_112, %c0_113] : memref<2x2x8x128xf32, #tpu.memory_space<vmem>>, vector<2x1x1x128xf32>
    %403 = vector.shape_cast %402 : vector<2x1x1x128xf32> to vector<2x128xf32>
    %404 = vector.shape_cast %401 : vector<2x128xf32> to vector<2x1x1x128xf32>
    tpu.vector_store %arg8[%c0_110, %c1_111, %c2_112, %c0_113], %404 {strides = array<i32>} : memref<2x2x8x128xf32, #tpu.memory_space<vmem>>, vector<2x1x1x128xf32>,
    %405 = vector.extract_strided_slice %301 {offsets = [0, 3, 0], sizes = [2, 1, 384], strides = [1, 1, 1]} : vector<2x8x384xf32> to vector<2x1x384xf32>
    %406 = vector.shape_cast %405 : vector<2x1x384xf32> to vector<2x384xf32>
    %cst_114 = arith.constant dense<0.000000e+00> : vector<2x384xf32>
    %407 = tpu.matmul %401, %292, %cst_114 {dimension_numbers = #tpu.dot_dimension_numbers<[1], [0], [0], [1], [0, 0, 1, 1], [], []>} : vector<2x128xf32>, vector<128x384xf32>, vector<2x384xf32> -> vector<2x384xf32>
    %408 = vector.broadcast %296 : vector<1x384xf32> to vector<2x384xf32>
    %409 = arith.addf %407, %408 : vector<2x384xf32>
    %410 = vector.extract_strided_slice %406 {offsets = [0, 0], sizes = [2, 128], strides = [1, 1]} : vector<2x384xf32> to vector<2x128xf32>
    %411 = vector.extract_strided_slice %409 {offsets = [0, 0], sizes = [2, 128], strides = [1, 1]} : vector<2x384xf32> to vector<2x128xf32>
    %412 = arith.addf %410, %411 : vector<2x128xf32>
    %413 = arith.negf %412 : vector<2x128xf32>
    %414 = math.exp %413 : vector<2x128xf32>
    %cst_115 = arith.constant 1.000000e+00 : f32
    %415 = vector.broadcast %cst_115 : f32 to vector<2x128xf32>
    %416 = arith.addf %415, %414 : vector<2x128xf32>
    %417 = arith.divf %415, %416 : vector<2x128xf32>
    %418 = vector.extract_strided_slice %406 {offsets = [0, 128], sizes = [2, 128], strides = [1, 1]} : vector<2x384xf32> to vector<2x128xf32>
    %419 = vector.extract_strided_slice %409 {offsets = [0, 128], sizes = [2, 128], strides = [1, 1]} : vector<2x384xf32> to vector<2x128xf32>
    %420 = arith.addf %418, %419 : vector<2x128xf32>
    %421 = arith.negf %420 : vector<2x128xf32>
    %422 = math.exp %421 : vector<2x128xf32>
    %cst_116 = arith.constant 1.000000e+00 : f32
    %423 = vector.broadcast %cst_116 : f32 to vector<2x128xf32>
    %424 = arith.addf %423, %422 : vector<2x128xf32>
    %425 = arith.divf %423, %424 : vector<2x128xf32>
    %426 = vector.extract_strided_slice %406 {offsets = [0, 256], sizes = [2, 128], strides = [1, 1]} : vector<2x384xf32> to vector<2x128xf32>
    %427 = vector.extract_strided_slice %409 {offsets = [0, 256], sizes = [2, 128], strides = [1, 1]} : vector<2x384xf32> to vector<2x128xf32>
    %428 = arith.mulf %417, %427 : vector<2x128xf32>
    %429 = arith.addf %426, %428 : vector<2x128xf32>
    %430 = math.tanh %429 : vector<2x128xf32>
    %cst_117 = arith.constant 1.000000e+00 : f32
    %431 = vector.broadcast %cst_117 : f32 to vector<2x128xf32>
    %432 = arith.subf %431, %425 : vector<2x128xf32>
    %433 = arith.mulf %432, %430 : vector<2x128xf32>
    %434 = arith.mulf %425, %401 : vector<2x128xf32>
    %435 = arith.addf %433, %434 : vector<2x128xf32>
    %c0_118 = arith.constant 0 : index
    %c1_119 = arith.constant 1 : index
    %c3_120 = arith.constant 3 : index
    %c0_121 = arith.constant 0 : index
    %436 = vector.load %arg8[%c0_118, %c1_119, %c3_120, %c0_121] : memref<2x2x8x128xf32, #tpu.memory_space<vmem>>, vector<2x1x1x128xf32>
    %437 = vector.shape_cast %436 : vector<2x1x1x128xf32> to vector<2x128xf32>
    %438 = vector.shape_cast %435 : vector<2x128xf32> to vector<2x1x1x128xf32>
    tpu.vector_store %arg8[%c0_118, %c1_119, %c3_120, %c0_121], %438 {strides = array<i32>} : memref<2x2x8x128xf32, #tpu.memory_space<vmem>>, vector<2x1x1x128xf32>,
    %439 = vector.extract_strided_slice %301 {offsets = [0, 4, 0], sizes = [2, 1, 384], strides = [1, 1, 1]} : vector<2x8x384xf32> to vector<2x1x384xf32>
    %440 = vector.shape_cast %439 : vector<2x1x384xf32> to vector<2x384xf32>
    %cst_122 = arith.constant dense<0.000000e+00> : vector<2x384xf32>
    %441 = tpu.matmul %435, %292, %cst_122 {dimension_numbers = #tpu.dot_dimension_numbers<[1], [0], [0], [1], [0, 0, 1, 1], [], []>} : vector<2x128xf32>, vector<128x384xf32>, vector<2x384xf32> -> vector<2x384xf32>
    %442 = vector.broadcast %296 : vector<1x384xf32> to vector<2x384xf32>
    %443 = arith.addf %441, %442 : vector<2x384xf32>
    %444 = vector.extract_strided_slice %440 {offsets = [0, 0], sizes = [2, 128], strides = [1, 1]} : vector<2x384xf32> to vector<2x128xf32>
    %445 = vector.extract_strided_slice %443 {offsets = [0, 0], sizes = [2, 128], strides = [1, 1]} : vector<2x384xf32> to vector<2x128xf32>
    %446 = arith.addf %444, %445 : vector<2x128xf32>
    %447 = arith.negf %446 : vector<2x128xf32>
    %448 = math.exp %447 : vector<2x128xf32>
    %cst_123 = arith.constant 1.000000e+00 : f32
    %449 = vector.broadcast %cst_123 : f32 to vector<2x128xf32>
    %450 = arith.addf %449, %448 : vector<2x128xf32>
    %451 = arith.divf %449, %450 : vector<2x128xf32>
    %452 = vector.extract_strided_slice %440 {offsets = [0, 128], sizes = [2, 128], strides = [1, 1]} : vector<2x384xf32> to vector<2x128xf32>
    %453 = vector.extract_strided_slice %443 {offsets = [0, 128], sizes = [2, 128], strides = [1, 1]} : vector<2x384xf32> to vector<2x128xf32>
    %454 = arith.addf %452, %453 : vector<2x128xf32>
    %455 = arith.negf %454 : vector<2x128xf32>
    %456 = math.exp %455 : vector<2x128xf32>
    %cst_124 = arith.constant 1.000000e+00 : f32
    %457 = vector.broadcast %cst_124 : f32 to vector<2x128xf32>
    %458 = arith.addf %457, %456 : vector<2x128xf32>
    %459 = arith.divf %457, %458 : vector<2x128xf32>
    %460 = vector.extract_strided_slice %440 {offsets = [0, 256], sizes = [2, 128], strides = [1, 1]} : vector<2x384xf32> to vector<2x128xf32>
    %461 = vector.extract_strided_slice %443 {offsets = [0, 256], sizes = [2, 128], strides = [1, 1]} : vector<2x384xf32> to vector<2x128xf32>
    %462 = arith.mulf %451, %461 : vector<2x128xf32>
    %463 = arith.addf %460, %462 : vector<2x128xf32>
    %464 = math.tanh %463 : vector<2x128xf32>
    %cst_125 = arith.constant 1.000000e+00 : f32
    %465 = vector.broadcast %cst_125 : f32 to vector<2x128xf32>
    %466 = arith.subf %465, %459 : vector<2x128xf32>
    %467 = arith.mulf %466, %464 : vector<2x128xf32>
    %468 = arith.mulf %459, %435 : vector<2x128xf32>
    %469 = arith.addf %467, %468 : vector<2x128xf32>
    %c0_126 = arith.constant 0 : index
    %c1_127 = arith.constant 1 : index
    %c4_128 = arith.constant 4 : index
    %c0_129 = arith.constant 0 : index
    %470 = vector.load %arg8[%c0_126, %c1_127, %c4_128, %c0_129] : memref<2x2x8x128xf32, #tpu.memory_space<vmem>>, vector<2x1x1x128xf32>
    %471 = vector.shape_cast %470 : vector<2x1x1x128xf32> to vector<2x128xf32>
    %472 = vector.shape_cast %469 : vector<2x128xf32> to vector<2x1x1x128xf32>
    tpu.vector_store %arg8[%c0_126, %c1_127, %c4_128, %c0_129], %472 {strides = array<i32>} : memref<2x2x8x128xf32, #tpu.memory_space<vmem>>, vector<2x1x1x128xf32>,
    %473 = vector.extract_strided_slice %301 {offsets = [0, 5, 0], sizes = [2, 1, 384], strides = [1, 1, 1]} : vector<2x8x384xf32> to vector<2x1x384xf32>
    %474 = vector.shape_cast %473 : vector<2x1x384xf32> to vector<2x384xf32>
    %cst_130 = arith.constant dense<0.000000e+00> : vector<2x384xf32>
    %475 = tpu.matmul %469, %292, %cst_130 {dimension_numbers = #tpu.dot_dimension_numbers<[1], [0], [0], [1], [0, 0, 1, 1], [], []>} : vector<2x128xf32>, vector<128x384xf32>, vector<2x384xf32> -> vector<2x384xf32>
    %476 = vector.broadcast %296 : vector<1x384xf32> to vector<2x384xf32>
    %477 = arith.addf %475, %476 : vector<2x384xf32>
    %478 = vector.extract_strided_slice %474 {offsets = [0, 0], sizes = [2, 128], strides = [1, 1]} : vector<2x384xf32> to vector<2x128xf32>
    %479 = vector.extract_strided_slice %477 {offsets = [0, 0], sizes = [2, 128], strides = [1, 1]} : vector<2x384xf32> to vector<2x128xf32>
    %480 = arith.addf %478, %479 : vector<2x128xf32>
    %481 = arith.negf %480 : vector<2x128xf32>
    %482 = math.exp %481 : vector<2x128xf32>
    %cst_131 = arith.constant 1.000000e+00 : f32
    %483 = vector.broadcast %cst_131 : f32 to vector<2x128xf32>
    %484 = arith.addf %483, %482 : vector<2x128xf32>
    %485 = arith.divf %483, %484 : vector<2x128xf32>
    %486 = vector.extract_strided_slice %474 {offsets = [0, 128], sizes = [2, 128], strides = [1, 1]} : vector<2x384xf32> to vector<2x128xf32>
    %487 = vector.extract_strided_slice %477 {offsets = [0, 128], sizes = [2, 128], strides = [1, 1]} : vector<2x384xf32> to vector<2x128xf32>
    %488 = arith.addf %486, %487 : vector<2x128xf32>
    %489 = arith.negf %488 : vector<2x128xf32>
    %490 = math.exp %489 : vector<2x128xf32>
    %cst_132 = arith.constant 1.000000e+00 : f32
    %491 = vector.broadcast %cst_132 : f32 to vector<2x128xf32>
    %492 = arith.addf %491, %490 : vector<2x128xf32>
    %493 = arith.divf %491, %492 : vector<2x128xf32>
    %494 = vector.extract_strided_slice %474 {offsets = [0, 256], sizes = [2, 128], strides = [1, 1]} : vector<2x384xf32> to vector<2x128xf32>
    %495 = vector.extract_strided_slice %477 {offsets = [0, 256], sizes = [2, 128], strides = [1, 1]} : vector<2x384xf32> to vector<2x128xf32>
    %496 = arith.mulf %485, %495 : vector<2x128xf32>
    %497 = arith.addf %494, %496 : vector<2x128xf32>
    %498 = math.tanh %497 : vector<2x128xf32>
    %cst_133 = arith.constant 1.000000e+00 : f32
    %499 = vector.broadcast %cst_133 : f32 to vector<2x128xf32>
    %500 = arith.subf %499, %493 : vector<2x128xf32>
    %501 = arith.mulf %500, %498 : vector<2x128xf32>
    %502 = arith.mulf %493, %469 : vector<2x128xf32>
    %503 = arith.addf %501, %502 : vector<2x128xf32>
    %c0_134 = arith.constant 0 : index
    %c1_135 = arith.constant 1 : index
    %c5_136 = arith.constant 5 : index
    %c0_137 = arith.constant 0 : index
    %504 = vector.load %arg8[%c0_134, %c1_135, %c5_136, %c0_137] : memref<2x2x8x128xf32, #tpu.memory_space<vmem>>, vector<2x1x1x128xf32>
    %505 = vector.shape_cast %504 : vector<2x1x1x128xf32> to vector<2x128xf32>
    %506 = vector.shape_cast %503 : vector<2x128xf32> to vector<2x1x1x128xf32>
    tpu.vector_store %arg8[%c0_134, %c1_135, %c5_136, %c0_137], %506 {strides = array<i32>} : memref<2x2x8x128xf32, #tpu.memory_space<vmem>>, vector<2x1x1x128xf32>,
    %507 = vector.extract_strided_slice %301 {offsets = [0, 6, 0], sizes = [2, 1, 384], strides = [1, 1, 1]} : vector<2x8x384xf32> to vector<2x1x384xf32>
    %508 = vector.shape_cast %507 : vector<2x1x384xf32> to vector<2x384xf32>
    %cst_138 = arith.constant dense<0.000000e+00> : vector<2x384xf32>
    %509 = tpu.matmul %503, %292, %cst_138 {dimension_numbers = #tpu.dot_dimension_numbers<[1], [0], [0], [1], [0, 0, 1, 1], [], []>} : vector<2x128xf32>, vector<128x384xf32>, vector<2x384xf32> -> vector<2x384xf32>
    %510 = vector.broadcast %296 : vector<1x384xf32> to vector<2x384xf32>
    %511 = arith.addf %509, %510 : vector<2x384xf32>
    %512 = vector.extract_strided_slice %508 {offsets = [0, 0], sizes = [2, 128], strides = [1, 1]} : vector<2x384xf32> to vector<2x128xf32>
    %513 = vector.extract_strided_slice %511 {offsets = [0, 0], sizes = [2, 128], strides = [1, 1]} : vector<2x384xf32> to vector<2x128xf32>
    %514 = arith.addf %512, %513 : vector<2x128xf32>
    %515 = arith.negf %514 : vector<2x128xf32>
    %516 = math.exp %515 : vector<2x128xf32>
    %cst_139 = arith.constant 1.000000e+00 : f32
    %517 = vector.broadcast %cst_139 : f32 to vector<2x128xf32>
    %518 = arith.addf %517, %516 : vector<2x128xf32>
    %519 = arith.divf %517, %518 : vector<2x128xf32>
    %520 = vector.extract_strided_slice %508 {offsets = [0, 128], sizes = [2, 128], strides = [1, 1]} : vector<2x384xf32> to vector<2x128xf32>
    %521 = vector.extract_strided_slice %511 {offsets = [0, 128], sizes = [2, 128], strides = [1, 1]} : vector<2x384xf32> to vector<2x128xf32>
    %522 = arith.addf %520, %521 : vector<2x128xf32>
    %523 = arith.negf %522 : vector<2x128xf32>
    %524 = math.exp %523 : vector<2x128xf32>
    %cst_140 = arith.constant 1.000000e+00 : f32
    %525 = vector.broadcast %cst_140 : f32 to vector<2x128xf32>
    %526 = arith.addf %525, %524 : vector<2x128xf32>
    %527 = arith.divf %525, %526 : vector<2x128xf32>
    %528 = vector.extract_strided_slice %508 {offsets = [0, 256], sizes = [2, 128], strides = [1, 1]} : vector<2x384xf32> to vector<2x128xf32>
    %529 = vector.extract_strided_slice %511 {offsets = [0, 256], sizes = [2, 128], strides = [1, 1]} : vector<2x384xf32> to vector<2x128xf32>
    %530 = arith.mulf %519, %529 : vector<2x128xf32>
    %531 = arith.addf %528, %530 : vector<2x128xf32>
    %532 = math.tanh %531 : vector<2x128xf32>
    %cst_141 = arith.constant 1.000000e+00 : f32
    %533 = vector.broadcast %cst_141 : f32 to vector<2x128xf32>
    %534 = arith.subf %533, %527 : vector<2x128xf32>
    %535 = arith.mulf %534, %532 : vector<2x128xf32>
    %536 = arith.mulf %527, %503 : vector<2x128xf32>
    %537 = arith.addf %535, %536 : vector<2x128xf32>
    %c0_142 = arith.constant 0 : index
    %c1_143 = arith.constant 1 : index
    %c6_144 = arith.constant 6 : index
    %c0_145 = arith.constant 0 : index
    %538 = vector.load %arg8[%c0_142, %c1_143, %c6_144, %c0_145] : memref<2x2x8x128xf32, #tpu.memory_space<vmem>>, vector<2x1x1x128xf32>
    %539 = vector.shape_cast %538 : vector<2x1x1x128xf32> to vector<2x128xf32>
    %540 = vector.shape_cast %537 : vector<2x128xf32> to vector<2x1x1x128xf32>
    tpu.vector_store %arg8[%c0_142, %c1_143, %c6_144, %c0_145], %540 {strides = array<i32>} : memref<2x2x8x128xf32, #tpu.memory_space<vmem>>, vector<2x1x1x128xf32>,
    %541 = vector.extract_strided_slice %301 {offsets = [0, 7, 0], sizes = [2, 1, 384], strides = [1, 1, 1]} : vector<2x8x384xf32> to vector<2x1x384xf32>
    %542 = vector.shape_cast %541 : vector<2x1x384xf32> to vector<2x384xf32>
    %cst_146 = arith.constant dense<0.000000e+00> : vector<2x384xf32>
    %543 = tpu.matmul %537, %292, %cst_146 {dimension_numbers = #tpu.dot_dimension_numbers<[1], [0], [0], [1], [0, 0, 1, 1], [], []>} : vector<2x128xf32>, vector<128x384xf32>, vector<2x384xf32> -> vector<2x384xf32>
    %544 = vector.broadcast %296 : vector<1x384xf32> to vector<2x384xf32>
    %545 = arith.addf %543, %544 : vector<2x384xf32>
    %546 = vector.extract_strided_slice %542 {offsets = [0, 0], sizes = [2, 128], strides = [1, 1]} : vector<2x384xf32> to vector<2x128xf32>
    %547 = vector.extract_strided_slice %545 {offsets = [0, 0], sizes = [2, 128], strides = [1, 1]} : vector<2x384xf32> to vector<2x128xf32>
    %548 = arith.addf %546, %547 : vector<2x128xf32>
    %549 = arith.negf %548 : vector<2x128xf32>
    %550 = math.exp %549 : vector<2x128xf32>
    %cst_147 = arith.constant 1.000000e+00 : f32
    %551 = vector.broadcast %cst_147 : f32 to vector<2x128xf32>
    %552 = arith.addf %551, %550 : vector<2x128xf32>
    %553 = arith.divf %551, %552 : vector<2x128xf32>
    %554 = vector.extract_strided_slice %542 {offsets = [0, 128], sizes = [2, 128], strides = [1, 1]} : vector<2x384xf32> to vector<2x128xf32>
    %555 = vector.extract_strided_slice %545 {offsets = [0, 128], sizes = [2, 128], strides = [1, 1]} : vector<2x384xf32> to vector<2x128xf32>
    %556 = arith.addf %554, %555 : vector<2x128xf32>
    %557 = arith.negf %556 : vector<2x128xf32>
    %558 = math.exp %557 : vector<2x128xf32>
    %cst_148 = arith.constant 1.000000e+00 : f32
    %559 = vector.broadcast %cst_148 : f32 to vector<2x128xf32>
    %560 = arith.addf %559, %558 : vector<2x128xf32>
    %561 = arith.divf %559, %560 : vector<2x128xf32>
    %562 = vector.extract_strided_slice %542 {offsets = [0, 256], sizes = [2, 128], strides = [1, 1]} : vector<2x384xf32> to vector<2x128xf32>
    %563 = vector.extract_strided_slice %545 {offsets = [0, 256], sizes = [2, 128], strides = [1, 1]} : vector<2x384xf32> to vector<2x128xf32>
    %564 = arith.mulf %553, %563 : vector<2x128xf32>
    %565 = arith.addf %562, %564 : vector<2x128xf32>
    %566 = math.tanh %565 : vector<2x128xf32>
    %cst_149 = arith.constant 1.000000e+00 : f32
    %567 = vector.broadcast %cst_149 : f32 to vector<2x128xf32>
    %568 = arith.subf %567, %561 : vector<2x128xf32>
    %569 = arith.mulf %568, %566 : vector<2x128xf32>
    %570 = arith.mulf %561, %537 : vector<2x128xf32>
    %571 = arith.addf %569, %570 : vector<2x128xf32>
    %c0_150 = arith.constant 0 : index
    %c1_151 = arith.constant 1 : index
    %c7_152 = arith.constant 7 : index
    %c0_153 = arith.constant 0 : index
    %572 = vector.load %arg8[%c0_150, %c1_151, %c7_152, %c0_153] : memref<2x2x8x128xf32, #tpu.memory_space<vmem>>, vector<2x1x1x128xf32>
    %573 = vector.shape_cast %572 : vector<2x1x1x128xf32> to vector<2x128xf32>
    %574 = vector.shape_cast %571 : vector<2x128xf32> to vector<2x1x1x128xf32>
    tpu.vector_store %arg8[%c0_150, %c1_151, %c7_152, %c0_153], %574 {strides = array<i32>} : memref<2x2x8x128xf32, #tpu.memory_space<vmem>>, vector<2x1x1x128xf32>,
    %c0_154 = arith.constant 0 : index
    %c1_155 = arith.constant 1 : index
    %c0_156 = arith.constant 0 : index
    %c0_157 = arith.constant 0 : index
    %575 = vector.load %arg8[%c0_154, %c1_155, %c0_156, %c0_157] : memref<2x2x8x128xf32, #tpu.memory_space<vmem>>, vector<2x1x8x128xf32>
    %576 = vector.shape_cast %575 : vector<2x1x8x128xf32> to vector<2x8x128xf32>
    %577 = vector.shape_cast %576 : vector<2x8x128xf32> to vector<16x128xf32>
    %c0_158 = arith.constant 0 : index
    %c0_159 = arith.constant 0 : index
    %578 = vector.load %arg6[%c0_158, %c0_159] : memref<128x128xf32, #tpu.memory_space<vmem>>, vector<128x128xf32>
    %cst_160 = arith.constant dense<0.000000e+00> : vector<16x128xf32>
    %579 = tpu.matmul %577, %578, %cst_160 {dimension_numbers = #tpu.dot_dimension_numbers<[1], [0], [0], [1], [0, 0, 1, 1], [], []>} : vector<16x128xf32>, vector<128x128xf32>, vector<16x128xf32> -> vector<16x128xf32>
    %c0_161 = arith.constant 0 : index
    %c0_162 = arith.constant 0 : index
    %580 = vector.load %arg7[%c0_161, %c0_162] : memref<1x128xf32, #tpu.memory_space<vmem>>, vector<1x128xf32>
    %581 = vector.broadcast %580 : vector<1x128xf32> to vector<16x128xf32>
    %582 = arith.addf %579, %581 : vector<16x128xf32>
    %583 = vector.shape_cast %582 : vector<16x128xf32> to vector<2x8x128xf32>
    %c0_163 = arith.constant 0 : index
    %c0_164 = arith.constant 0 : index
    %c0_165 = arith.constant 0 : index
    %584 = vector.load %arg9[%c0_163, %c0_164, %c0_165] : memref<2x8x128xf32, #tpu.memory_space<vmem>>, vector<2x8x128xf32>
    tpu.vector_store %arg9[%c0_163, %c0_164, %c0_165], %583 {strides = array<i32>} : memref<2x8x128xf32, #tpu.memory_space<vmem>>, vector<2x8x128xf32>,
    %cst_166 = arith.constant dense<0.000000e+00> : vector<2x128xf32>
    %585 = vector.multi_reduction <add>, %583, %cst_166 [1] : vector<2x8x128xf32> to vector<2x128xf32>
    %586 = vector.shape_cast %585 : vector<2x128xf32> to vector<2x1x128xf32>
    %cst_167 = arith.constant 8.000000e+00 : f32
    %587 = vector.broadcast %cst_167 : f32 to vector<2x1x128xf32>
    %588 = arith.divf %586, %587 : vector<2x1x128xf32>
    %c0_168 = arith.constant 0 : index
    %c0_169 = arith.constant 0 : index
    %c0_170 = arith.constant 0 : index
    %589 = vector.load %arg10[%c0_168, %c0_169, %c0_170] : memref<2x1x128xf32, #tpu.memory_space<vmem>>, vector<2x1x128xf32>
    tpu.vector_store %arg10[%c0_168, %c0_169, %c0_170], %588 {strides = array<i32>} : memref<2x1x128xf32, #tpu.memory_space<vmem>>, vector<2x1x128xf32>,
    return
  }
  func.func @transform_0(%arg0: i32) -> (i32, i32, i32) {
    %c0_i32 = arith.constant 0 : i32
    %c0_i32_0 = arith.constant 0 : i32
    %c0_i32_1 = arith.constant 0 : i32
    return %arg0, %c0_i32, %c0_i32_0 : i32, i32, i32
  }
  func.func @transform_1(%arg0: i32) -> (i32, i32, i32) {
    %c0_i32 = arith.constant 0 : i32
    %c0_i32_0 = arith.constant 0 : i32
    %c0_i32_1 = arith.constant 0 : i32
    %c0_i32_2 = arith.constant 0 : i32
    return %c0_i32, %c0_i32_0, %c0_i32_1 : i32, i32, i32
  }
  func.func @transform_2(%arg0: i32) -> (i32, i32, i32) {
    %c0_i32 = arith.constant 0 : i32
    %c0_i32_0 = arith.constant 0 : i32
    %c0_i32_1 = arith.constant 0 : i32
    %c0_i32_2 = arith.constant 0 : i32
    return %c0_i32, %c0_i32_0, %c0_i32_1 : i32, i32, i32
  }
  func.func @transform_3(%arg0: i32) -> (i32, i32, i32) {
    %c0_i32 = arith.constant 0 : i32
    %c0_i32_0 = arith.constant 0 : i32
    %c0_i32_1 = arith.constant 0 : i32
    %c0_i32_2 = arith.constant 0 : i32
    return %c0_i32, %c0_i32_0, %c0_i32_1 : i32, i32, i32
  }
  func.func @transform_4(%arg0: i32) -> (i32, i32, i32) {
    %c0_i32 = arith.constant 0 : i32
    %c0_i32_0 = arith.constant 0 : i32
    %c0_i32_1 = arith.constant 0 : i32
    %c0_i32_2 = arith.constant 0 : i32
    return %c0_i32, %c0_i32_0, %c0_i32_1 : i32, i32, i32
  }
  func.func @transform_5(%arg0: i32) -> (i32, i32) {
    %c0_i32 = arith.constant 0 : i32
    %c0_i32_0 = arith.constant 0 : i32
    %c0_i32_1 = arith.constant 0 : i32
    return %c0_i32, %c0_i32_0 : i32, i32
  }
  func.func @transform_6(%arg0: i32) -> (i32, i32) {
    %c0_i32 = arith.constant 0 : i32
    %c0_i32_0 = arith.constant 0 : i32
    %c0_i32_1 = arith.constant 0 : i32
    return %c0_i32, %c0_i32_0 : i32, i32
  }
  func.func @transform_7(%arg0: i32) -> (i32, i32, i32, i32) {
    %c0_i32 = arith.constant 0 : i32
    %c0_i32_0 = arith.constant 0 : i32
    %c0_i32_1 = arith.constant 0 : i32
    %c0_i32_2 = arith.constant 0 : i32
    return %arg0, %c0_i32, %c0_i32_0, %c0_i32_1 : i32, i32, i32, i32
  }
  func.func @transform_8(%arg0: i32) -> (i32, i32, i32) {
    %c0_i32 = arith.constant 0 : i32
    %c0_i32_0 = arith.constant 0 : i32
    %c0_i32_1 = arith.constant 0 : i32
    return %arg0, %c0_i32, %c0_i32_0 : i32, i32, i32
  }
  func.func @transform_9(%arg0: i32) -> (i32, i32, i32) {
    %c0_i32 = arith.constant 0 : i32
    %c0_i32_0 = arith.constant 0 : i32
    %c0_i32_1 = arith.constant 0 : i32
    return %arg0, %c0_i32, %c0_i32_0 : i32, i32, i32
  }
}

</mosaic_0001>

<bundles_post_ra>
// kernel: egru_dvs_forward.1
= control target key start
LH: loop header
LB: loop body
LE: loop exit
PB: predicated region body
PF: predicated region fallthrough
CT: control target
= control target key end

     0   :  { %15 = vsyncpa [#allocation3], 0  ;;  %v8663_v4 = vmov 0.0   ;;  %s8653_s0 = inlined_call_operand.vmem [shape: f32[2,8,128], index: 0, kind: input, shape index: {}]   ;;  %s8654_s1 = inlined_call_operand.vmem [shape: f32[2,128,384], index: 1, kind: input, shape index: {}]   ;;  %s8655_s2 = inlined_call_operand.vmem [shape: f32[2,128,384], index: 2, kind: input, shape index: {}]   ;;  %s8656_s3 = inlined_call_operand.vmem [shape: f32[2,1,384], index: 3, kind: input, shape index: {}]   ;;  %s8657_s4 = inlined_call_operand.vmem [shape: f32[2,1,384], index: 4, kind: input, shape index: {}]   ;;  %s8658_s5 = inlined_call_operand.vmem [shape: f32[128,128], index: 5, kind: input, shape index: {}]   ;;  %s8659_s6 = inlined_call_operand.vmem [shape: f32[1,128], index: 6, kind: input, shape index: {}]   ;;  %s8660_s7 = inlined_call_operand.vmem [shape: f32[2,2,8,128], index: 7, kind: output, shape index: {0}]   ;;  %s8661_s8 = inlined_call_operand.hbm [shape: f32[2,8,128], index: 8, kind: output, shape index: {1}]   ;;  %s8662_s9 = inlined_call_operand.hbm [shape: f32[2,1,128], index: 9, kind: output, shape index: {2}]  }
   0x1   :  { %v79_v0 = vld [vmem:[%s8654_s1 + $0x170] sm:$0xff]  ;;  %v78_v1 = vld [vmem:[%s8654_s1 + $0x168] sm:$0xff]  ;;  %v76_v2 = vld [vmem:[%s8654_s1 + $0x158] sm:$0xff]  ;;  %211 = vmatprep.mubr.f32.mxu0 %v8663_v4 }
   0x2   :  { %147 = vmatprep.subr.mxu0 %v79_v0  ;;  %v75_v3 = vld [vmem:[%s8654_s1 + $0x150] sm:$0xff]  ;;  %v73_v5 = vld [vmem:[%s8654_s1 + $0x140] sm:$0xff]  ;;  %v72_v6 = vld [vmem:[%s8654_s1 + $0x138] sm:$0xff] }
   0x3   :  { %148 = vmatpush1.msra.mxu0 %v78_v1  ;;  %v70_v7 = vld [vmem:[%s8654_s1 + $0x128] sm:$0xff]  ;;  %v69_v8 = vld [vmem:[%s8654_s1 + $0x120] sm:$0xff]  ;;  %v67_v9 = vld [vmem:[%s8654_s1 + $0x110] sm:$0xff] }
   0x4   :  { %149 = vmatprep.subr.mxu0 %v76_v2  ;;  %v66_v10 = vld [vmem:[%s8654_s1 + $0x108] sm:$0xff]  ;;  %v64_v11 = vld [vmem:[%s8654_s1 + $0xf8] sm:$0xff]  ;;  %v63_v12 = vld [vmem:[%s8654_s1 + $0xf0] sm:$0xff] }
   0x5   :  { %150 = vmatpush1.msra.mxu0 %v75_v3  ;;  %v61_v13 = vld [vmem:[%s8654_s1 + $0xe0] sm:$0xff]  ;;  %v60_v15 = vld [vmem:[%s8654_s1 + $0xd8] sm:$0xff]  ;;  %v58_v17 = vld [vmem:[%s8654_s1 + $0xc8] sm:$0xff] }
   0x6   :  { %151 = vmatprep.subr.mxu0 %v73_v5  ;;  %v5823_v14 = vld [vmem:[%s8653_s0] sm:$0xff]  ;;  %v80_v16 = vld [vmem:[%s8654_s1 + $0x178] sm:$0xff]  ;;  %v74_v20 = vld [vmem:[%s8654_s1 + $0x148] sm:$0xff] }
   0x7   :  { %152 = vmatpush1.msra.mxu0 %v72_v6  ;;  %4621 = vmatprep.mubr.f32.mxu1 %v5823_v14  ;;  %v77_v18 = vld [vmem:[%s8654_s1 + $0x160] sm:$0xff]  ;;  %v55_v21 = vld [vmem:[%s8654_s1 + $0xb0] sm:$0xff]  ;;  %v54_v22 = vld [vmem:[%s8654_s1 + $0xa8] sm:$0xff] }
   0x8   :  { %153 = vmatprep.subr.mxu0 %v70_v7  ;;  %4589 = vmatprep.subr.mxu1 %v80_v16  ;;  %v57_v19 = vld [vmem:[%s8654_s1 + $0xc0] sm:$0xff]  ;;  %v71_v23 = vld [vmem:[%s8654_s1 + $0x130] sm:$0xff]  ;;  %v52_v24 = vld [vmem:[%s8654_s1 + $0x98] sm:$0xff] }
   0x9   :  { %154 = vmatpush1.msra.mxu0 %v69_v8  ;;  %4590 = vmatpush3.msra.mxu1 %v80_v16  ;;  %v51_v25 = vld [vmem:[%s8654_s1 + $0x90] sm:$0xff]  ;;  %v68_v26 = vld [vmem:[%s8654_s1 + $0x118] sm:$0xff]  ;;  %v49_v27 = vld [vmem:[%s8654_s1 + $0x80] sm:$0xff] }
   0xa   :  { %155 = vmatprep.subr.mxu0 %v67_v9  ;;  %4591 = vmatprep.subr.mxu1 %v77_v18  ;;  %v48_v28 = vld [vmem:[%s8654_s1 + $0x78] sm:$0xff]  ;;  %v65_v29 = vld [vmem:[%s8654_s1 + $0x100] sm:$0xff]  ;;  %v46_v30 = vld [vmem:[%s8654_s1 + $0x68] sm:$0xff] }
   0xb   :  { %156 = vmatpush1.msra.mxu0 %v66_v10  ;;  %4592 = vmatpush3.msra.mxu1 %v77_v18  ;;  %v45_v31 = vld [vmem:[%s8654_s1 + $0x60] sm:$0xff]  ;;  %v62_v32 = vld [vmem:[%s8654_s1 + $0xe8] sm:$0xff]  ;;  %v43_v33 = vld [vmem:[%s8654_s1 + $0x50] sm:$0xff] }
   0xc   :  { %157 = vmatprep.subr.mxu0 %v64_v11  ;;  %4593 = vmatprep.subr.mxu1 %v74_v20  ;;  %v42_v34 = vld [vmem:[%s8654_s1 + $0x48] sm:$0xff]  ;;  %v59_v35 = vld [vmem:[%s8654_s1 + $0xd0] sm:$0xff]  ;;  %v40_v36 = vld [vmem:[%s8654_s1 + $0x38] sm:$0xff] }
   0xd   :  { %158 = vmatpush1.msra.mxu0 %v63_v12  ;;  %4594 = vmatpush3.msra.mxu1 %v74_v20  ;;  %v39_v37 = vld [vmem:[%s8654_s1 + $0x30] sm:$0xff]  ;;  %v56_v38 = vld [vmem:[%s8654_s1 + $0xb8] sm:$0xff]  ;;  %v37_v39 = vld [vmem:[%s8654_s1 + $0x20] sm:$0xff] }
   0xe   :  { %159 = vmatprep.subr.mxu0 %v61_v13  ;;  %4595 = vmatprep.subr.mxu1 %v71_v23  ;;  %v36_v40 = vld [vmem:[%s8654_s1 + $0x18] sm:$0xff]  ;;  %v53_v41 = vld [vmem:[%s8654_s1 + $0xa0] sm:$0xff]  ;;  %v34_v42 = vld [vmem:[%s8654_s1 + $0x8] sm:$0xff] }
   0xf   :  { %160 = vmatpush1.msra.mxu0 %v60_v15  ;;  %4596 = vmatpush3.msra.mxu1 %v71_v23  ;;  %v33_v43 = vld [vmem:[%s8654_s1] sm:$0xff]  ;;  %v50_v44 = vld [vmem:[%s8654_s1 + $0x88] sm:$0xff]  ;;  %v5919_v45 = vld [vmem:[%s8655_s2 + $0x170] sm:$0xff] }
  0x10   :  { %161 = vmatprep.subr.mxu0 %v58_v17  ;;  %4597 = vmatprep.subr.mxu1 %v68_v26  ;;  %8784 = vst [vmem:[#allocation8_spill] sm:$0xff] %v5919_v45  ;;  %v5924_v46 = vld [vmem:[%s8655_s2 + $0x168] sm:$0xff]  ;;  %v5929_v47 = vld [vmem:[%s8655_s2 + $0x158] sm:$0xff]  ;;  %v47_v48 = vld [vmem:[%s8654_s1 + $0x70] sm:$0xff] }
  0x11   :  { %162 = vmatpush1.msra.mxu0 %v57_v19  ;;  %4598 = vmatpush3.msra.mxu1 %v68_v26  ;;  %v5939_v49 = vld [vmem:[%s8655_s2 + $0x150] sm:$0xff] }
  0x12   :  { %163 = vmatprep.subr.mxu0 %v55_v21  ;;  %4599 = vmatprep.subr.mxu1 %v65_v29 }
  0x13   :  { %164 = vmatpush1.msra.mxu0 %v54_v22  ;;  %4600 = vmatpush3.msra.mxu1 %v65_v29 }
  0x14   :  { %165 = vmatprep.subr.mxu0 %v52_v24  ;;  %4601 = vmatprep.subr.mxu1 %v62_v32 }
  0x15   :  { %166 = vmatpush1.msra.mxu0 %v51_v25  ;;  %4602 = vmatpush3.msra.mxu1 %v62_v32 }
  0x16   :  { %167 = vmatprep.subr.mxu0 %v49_v27  ;;  %4603 = vmatprep.subr.mxu1 %v59_v35 }
  0x17   :  { %168 = vmatpush1.msra.mxu0 %v48_v28  ;;  %4604 = vmatpush3.msra.mxu1 %v59_v35 }
  0x18   :  { %169 = vmatprep.subr.mxu0 %v46_v30  ;;  %4605 = vmatprep.subr.mxu1 %v56_v38 }
  0x19   :  { %170 = vmatpush1.msra.mxu0 %v45_v31  ;;  %4606 = vmatpush3.msra.mxu1 %v56_v38 }
  0x1a   :  { %171 = vmatprep.subr.mxu0 %v43_v33  ;;  %4607 = vmatprep.subr.mxu1 %v53_v41 }
  0x1b   :  { %172 = vmatpush1.msra.mxu0 %v42_v34  ;;  %4608 = vmatpush3.msra.mxu1 %v53_v41 }
  0x1c   :  { %173 = vmatprep.subr.mxu0 %v40_v36  ;;  %4609 = vmatprep.subr.mxu1 %v50_v44 }
  0x1d   :  { %174 = vmatpush1.msra.mxu0 %v39_v37 }
  0x1e   :  { %175 = vmatprep.subr.mxu0 %v37_v39 }
  0x1f   :  { %176 = vmatpush1.msra.mxu0 %v36_v40 }
  0x20   :  { %177 = vmatprep.subr.mxu0 %v34_v42 }
  0x21   :  { %178 = vmatpush1.msra.mxu0 %v33_v43 }
  0x22   :  { %212 = vmatmul.mubr.f32.vlgmr.msra.gmra.mxu0 %v5823_v14  ;;  %315 = vmatprep.subr.mxu0 %v5919_v45 }
  0x23   :  { %16 = vsyncpa [#allocation5], 0  ;;  %316 = vmatpush1.msra.mxu0 %v5924_v46  ;;  %v5945_v50 = vld [vmem:[%s8655_s2 + $0x140] sm:$0xff]  ;;  %4610 = vmatpush3.msra.mxu1 %v50_v44  ;;  %v44_v51 = vld [vmem:[%s8654_s1 + $0x58] sm:$0xff]  ;;  %vm5723_vm0 = vmmov 0   ;;  %v132_v36 = vlaneseq  ;;  %vm515_vm1 = vcmask 1041409  }
  0x24   :  { %317 = vmatprep.subr.mxu0 %v5929_v47  ;;  %v5954_v52 = vld [vmem:[%s8655_s2 + $0x138] sm:$0xff]  ;;  %4611 = vmatprep.subr.mxu1 %v47_v48  ;;  %v5960_v53 = vld [vmem:[%s8655_s2 + $0x128] sm:$0xff]  ;;  %v5966_v54 = vld [vmem:[%s8655_s2 + $0x120] sm:$0xff]  ;;  %s5724_s18 = smov [#allocation2]  }
  0x25   :  { %318 = vmatpush1.msra.mxu0 %v5939_v49  ;;  %4612 = vmatpush3.msra.mxu1 %v47_v48  ;;  %v41_v55 = vld [vmem:[%s8654_s1 + $0x40] sm:$0xff]  ;;  %v5975_v56 = vld [vmem:[%s8655_s2 + $0x110] sm:$0xff]  ;;  %v32_v57 = vld [vmem:[%s8653_s0 + $0x8] sm:$0xff]  ;;  %v133_v38 = vshrl.u32 %v132_v36, 7  ;;  %s4053_s19 = sshll.u32 %s5724_s18, 4  ;;  %s4054_s19 = int_to_ptr.vmem [resolvable:$true] %s4053_s19 }
  0x26   :  { %319 = vmatprep.subr.mxu0 %v5945_v50  ;;  %4613 = vmatprep.subr.mxu1 %v44_v51  ;;  %v5985_v58 = vld [vmem:[%s8655_s2 + $0x108] sm:$0xff]  ;;  %v5991_v59 = vld [vmem:[%s8655_s2 + $0xf8] sm:$0xff]  ;;  %v6000_v61 = vld [vmem:[%s8655_s2 + $0xf0] sm:$0xff]  ;;  %s5678_s20 = scalar_lea.vmem %s4054_s19, 256  ;;  %p5683_p1 = scmp.lt.s32.totalorder %s4054_s19, %s4054_s19 }
  0x27   :  { %320 = vmatpush1.msra.mxu0 %v5954_v52  ;;  %217 = vmatprep.mubr.f32.mxu0 %v8663_v4  ;;  %v38_v60 = vld [vmem:[%s8654_s1 + $0x28] sm:$0xff]  ;;  %v6006_v62 = vld [vmem:[%s8655_s2 + $0xe0] sm:$0xff]  ;;  %v35_v63 = vld [vmem:[%s8654_s1 + $0x10] sm:$0xff]  ;;  %v6314_v40 = vsub.s32 0, %v133_v38  ;;  %p5679_p0 = scmp.ne.s32.totalorder %s4054_s19, %s5678_s20  ;;  %p5684_p2 = scmp.lt.s32.totalorder %s5678_s20, %s5678_s20 }
  0x28   :  { %321 = vmatprep.subr.mxu0 %v5960_v53  ;;  %4614 = vmatpush3.msra.mxu1 %v44_v51  ;;  %v6015_v0 = vld [vmem:[%s8655_s2 + $0xd8] sm:$0xff]  ;;  %v6021_v1 = vld [vmem:[%s8655_s2 + $0xc8] sm:$0xff]  ;;  %v6027_v2 = vld [vmem:[%s8655_s2 + $0xc0] sm:$0xff]  ;;  %v6326_v51 = vsub.s32 1, %v133_v38 }
  0x29   :  { %322 = vmatpush1.msra.mxu0 %v5966_v54  ;;  %4615 = vmatprep.subr.mxu1 %v41_v55  ;;  %v6033_v3 = vld [vmem:[%s8655_s2 + $0xb0] sm:$0xff]  ;;  %v6039_v5 = vld [vmem:[%s8655_s2 + $0xa8] sm:$0xff]  ;;  %v6045_v6 = vld [vmem:[%s8655_s2 + $0x178] sm:$0xff]  ;;  %8794 = vst [vmem:[#allocation18_spill] sm:$0xff] %v6314_v40  ;;  %p5685_p3 = por %p5684_p2, %p5683_p1 }
  0x2a   :  { %323 = vmatprep.subr.mxu0 %v5975_v56  ;;  %218 = vmatmul.mubr.f32.gmra.mxu0 %v32_v57  ;;  %v6051_v7 = vld [vmem:[%s8655_s2 + $0x98] sm:$0xff]  ;;  %v6058_v8 = vld [vmem:[%s8655_s2 + $0x90] sm:$0xff]  ;;  %v6063_v9 = vld [vmem:[%s8655_s2 + $0x160] sm:$0xff]  ;;  %8796 = vst [vmem:[#allocation20_spill] sm:$0xff] %v6326_v51 }
  0x2b   :  { %324 = vmatpush1.msra.mxu0 %v5985_v58  ;;  %4616 = vmatpush3.msra.mxu1 %v41_v55  ;;  %v6069_v10 = vld [vmem:[%s8655_s2 + $0x80] sm:$0xff]  ;;  %v6076_v11 = vld [vmem:[%s8655_s2 + $0x78] sm:$0xff]  ;;  %v6082_v12 = vld [vmem:[%s8655_s2 + $0x148] sm:$0xff]  ;;  %p5686_p4 = pnand %p5685_p3, %p5679_p0 }
  0x2c   :  { %325 = vmatprep.subr.mxu0 %v5991_v59  ;;  %4617 = vmatprep.subr.mxu1 %v38_v60  ;;  %v6088_v13 = vld [vmem:[%s8655_s2 + $0x68] sm:$0xff]  ;;  %v6095_v14 = vld [vmem:[%s8655_s2 + $0x60] sm:$0xff]  ;;  %v6101_v15 = vld [vmem:[%s8655_s2 + $0x130] sm:$0xff] }
  0x2d   :  { %326 = vmatpush1.msra.mxu0 %v6000_v61  ;;  %4618 = vmatpush3.msra.mxu1 %v38_v60  ;;  %v6107_v16 = vld [vmem:[%s8655_s2 + $0x50] sm:$0xff]  ;;  %v6114_v17 = vld [vmem:[%s8655_s2 + $0x48] sm:$0xff]  ;;  %v6120_v18 = vld [vmem:[%s8655_s2 + $0x118] sm:$0xff] }
  0x2e   :  { %327 = vmatprep.subr.mxu0 %v6006_v62  ;;  %4619 = vmatprep.subr.mxu1 %v35_v63  ;;  %v6126_v19 = vld [vmem:[%s8655_s2 + $0x38] sm:$0xff]  ;;  %v6133_v20 = vld [vmem:[%s8655_s2 + $0x30] sm:$0xff]  ;;  %v6139_v21 = vld [vmem:[%s8655_s2 + $0x100] sm:$0xff] }
  0x2f   :  { %328 = vmatpush1.msra.mxu0 %v6015_v0  ;;  %4620 = vmatpush3.msra.mxu1 %v35_v63  ;;  %8785 = vst [vmem:[#allocation9_spill] sm:$0xff] %v6126_v19  ;;  %8786 = vst [vmem:[#allocation10_spill] sm:$0xff] %v6133_v20  ;;  %v6145_v22 = vld [vmem:[%s8655_s2 + $0x20] sm:$0xff]  ;;  %v6152_v23 = vld [vmem:[%s8655_s2 + $0x18] sm:$0xff] }
  0x30   :  { %329 = vmatprep.subr.mxu0 %v6021_v1  ;;  %379 = vmatprep.mubr.f32.mxu0 %v8663_v4  ;;  %8787 = vst [vmem:[#allocation11_spill] sm:$0xff] %v6145_v22  ;;  %8788 = vst [vmem:[#allocation12_spill] sm:$0xff] %v6152_v23  ;;  %v6158_v24 = vld [vmem:[%s8655_s2 + $0xe8] sm:$0xff]  ;;  %v6171_v26 = vld [vmem:[%s8655_s2] sm:$0xff] }
  0x31   :  { %330 = vmatpush1.msra.mxu0 %v6027_v2  ;;  %4624 = vmatprep.subr.mxu1 %v8663_v4  ;;  %v6164_v25 = vld [vmem:[%s8655_s2 + $0x8] sm:$0xff]  ;;  %8790 = vst [vmem:[#allocation14_spill] sm:$0xff] %v6171_v26  ;;  %v6177_v27 = vld [vmem:[%s8655_s2 + $0xd0] sm:$0xff]  ;;  %v6186_v28 = vld [vmem:[%s8655_s2 + $0xb8] sm:$0xff] }
  0x32   :  { %331 = vmatprep.subr.mxu0 %v6033_v3  ;;  %4622 = vmatmul.mubr.f32.vlgmr.msra.gmra.mxu1 %v32_v57  ;;  %8789 = vst [vmem:[#allocation13_spill] sm:$0xff] %v6164_v25  ;;  %v6195_v29 = vld [vmem:[%s8655_s2 + $0xa0] sm:$0xff]  ;;  %v6204_v30 = vld [vmem:[%s8655_s2 + $0x88] sm:$0xff]  ;;  %v6213_v31 = vld [vmem:[%s8655_s2 + $0x70] sm:$0xff] }
  0x33   :  { %332 = vmatpush1.msra.mxu0 %v6039_v5  ;;  %4625 = vmatpush3.msra.mxu1 %v6045_v6  ;;  %v6222_v32 = vld [vmem:[%s8655_s2 + $0x58] sm:$0xff]  ;;  %v6231_v33 = vld [vmem:[%s8655_s2 + $0x40] sm:$0xff]  ;;  %v6240_v34 = vld [vmem:[%s8655_s2 + $0x28] sm:$0xff] }
  0x34   :  { %333 = vmatprep.subr.mxu0 %v6051_v7  ;;  %4626 = vmatprep.subr.mxu1 %v8663_v4  ;;  %8791 = vst [vmem:[#allocation15_spill] sm:$0xff] %v6231_v33  ;;  %8792 = vst [vmem:[#allocation16_spill] sm:$0xff] %v6240_v34  ;;  %v6249_v35 = vld [vmem:[%s8655_s2 + $0x10] sm:$0xff]  ;;  %v129_v41 = vld [vmem:[%s8656_s3] sm:$0x7] }
  0x35   :  { %334 = vmatpush1.msra.mxu0 %v6058_v8  ;;  %4627 = vmatpush3.msra.mxu1 %v6063_v9  ;;  %8793 = vst [vmem:[#allocation17_spill] sm:$0xff] %v6249_v35  ;;  %v130_v42 = vld [vmem:[%s8657_s4] sm:$0x7]  ;;  %v135_v44 = vrot.slane %v129_v41, %v6314_v40 }
  0x36   :  { %335 = vmatprep.subr.mxu0 %v6069_v10  ;;  %4628 = vmatprep.subr.mxu1 %v8663_v4  ;;  %v6324_v48 = vrot.slane %v130_v42, %v6314_v40  ;;  %v6329_v57 = vrot.slane %v130_v42, %v6326_v51 }
  0x37   :  { %336 = vmatpush1.msra.mxu0 %v6076_v11  ;;  %4629 = vmatpush3.msra.mxu1 %v6082_v12 }
  0x38   :  { %337 = vmatprep.subr.mxu0 %v6088_v13  ;;  %4630 = vmatprep.subr.mxu1 %v8663_v4  ;;  %8795 = vst [vmem:[#allocation19_spill] sm:$0xff] %v6324_v48  ;;  %8797 = vst [vmem:[#allocation21_spill] sm:$0xff] %v6329_v57 }
  0x39   :  { %338 = vmatpush1.msra.mxu0 %v6095_v14  ;;  %4631 = vmatpush3.msra.mxu1 %v6101_v15 }
  0x3a   :  { %339 = vmatprep.subr.mxu0 %v6107_v16  ;;  %4632 = vmatprep.subr.mxu1 %v8663_v4 }
  0x3b   :  { %340 = vmatpush1.msra.mxu0 %v6114_v17  ;;  %4633 = vmatpush3.msra.mxu1 %v6120_v18 }
  0x3c   :  { %341 = vmatprep.subr.mxu0 %v6126_v19  ;;  %4634 = vmatprep.subr.mxu1 %v8663_v4 }
  0x3d   :  { %342 = vmatpush1.msra.mxu0 %v6133_v20  ;;  %4635 = vmatpush3.msra.mxu1 %v6139_v21 }
  0x3e   :  { %343 = vmatprep.subr.mxu0 %v6145_v22  ;;  %4636 = vmatprep.subr.mxu1 %v8663_v4 }
  0x3f   :  { %344 = vmatpush1.msra.mxu0 %v6152_v23  ;;  %4637 = vmatpush3.msra.mxu1 %v6158_v24 }
  0x40   :  { %345 = vmatprep.subr.mxu0 %v6164_v25  ;;  %4638 = vmatprep.subr.mxu1 %v8663_v4 }
  0x41   :  { %346 = vmatpush1.msra.mxu0 %v6171_v26  ;;  %4639 = vmatpush3.msra.mxu1 %v6177_v27 }
  0x42   :  { %380 = vmatmul.mubr.f32.vlgmr.msra.gmra.mxu0 %v8663_v4  ;;  %4640 = vmatprep.subr.mxu1 %v8663_v4 }
  0x43   :  { %4641 = vmatpush3.msra.mxu1 %v6186_v28  ;;  %4656 = vmatprep.mubr.msk.f32.mxu1 %vm5723_vm0, %v8663_v4 }
  0x44   :  { %4642 = vmatprep.subr.mxu1 %v8663_v4  ;;  %518 = vmatprep.subr.mxu0 %v5919_v45 }
  0x45   :  { %4643 = vmatpush3.msra.mxu1 %v6195_v29  ;;  %519 = vmatpush1.msra.mxu0 %v5924_v46 }
  0x46   :  { %4644 = vmatprep.subr.mxu1 %v8663_v4  ;;  %520 = vmatprep.subr.mxu0 %v5929_v47 }
  0x47   :  { %4645 = vmatpush3.msra.mxu1 %v6204_v30  ;;  %521 = vmatpush1.msra.mxu0 %v5939_v49 }
  0x48   :  { %4646 = vmatprep.subr.mxu1 %v8663_v4  ;;  %522 = vmatprep.subr.mxu0 %v5945_v50 }
  0x49   :  { %4647 = vmatpush3.msra.mxu1 %v6213_v31  ;;  %523 = vmatpush1.msra.mxu0 %v5954_v52 }
  0x4a   :  { %4648 = vmatprep.subr.mxu1 %v8663_v4  ;;  %524 = vmatprep.subr.mxu0 %v5960_v53 }
  0x4b   :  { %4649 = vmatpush3.msra.mxu1 %v6222_v32  ;;  %525 = vmatpush1.msra.mxu0 %v5966_v54 }
  0x4c   :  { %4650 = vmatprep.subr.mxu1 %v8663_v4  ;;  %526 = vmatprep.subr.mxu0 %v5975_v56 }
  0x4d   :  { %4651 = vmatpush3.msra.mxu1 %v6231_v33  ;;  %527 = vmatpush1.msra.mxu0 %v5985_v58 }
  0x4e   :  { %4652 = vmatprep.subr.mxu1 %v8663_v4  ;;  %528 = vmatprep.subr.mxu0 %v5991_v59 }
  0x4f   :  { %4653 = vmatpush3.msra.mxu1 %v6240_v34  ;;  %529 = vmatpush1.msra.mxu0 %v6000_v61 }
  0x50   :  { %4654 = vmatprep.subr.mxu1 %v8663_v4  ;;  %530 = vmatprep.subr.mxu0 %v6006_v62 }
  0x51   :  { %4655 = vmatpush3.msra.mxu1 %v6249_v35  ;;  %531 = vmatpush1.msra.mxu0 %v6015_v0 }
  0x52   :  { %4657 = vmatmul.mubr.f32.vlgmr.msra.gmra.mxu1 %v8663_v4  ;;  %4659 = vmatprep.subr.mxu1 %v8663_v4 }
  0x53   :  { %4660 = vmatpush3.msra.mxu1 %v6045_v6  ;;  %532 = vmatprep.subr.mxu0 %v6021_v1 }
  0x54   :  { %4661 = vmatprep.subr.mxu1 %v8663_v4  ;;  %533 = vmatpush1.msra.mxu0 %v6027_v2 }
  0x55   :  { %4662 = vmatpush3.msra.mxu1 %v6063_v9  ;;  %534 = vmatprep.subr.mxu0 %v6033_v3 }
  0x56   :  { %4663 = vmatprep.subr.mxu1 %v8663_v4  ;;  %535 = vmatpush1.msra.mxu0 %v6039_v5 }
  0x57   :  { %4664 = vmatpush3.msra.mxu1 %v6082_v12  ;;  %536 = vmatprep.subr.mxu0 %v6051_v7 }
  0x58   :  { %4665 = vmatprep.subr.mxu1 %v8663_v4  ;;  %537 = vmatpush1.msra.mxu0 %v6058_v8 }
  0x59   :  { %4666 = vmatpush3.msra.mxu1 %v6101_v15  ;;  %538 = vmatprep.subr.mxu0 %v6069_v10 }
  0x5a   :  { %4667 = vmatprep.subr.mxu1 %v8663_v4  ;;  %539 = vmatpush1.msra.mxu0 %v6076_v11 }
  0x5b   :  { %4668 = vmatpush3.msra.mxu1 %v6120_v18  ;;  %540 = vmatprep.subr.mxu0 %v6088_v13 }
  0x5c   :  { %4669 = vmatprep.subr.mxu1 %v8663_v4  ;;  %541 = vmatpush1.msra.mxu0 %v6095_v14 }
  0x5d   :  { %4670 = vmatpush3.msra.mxu1 %v6139_v21  ;;  %542 = vmatprep.subr.mxu0 %v6107_v16 }
  0x5e   :  { %4671 = vmatprep.subr.mxu1 %v8663_v4  ;;  %543 = vmatpush1.msra.mxu0 %v6114_v17 }
  0x5f   :  { %4672 = vmatpush3.msra.mxu1 %v6158_v24  ;;  %544 = vmatprep.subr.mxu0 %v6126_v19 }
  0x60   :  { %4673 = vmatprep.subr.mxu1 %v8663_v4  ;;  %545 = vmatpush1.msra.mxu0 %v6133_v20 }
  0x61   :  { %4674 = vmatpush3.msra.mxu1 %v6177_v27  ;;  %546 = vmatprep.subr.mxu0 %v6145_v22 }
  0x62   :  { %4675 = vmatprep.subr.mxu1 %v8663_v4  ;;  %547 = vmatpush1.msra.mxu0 %v6152_v23 }
  0x63   :  { %4676 = vmatpush3.msra.mxu1 %v6186_v28  ;;  %548 = vmatprep.subr.mxu0 %v6164_v25 }
  0x64   :  { %4677 = vmatprep.subr.mxu1 %v8663_v4  ;;  %549 = vmatpush1.msra.mxu0 %v6171_v26 }
  0x65   :  { %4678 = vmatpush3.msra.mxu1 %v6195_v29  ;;  %582 = vmatprep.mubr.f32.mxu0 %v8663_v4 }
  0x66   :  { %4679 = vmatprep.subr.mxu1 %v8663_v4  ;;  %4691 = vmatprep.mubr.msk.f32.mxu1 %vm5723_vm0, %v8663_v4 }
  0x67   :  { %4680 = vmatpush3.msra.mxu1 %v6204_v30  ;;  %723 = vmatprep.subr.mxu0 %v5919_v45 }
  0x68   :  { %4681 = vmatprep.subr.mxu1 %v8663_v4 }
  0x69   :  { %4682 = vmatpush3.msra.mxu1 %v6213_v31 }
  0x6a   :  { %4683 = vmatprep.subr.mxu1 %v8663_v4 }
  0x6b   :  { %4684 = vmatpush3.msra.mxu1 %v6222_v32 }
  0x6c   :  { %4685 = vmatprep.subr.mxu1 %v8663_v4 }
  0x6d   :  { %4686 = vmatpush3.msra.mxu1 %v6231_v33 }
  0x6e   :  { %4687 = vmatprep.subr.mxu1 %v8663_v4 }
  0x6f   :  { %4688 = vmatpush3.msra.mxu1 %v6240_v34 }
  0x70   :  { %4689 = vmatprep.subr.mxu1 %v8663_v4 }
  0x71   :  { %4690 = vmatpush3.msra.mxu1 %v6249_v35 }
  0x72   :  { %4694 = vmatprep.subr.mxu1 %v8663_v4  ;;  %v139_v4 = vrot.slane %v129_v41, %v6326_v51 }
  0xe2   :  { %v213_v37 = vpop.f32.mrf.mxu0 }
  0xe3   :  { %v6331_v63 = vadd.f32 %v213_v37, %v135_v44 }
  0xe4   :  { %v215_v39 = vpop.f32.mrf.mxu0 }
  0xe5   :  { %8798 = vst [vmem:[#allocation22_spill] sm:$0xff] %v6331_v63  ;;  %v6340_v22 = vadd.f32 %v215_v39, %v139_v4 }
  0xe7   :  { %8800 = vst [vmem:[#allocation24_spill] sm:$0xff] %v6340_v22 }
  0xea   :  { %v219_v43 = vpop.f32.mrf.mxu0 }
  0xeb   :  { %v6335_v35 = vadd.f32 %v219_v43, %v135_v44 }
  0xec   :  { %v221_v55 = vpop.f32.mrf.mxu0 }
  0xed   :  { %8799 = vst [vmem:[#allocation23_spill] sm:$0xff] %v6335_v35  ;;  %v6342_v20 = vadd.f32 %v221_v55, %v139_v4  ;;  %v6346_v4 = vsub.s32 2, %v133_v38 }
  0xef   :  { %8801 = vst [vmem:[#allocation25_spill] sm:$0xff] %v6342_v20  ;;  %8802 = vst [vmem:[#allocation26_spill] sm:$0xff] %v6346_v4 }
  0xf2   :  { %v4623_v43 = vpop.f32.mrf.mxu1 }
 0x102   :  { %v381_v60 = vpop.f32.mrf.mxu0 }
 0x103   :  { %v382_v36 = vadd.f32 %v381_v60, %v6324_v48 }
 0x104   :  { %v383_v45 = vpop.f32.mrf.mxu0 }
 0x105   :  { %v457_v26 = vrot.slane %v382_v36, 1  ;;  %v460_v40 = vadd.f32 %v382_v36, %v6331_v63  ;;  %v384_v25 = vadd.f32 %v383_v45, %v6329_v57  ;;  %v290_v36 = vpop.f32.mrf.mxu1 }
 0x107   :  { %v461_v34 = vadd.f32 %v457_v26, %v6335_v35  ;;  %v4082_v23 = vmul.f32 -1.442695, %v460_v40  ;;  %v475_v33 = vrot.slane %v384_v25, 1  ;;  %v478_v60 = vadd.f32 %v384_v25, %v6340_v22 }
 0x108   :  { %v6349_v25 = vrot.slane %v130_v42, %v6346_v4 }
 0x109   :  { %5262 = vpow2.f32 %v4082_v23  ;;  %v4083_v37 = vmul.f32 -1.442695, %v461_v34  ;;  %v479_v44 = vadd.f32 %v475_v33, %v6342_v20  ;;  %v4084_v51 = vmul.f32 -1.442695, %v478_v60 }
 0x10a   :  { %8803 = vst [vmem:[#allocation27_spill] sm:$0xff] %v6349_v25  ;;  %v143_v60 = vrot.slane %v129_v41, %v6346_v4 }
 0x10b   :  { %5264 = vpow2.f32 %v4083_v37  ;;  %v4085_v63 = vmul.f32 -1.442695, %v479_v44 }
 0x10c   :  { %5266 = vpow2.f32 %v4084_v51  ;;  %v6355_v38 = vadd.f32 %v4623_v43, %v143_v60 }
 0x10d   :  { %5268 = vpow2.f32 %v4085_v63 }
 0x112   :  { %v452_v45 = vpop.f32.mrf.mxu1 }
 0x113   :  { %v453_v33 = vadd.f32 %v452_v45, %v6349_v25 }
 0x114   :  { %v4658_v26 = vpop.f32.mrf.mxu1 }
 0x115   :  { %v493_v63 = vrot.slane %v453_v33, 1 }
 0x116   :  { %v5263_v39 = vpop.eup %5262 }
 0x117   :  { %v468_v40 = vadd.f32 1.0, %v5263_v39  ;;  %v6353_v39 = vadd.f32 %v290_v36, %v143_v60 }
 0x118   :  { %v5265_v23 = vpop.eup %5264 }
 0x119   :  { %v469_v34 = vadd.f32 1.0, %v5265_v23  ;;  %5270 = vrcp.f32 %v468_v40  ;;  %v5267_v55 = vpop.eup %5266 }
 0x11a   :  { %v5269_v37 = vpop.eup %5268  ;;  %v486_v51 = vadd.f32 1.0, %v5267_v55 }
 0x11b   :  { %5272 = vrcp.f32 %v469_v34  ;;  %v487_v44 = vadd.f32 1.0, %v5269_v37 }
 0x11c   :  { %5274 = vrcp.f32 %v486_v51 }
 0x11d   :  { %5276 = vrcp.f32 %v487_v44  ;;  %v8805_v44 = vld [vmem:[#allocation10_spill] sm:$0xff] }
 0x126   :  { %v5271_v26 = vpop.eup %5270 }
 0x127   :  { %v496_v40 = vmul.f32 %v5271_v26, %v453_v33 }
 0x128   :  { %v5273_v23 = vpop.eup %5272 }
 0x129   :  { %v497_v42 = vmul.f32 %v5273_v23, %v493_v63  ;;  %v498_v34 = vadd.f32 %v496_v40, %v6353_v39  ;;  %v5275_v41 = vpop.eup %5274  ;;  %v8806_v63 = vld [vmem:[#allocation15_spill] sm:$0xff]  ;;  %v8808_v23 = vld [vmem:[#allocation12_spill] sm:$0xff] }
 0x12a   :  { %v5277_v55 = vpop.eup %5276  ;;  %v502_v37 = vsub.f32 1.0, %v5275_v41  ;;  %v506_v36 = vmul.f32 0.0, %v5275_v41  ;;  %v8807_v40 = vld [vmem:[#allocation11_spill] sm:$0xff]  ;;  %v8812_v41 = vld [vmem:[#allocation17_spill] sm:$0xff] }
 0x12b   :  { %v499_v45 = vadd.f32 %v497_v42, %v6355_v38  ;;  %5278 = vtanh.f32 %v498_v34  ;;  %v503_v25 = vsub.f32 1.0, %v5277_v55  ;;  %v507_v26 = vmul.f32 0.0, %v5277_v55  ;;  %v8809_v42 = vld [vmem:[#allocation16_spill] sm:$0xff]  ;;  %v8810_v34 = vld [vmem:[#allocation13_spill] sm:$0xff] }
 0x12c   :  { %v8813_v55 = vld [vmem:[#allocation8_spill] sm:$0xff] }
 0x12d   :  { %5280 = vtanh.f32 %v499_v45  ;;  %v8811_v45 = vld [vmem:[#allocation14_spill] sm:$0xff] }
 0x138   :  { %v5279_v4 = vpop.eup %5278 }
 0x139   :  { %v504_v51 = vmul.f32 %v5279_v4, %v502_v37 }
 0x13a   :  { %v5281_v22 = vpop.eup %5280 }
 0x13b   :  { %v505_v33 = vmul.f32 %v5281_v22, %v503_v25  ;;  %v6359_v43 = vadd.f32 %v506_v36, %v504_v51  ;;  %v8804_v25 = vmov 0.0  }
 0x13d   :  { %v6361_v60 = vadd.f32 %v507_v26, %v505_v33  ;;  %510 = vst [vmem:[%s8660_s7] sm:$0x1] %v6359_v43 }
 0x13f   :  { %511 = vst [vmem:[%s8660_s7 + $0x10] sm:$0x1] %v6361_v60  ;;  %v8695_v4 = vrot.slane %v6361_v60, 7 }
 0x141   :  { %v516_v22 = vsel %vm515_vm1, %v8695_v4, %v6359_v43 }
 0x142   :  { %583 = vmatmul.mubr.f32.vlgmr.msra.gmra.mxu0 %v516_v22  ;;  %4692 = vmatmul.mubr.f32.vlgmr.msra.gmra.mxu1 %v516_v22 }
 0x143   :  { %724 = vmatpush1.msra.mxu0 %v5924_v46  ;;  %4695 = vmatpush3.msra.mxu1 %v6045_v6 }
 0x144   :  { %725 = vmatprep.subr.mxu0 %v5929_v47  ;;  %4696 = vmatprep.subr.mxu1 %v8804_v25 }
 0x145   :  { %726 = vmatpush1.msra.mxu0 %v5939_v49  ;;  %4697 = vmatpush3.msra.mxu1 %v6063_v9 }
 0x146   :  { %727 = vmatprep.subr.mxu0 %v5945_v50  ;;  %4698 = vmatprep.subr.mxu1 %v8804_v25 }
 0x147   :  { %728 = vmatpush1.msra.mxu0 %v5954_v52  ;;  %4699 = vmatpush3.msra.mxu1 %v6082_v12 }
 0x148   :  { %729 = vmatprep.subr.mxu0 %v5960_v53  ;;  %4700 = vmatprep.subr.mxu1 %v8804_v25 }
 0x149   :  { %730 = vmatpush1.msra.mxu0 %v5966_v54  ;;  %4701 = vmatpush3.msra.mxu1 %v6101_v15 }
 0x14a   :  { %731 = vmatprep.subr.mxu0 %v5975_v56  ;;  %4702 = vmatprep.subr.mxu1 %v8804_v25 }
 0x14b   :  { %732 = vmatpush1.msra.mxu0 %v5985_v58  ;;  %4703 = vmatpush3.msra.mxu1 %v6120_v18 }
 0x14c   :  { %733 = vmatprep.subr.mxu0 %v5991_v59  ;;  %4704 = vmatprep.subr.mxu1 %v8804_v25 }
 0x14d   :  { %734 = vmatpush1.msra.mxu0 %v6000_v61  ;;  %4705 = vmatpush3.msra.mxu1 %v6139_v21 }
 0x14e   :  { %735 = vmatprep.subr.mxu0 %v6006_v62  ;;  %4706 = vmatprep.subr.mxu1 %v8804_v25 }
 0x14f   :  { %736 = vmatpush1.msra.mxu0 %v6015_v0  ;;  %4707 = vmatpush3.msra.mxu1 %v6158_v24 }
 0x150   :  { %737 = vmatprep.subr.mxu0 %v6021_v1  ;;  %4708 = vmatprep.subr.mxu1 %v8804_v25 }
 0x151   :  { %738 = vmatpush1.msra.mxu0 %v6027_v2  ;;  %4709 = vmatpush3.msra.mxu1 %v6177_v27 }
 0x152   :  { %739 = vmatprep.subr.mxu0 %v6033_v3  ;;  %4710 = vmatprep.subr.mxu1 %v8804_v25 }
 0x153   :  { %740 = vmatpush1.msra.mxu0 %v6039_v5  ;;  %4711 = vmatpush3.msra.mxu1 %v6186_v28 }
 0x154   :  { %741 = vmatprep.subr.mxu0 %v6051_v7  ;;  %4712 = vmatprep.subr.mxu1 %v8804_v25 }
 0x155   :  { %742 = vmatpush1.msra.mxu0 %v6058_v8  ;;  %4713 = vmatpush3.msra.mxu1 %v6195_v29 }
 0x156   :  { %743 = vmatprep.subr.mxu0 %v6069_v10  ;;  %4714 = vmatprep.subr.mxu1 %v8804_v25 }
 0x157   :  { %744 = vmatpush1.msra.mxu0 %v6076_v11  ;;  %4715 = vmatpush3.msra.mxu1 %v6204_v30 }
 0x158   :  { %745 = vmatprep.subr.mxu0 %v6088_v13  ;;  %4716 = vmatprep.subr.mxu1 %v8804_v25 }
 0x159   :  { %746 = vmatpush1.msra.mxu0 %v6095_v14  ;;  %4717 = vmatpush3.msra.mxu1 %v6213_v31 }
 0x15a   :  { %747 = vmatprep.subr.mxu0 %v6107_v16  ;;  %4718 = vmatprep.subr.mxu1 %v8804_v25 }
 0x15b   :  { %748 = vmatpush1.msra.mxu0 %v6114_v17  ;;  %4719 = vmatpush3.msra.mxu1 %v6222_v32 }
 0x15c   :  { %749 = vmatprep.subr.mxu0 %v6126_v19  ;;  %4720 = vmatprep.subr.mxu1 %v8804_v25 }
 0x15d   :  { %750 = vmatpush1.msra.mxu0 %v8805_v44  ;;  %4721 = vmatpush3.msra.mxu1 %v8806_v63  ;;  %v8815_v63 = vld [vmem:[#allocation24_spill] sm:$0xff] }
 0x15e   :  { %751 = vmatprep.subr.mxu0 %v8807_v40  ;;  %4722 = vmatprep.subr.mxu1 %v8804_v25 }
 0x15f   :  { %752 = vmatpush1.msra.mxu0 %v8808_v23  ;;  %4723 = vmatpush3.msra.mxu1 %v8809_v42 }
 0x160   :  { %753 = vmatprep.subr.mxu0 %v8810_v34  ;;  %4724 = vmatprep.subr.mxu1 %v8804_v25  ;;  %v8814_v34 = vld [vmem:[#allocation22_spill] sm:$0xff] }
 0x161   :  { %754 = vmatpush1.msra.mxu0 %v8811_v45  ;;  %787 = vmatprep.mubr.f32.mxu0 %v8804_v25 }
 0x162   :  { %4725 = vmatpush3.msra.mxu1 %v8812_v41  ;;  %4726 = vmatprep.mubr.msk.f32.mxu1 %vm5723_vm0, %v8804_v25 }
 0x163   :  { %933 = vmatprep.subr.mxu0 %v8813_v55  ;;  %4729 = vmatprep.subr.mxu1 %v8804_v25 }
 0x202   :  { %v584_v37 = vpop.f32.mrf.mxu0  ;;  %v655_v51 = vpop.f32.mrf.mxu1 }
 0x203   :  { %v585_v36 = vadd.f32 %v584_v37, %v6324_v48 }
 0x204   :  { %v586_v33 = vpop.f32.mrf.mxu0  ;;  %v4693_v26 = vpop.f32.mrf.mxu1 }
 0x205   :  { %v660_v22 = vrot.slane %v585_v36, 7  ;;  %v664_v4 = vadd.f32 %v585_v36, %v6335_v35  ;;  %v587_v45 = vadd.f32 %v586_v33, %v6329_v57 }
 0x207   :  { %v663_v41 = vadd.f32 %v660_v22, %v8814_v34  ;;  %v4087_v42 = vmul.f32 -1.442695, %v664_v4  ;;  %v678_v40 = vrot.slane %v587_v45, 7  ;;  %v682_v55 = vadd.f32 %v587_v45, %v6342_v20 }
 0x209   :  { %v4086_v23 = vmul.f32 -1.442695, %v663_v41  ;;  %5282 = vpow2.f32 %v4087_v42  ;;  %v681_v44 = vadd.f32 %v678_v40, %v8815_v63  ;;  %v4089_v19 = vmul.f32 -1.442695, %v682_v55  ;;  %v8816_v41 = vld [vmem:[#allocation27_spill] sm:$0xff] }
 0x20a   :  { %v656_v42 = vadd.f32 %v655_v51, %v8816_v41  ;;  %v709_v51 = vrot.slane %v6359_v43, 7 }
 0x20b   :  { %5284 = vpow2.f32 %v4086_v23  ;;  %v4088_v37 = vmul.f32 -1.442695, %v681_v44 }
 0x20c   :  { %5286 = vpow2.f32 %v4089_v19  ;;  %v696_v45 = vrot.slane %v656_v42, 7 }
 0x20d   :  { %5288 = vpow2.f32 %v4088_v37 }
 0x216   :  { %v5283_v26 = vpop.eup %5282 }
 0x217   :  { %v672_v48 = vadd.f32 1.0, %v5283_v26 }
 0x218   :  { %v5285_v36 = vpop.eup %5284 }
 0x219   :  { %v671_v35 = vadd.f32 1.0, %v5285_v36  ;;  %5290 = vrcp.f32 %v672_v48  ;;  %v5287_v33 = vpop.eup %5286 }
 0x21a   :  { %v5289_v4 = vpop.eup %5288  ;;  %v690_v22 = vadd.f32 1.0, %v5287_v33 }
 0x21b   :  { %5292 = vrcp.f32 %v671_v35  ;;  %v689_v23 = vadd.f32 1.0, %v5289_v4 }
 0x21c   :  { %5294 = vrcp.f32 %v690_v22 }
 0x21d   :  { %5296 = vrcp.f32 %v689_v23 }
 0x226   :  { %v5291_v34 = vpop.eup %5290 }
 0x227   :  { %v700_v20 = vmul.f32 %v5291_v34, %v656_v42  ;;  %v8817_v34 = vrot.slane %v6361_v60, 7 }
 0x228   :  { %v5293_v40 = vpop.eup %5292 }
 0x229   :  { %v699_v44 = vmul.f32 %v5293_v40, %v696_v45  ;;  %v702_v19 = vadd.f32 %v700_v20, %v6355_v38  ;;  %v5295_v35 = vpop.eup %5294 }
 0x22a   :  { %v5297_v48 = vpop.eup %5296  ;;  %v706_v37 = vsub.f32 1.0, %v5295_v35  ;;  %v713_v4 = vmul.f32 %v5295_v35, %v8817_v34 }
 0x22b   :  { %v701_v55 = vadd.f32 %v699_v44, %v6353_v39  ;;  %5298 = vtanh.f32 %v702_v19  ;;  %v705_v36 = vsub.f32 1.0, %v5297_v48  ;;  %v712_v45 = vmul.f32 %v5297_v48, %v709_v51 }
 0x22d   :  { %5300 = vtanh.f32 %v701_v55  ;;  %v8831_v55 = vld [vmem:[#allocation25_spill] sm:$0xff] }
 0x238   :  { %v5299_v26 = vpop.eup %5298 }
 0x239   :  { %v708_v33 = vmul.f32 %v5299_v26, %v706_v37 }
 0x23a   :  { %v5301_v42 = vpop.eup %5300 }
 0x23b   :  { %v707_v22 = vmul.f32 %v5301_v42, %v705_v36  ;;  %v6455_v20 = vadd.f32 %v713_v4, %v708_v33 }
 0x23d   :  { %v6457_v23 = vadd.f32 %v712_v45, %v707_v22  ;;  %717 = vst [vmem:[%s8660_s7 + $0x10] sm:$0x2] %v6455_v20 }
 0x23f   :  { %716 = vst [vmem:[%s8660_s7] sm:$0x2] %v6457_v23  ;;  %v720_v43 = vrot.slane %v6457_v23, 1 }
 0x241   :  { %v721_v60 = vsel %vm515_vm1, %v6455_v20, %v720_v43 }
 0x242   :  { %788 = vmatmul.mubr.f32.vlgmr.msra.gmra.mxu0 %v721_v60  ;;  %4727 = vmatmul.mubr.f32.vlgmr.msra.gmra.mxu1 %v721_v60 }
 0x243   :  { %934 = vmatpush1.msra.mxu0 %v5924_v46  ;;  %4730 = vmatpush3.msra.mxu1 %v6045_v6  ;;  %v8818_v46 = vld [vmem:[#allocation9_spill] sm:$0xff] }
 0x244   :  { %935 = vmatprep.subr.mxu0 %v5929_v47  ;;  %4731 = vmatprep.subr.mxu1 %v8804_v25  ;;  %v8819_v47 = vld [vmem:[#allocation10_spill] sm:$0xff] }
 0x245   :  { %936 = vmatpush1.msra.mxu0 %v5939_v49  ;;  %4732 = vmatpush3.msra.mxu1 %v6063_v9  ;;  %v8820_v49 = vld [vmem:[#allocation15_spill] sm:$0xff] }
 0x246   :  { %937 = vmatprep.subr.mxu0 %v5945_v50  ;;  %4733 = vmatprep.subr.mxu1 %v8804_v25  ;;  %v8821_v50 = vld [vmem:[#allocation11_spill] sm:$0xff] }
 0x247   :  { %938 = vmatpush1.msra.mxu0 %v5954_v52  ;;  %4734 = vmatpush3.msra.mxu1 %v6082_v12  ;;  %v8822_v52 = vld [vmem:[#allocation12_spill] sm:$0xff] }
 0x248   :  { %939 = vmatprep.subr.mxu0 %v5960_v53  ;;  %4735 = vmatprep.subr.mxu1 %v8804_v25  ;;  %v8823_v53 = vld [vmem:[#allocation16_spill] sm:$0xff] }
 0x249   :  { %940 = vmatpush1.msra.mxu0 %v5966_v54  ;;  %4736 = vmatpush3.msra.mxu1 %v6101_v15  ;;  %v8824_v54 = vld [vmem:[#allocation13_spill] sm:$0xff] }
 0x24a   :  { %941 = vmatprep.subr.mxu0 %v5975_v56  ;;  %4737 = vmatprep.subr.mxu1 %v8804_v25  ;;  %v8825_v56 = vld [vmem:[#allocation14_spill] sm:$0xff] }
 0x24b   :  { %942 = vmatpush1.msra.mxu0 %v5985_v58  ;;  %4738 = vmatpush3.msra.mxu1 %v6120_v18  ;;  %v8826_v58 = vld [vmem:[#allocation17_spill] sm:$0xff] }
 0x24c   :  { %943 = vmatprep.subr.mxu0 %v5991_v59  ;;  %4739 = vmatprep.subr.mxu1 %v8804_v25  ;;  %v8827_v59 = vld [vmem:[#allocation8_spill] sm:$0xff] }
 0x24d   :  { %944 = vmatpush1.msra.mxu0 %v6000_v61  ;;  %4740 = vmatpush3.msra.mxu1 %v6139_v21 }
 0x24e   :  { %945 = vmatprep.subr.mxu0 %v6006_v62  ;;  %4741 = vmatprep.subr.mxu1 %v8804_v25 }
 0x24f   :  { %946 = vmatpush1.msra.mxu0 %v6015_v0  ;;  %4742 = vmatpush3.msra.mxu1 %v6158_v24  ;;  %v8828_v0 = vld [vmem:[#allocation19_spill] sm:$0xff] }
 0x250   :  { %947 = vmatprep.subr.mxu0 %v6021_v1  ;;  %4743 = vmatprep.subr.mxu1 %v8804_v25 }
 0x251   :  { %948 = vmatpush1.msra.mxu0 %v6027_v2  ;;  %4744 = vmatpush3.msra.mxu1 %v6177_v27 }
 0x252   :  { %949 = vmatprep.subr.mxu0 %v6033_v3  ;;  %4745 = vmatprep.subr.mxu1 %v8804_v25 }
 0x253   :  { %950 = vmatpush1.msra.mxu0 %v6039_v5  ;;  %4746 = vmatpush3.msra.mxu1 %v6186_v28 }
 0x254   :  { %951 = vmatprep.subr.mxu0 %v6051_v7  ;;  %4747 = vmatprep.subr.mxu1 %v8804_v25 }
 0x255   :  { %952 = vmatpush1.msra.mxu0 %v6058_v8  ;;  %4748 = vmatpush3.msra.mxu1 %v6195_v29 }
 0x256   :  { %953 = vmatprep.subr.mxu0 %v6069_v10  ;;  %4749 = vmatprep.subr.mxu1 %v8804_v25  ;;  %v8829_v10 = vld [vmem:[#allocation22_spill] sm:$0xff] }
 0x257   :  { %954 = vmatpush1.msra.mxu0 %v6076_v11  ;;  %4750 = vmatpush3.msra.mxu1 %v6204_v30 }
 0x258   :  { %955 = vmatprep.subr.mxu0 %v6088_v13  ;;  %4751 = vmatprep.subr.mxu1 %v8804_v25  ;;  %v8830_v13 = vld [vmem:[#allocation23_spill] sm:$0xff] }
 0x259   :  { %956 = vmatpush1.msra.mxu0 %v6095_v14  ;;  %4752 = vmatpush3.msra.mxu1 %v6213_v31 }
 0x25a   :  { %957 = vmatprep.subr.mxu0 %v6107_v16  ;;  %4753 = vmatprep.subr.mxu1 %v8804_v25 }
 0x25b   :  { %958 = vmatpush1.msra.mxu0 %v6114_v17  ;;  %4754 = vmatpush3.msra.mxu1 %v6222_v32 }
 0x25c   :  { %959 = vmatprep.subr.mxu0 %v8818_v46  ;;  %4755 = vmatprep.subr.mxu1 %v8804_v25 }
 0x25d   :  { %960 = vmatpush1.msra.mxu0 %v8819_v47  ;;  %4756 = vmatpush3.msra.mxu1 %v8820_v49 }
 0x25e   :  { %961 = vmatprep.subr.mxu0 %v8821_v50  ;;  %4757 = vmatprep.subr.mxu1 %v8804_v25 }
 0x25f   :  { %962 = vmatpush1.msra.mxu0 %v8822_v52  ;;  %4758 = vmatpush3.msra.mxu1 %v8823_v53 }
 0x260   :  { %963 = vmatprep.subr.mxu0 %v8824_v54  ;;  %4759 = vmatprep.subr.mxu1 %v8804_v25 }
 0x261   :  { %964 = vmatpush1.msra.mxu0 %v8825_v56  ;;  %997 = vmatprep.mubr.f32.mxu0 %v8804_v25 }
 0x262   :  { %4760 = vmatpush3.msra.mxu1 %v8826_v58  ;;  %4761 = vmatprep.mubr.msk.f32.mxu1 %vm5723_vm0, %v8804_v25 }
 0x263   :  { %1143 = vmatprep.subr.mxu0 %v8827_v59  ;;  %4764 = vmatprep.subr.mxu1 %v8804_v25 }
 0x302   :  { %v789_v61 = vpop.f32.mrf.mxu0  ;;  %v860_v62 = vpop.f32.mrf.mxu1 }
 0x303   :  { %v790_v1 = vadd.f32 %v789_v61, %v8828_v0  ;;  %v861_v42 = vadd.f32 %v860_v62, %v8816_v41  ;;  %v917_v62 = vrot.slane %v6457_v23, 7 }
 0x304   :  { %v791_v2 = vpop.f32.mrf.mxu0  ;;  %v4728_v3 = vpop.f32.mrf.mxu1 }
 0x305   :  { %v865_v5 = vrot.slane %v790_v1, 6  ;;  %v866_v7 = vrot.slane %v790_v1, 7  ;;  %v792_v8 = vadd.f32 %v791_v2, %v6329_v57  ;;  %v903_v43 = vrot.slane %v861_v42, 6 }
 0x306   :  { %v904_v46 = vrot.slane %v861_v42, 7  ;;  %v6664_v42 = vld [vmem:[%s8655_s2 + $0xc0] sm:$0xff] }
 0x307   :  { %v869_v11 = vadd.f32 %v865_v5, %v8829_v10  ;;  %v870_v14 = vadd.f32 %v866_v7, %v8830_v13  ;;  %v884_v40 = vrot.slane %v792_v8, 6  ;;  %v885_v44 = vrot.slane %v792_v8, 7 }
 0x308   :  { %v918_v7 = vrot.slane %v6455_v20, 7 }
 0x309   :  { %v4090_v16 = vmul.f32 -1.442695, %v869_v11  ;;  %v4091_v17 = vmul.f32 -1.442695, %v870_v14  ;;  %v888_v19 = vadd.f32 %v884_v40, %v8815_v63  ;;  %v889_v35 = vadd.f32 %v885_v44, %v8831_v55 }
 0x30b   :  { %5302 = vpow2.f32 %v4090_v16  ;;  %v4092_v48 = vmul.f32 -1.442695, %v888_v19  ;;  %v4093_v37 = vmul.f32 -1.442695, %v889_v35 }
 0x30c   :  { %5304 = vpow2.f32 %v4091_v17 }
 0x30d   :  { %5306 = vpow2.f32 %v4092_v48  ;;  %v6566_v48 = vld [vmem:[%s8655_s2 + $0x168] sm:$0xff] }
 0x30e   :  { %5308 = vpow2.f32 %v4093_v37  ;;  %v6573_v37 = vld [vmem:[%s8655_s2 + $0x158] sm:$0xff] }
 0x318   :  { %v5303_v26 = vpop.eup %5302 }
 0x319   :  { %v5305_v51 = vpop.eup %5304  ;;  %v877_v36 = vadd.f32 1.0, %v5303_v26  ;;  %v6580_v26 = vld [vmem:[%s8655_s2 + $0x150] sm:$0xff] }
 0x31a   :  { %v878_v33 = vadd.f32 1.0, %v5305_v51  ;;  %v5307_v34 = vpop.eup %5306  ;;  %v6594_v51 = vld [vmem:[%s8655_s2 + $0x138] sm:$0xff] }
 0x31b   :  { %5310 = vrcp.f32 %v877_v36  ;;  %v5309_v4 = vpop.eup %5308  ;;  %v896_v22 = vadd.f32 1.0, %v5307_v34  ;;  %v6608_v36 = vld [vmem:[%s8655_s2 + $0x120] sm:$0xff]  ;;  %v6636_v34 = vld [vmem:[%s8655_s2 + $0xf0] sm:$0xff] }
 0x31c   :  { %5312 = vrcp.f32 %v878_v33  ;;  %v897_v45 = vadd.f32 1.0, %v5309_v4  ;;  %v6622_v33 = vld [vmem:[%s8655_s2 + $0x108] sm:$0xff]  ;;  %v6650_v4 = vld [vmem:[%s8655_s2 + $0xd8] sm:$0xff] }
 0x31d   :  { %5314 = vrcp.f32 %v896_v22  ;;  %v6678_v22 = vld [vmem:[%s8655_s2 + $0xa8] sm:$0xff] }
 0x31e   :  { %5316 = vrcp.f32 %v897_v45  ;;  %v6692_v45 = vld [vmem:[%s8655_s2 + $0x90] sm:$0xff] }
 0x328   :  { %v5311_v60 = vpop.eup %5310 }
 0x329   :  { %v5313_v47 = vpop.eup %5312  ;;  %v907_v50 = vmul.f32 %v5311_v60, %v903_v43  ;;  %v6706_v43 = vld [vmem:[%s8655_s2 + $0x78] sm:$0xff]  ;;  %v6720_v60 = vld [vmem:[%s8655_s2 + $0x60] sm:$0xff] }
 0x32a   :  { %v908_v52 = vmul.f32 %v5313_v47, %v904_v46  ;;  %v5315_v1 = vpop.eup %5314  ;;  %v6734_v46 = vld [vmem:[%s8655_s2 + $0x48] sm:$0xff]  ;;  %v6748_v47 = vld [vmem:[%s8655_s2 + $0x30] sm:$0xff] }
 0x32b   :  { %v909_v59 = vadd.f32 %v907_v50, %v6353_v39  ;;  %v5317_v2 = vpop.eup %5316  ;;  %v913_v3 = vsub.f32 1.0, %v5315_v1  ;;  %v921_v16 = vmul.f32 %v5315_v1, %v917_v62  ;;  %8833 = vst [vmem:[#allocation9_spill] sm:$0xff] %v6748_v47  ;;  %v6762_v50 = vld [vmem:[%s8655_s2 + $0x18] sm:$0xff] }
 0x32c   :  { %v910_v61 = vadd.f32 %v908_v52, %v6355_v38  ;;  %v914_v8 = vsub.f32 1.0, %v5317_v2  ;;  %v922_v40 = vmul.f32 %v5317_v2, %v918_v7  ;;  %8835 = vst [vmem:[#allocation15_spill] sm:$0xff] %v6762_v50 }
 0x32d   :  { %5318 = vtanh.f32 %v909_v59 }
 0x32e   :  { %5320 = vtanh.f32 %v910_v61 }
 0x33a   :  { %v5319_v5 = vpop.eup %5318 }
 0x33b   :  { %v5321_v11 = vpop.eup %5320  ;;  %v915_v14 = vmul.f32 %v5319_v5, %v913_v3 }
 0x33c   :  { %v916_v17 = vmul.f32 %v5321_v11, %v914_v8 }
 0x33d   :  { %v6548_v44 = vadd.f32 %v921_v16, %v915_v14 }
 0x33e   :  { %v6550_v19 = vadd.f32 %v922_v40, %v916_v17 }
 0x33f   :  { %925 = vst [vmem:[%s8660_s7] sm:$0x4] %v6548_v44  ;;  %v929_v23 = vrot.slane %v6548_v44, 2 }
 0x340   :  { %926 = vst [vmem:[%s8660_s7 + $0x10] sm:$0x4] %v6550_v19  ;;  %v930_v20 = vrot.slane %v6550_v19, 1 }
 0x342   :  { %v931_v35 = vsel %vm515_vm1, %v930_v20, %v929_v23 }
 0x343   :  { %998 = vmatmul.mubr.f32.vlgmr.msra.gmra.mxu0 %v931_v35  ;;  %4762 = vmatmul.mubr.f32.vlgmr.msra.gmra.mxu1 %v931_v35 }
 0x344   :  { %1144 = vmatpush1.msra.mxu0 %v6566_v48  ;;  %4765 = vmatpush3.msra.mxu1 %v6045_v6  ;;  %v6587_v6 = vld [vmem:[%s8655_s2 + $0x140] sm:$0xff] }
 0x345   :  { %1145 = vmatprep.subr.mxu0 %v6573_v37  ;;  %4766 = vmatprep.subr.mxu1 %v8804_v25 }
 0x346   :  { %1146 = vmatpush1.msra.mxu0 %v6580_v26  ;;  %4767 = vmatpush3.msra.mxu1 %v6063_v9  ;;  %v6601_v9 = vld [vmem:[%s8655_s2 + $0x128] sm:$0xff] }
 0x347   :  { %1147 = vmatprep.subr.mxu0 %v6587_v6  ;;  %4768 = vmatprep.subr.mxu1 %v8804_v25 }
 0x348   :  { %1148 = vmatpush1.msra.mxu0 %v6594_v51  ;;  %4769 = vmatpush3.msra.mxu1 %v6082_v12  ;;  %v6615_v12 = vld [vmem:[%s8655_s2 + $0x110] sm:$0xff] }
 0x349   :  { %1149 = vmatprep.subr.mxu0 %v6601_v9  ;;  %4770 = vmatprep.subr.mxu1 %v8804_v25 }
 0x34a   :  { %1150 = vmatpush1.msra.mxu0 %v6608_v36  ;;  %4771 = vmatpush3.msra.mxu1 %v6101_v15  ;;  %v6629_v15 = vld [vmem:[%s8655_s2 + $0xf8] sm:$0xff] }
 0x34b   :  { %1151 = vmatprep.subr.mxu0 %v6615_v12  ;;  %4772 = vmatprep.subr.mxu1 %v8804_v25 }
 0x34c   :  { %1152 = vmatpush1.msra.mxu0 %v6622_v33  ;;  %4773 = vmatpush3.msra.mxu1 %v6120_v18  ;;  %v6643_v18 = vld [vmem:[%s8655_s2 + $0xe0] sm:$0xff] }
 0x34d   :  { %1153 = vmatprep.subr.mxu0 %v6629_v15  ;;  %4774 = vmatprep.subr.mxu1 %v8804_v25 }
 0x34e   :  { %1154 = vmatpush1.msra.mxu0 %v6636_v34  ;;  %4775 = vmatpush3.msra.mxu1 %v6139_v21  ;;  %v6657_v21 = vld [vmem:[%s8655_s2 + $0xc8] sm:$0xff] }
 0x34f   :  { %1155 = vmatprep.subr.mxu0 %v6643_v18  ;;  %4776 = vmatprep.subr.mxu1 %v8804_v25 }
 0x350   :  { %1156 = vmatpush1.msra.mxu0 %v6650_v4  ;;  %4777 = vmatpush3.msra.mxu1 %v6158_v24  ;;  %v6671_v24 = vld [vmem:[%s8655_s2 + $0xb0] sm:$0xff] }
 0x351   :  { %1157 = vmatprep.subr.mxu0 %v6657_v21  ;;  %4778 = vmatprep.subr.mxu1 %v8804_v25 }
 0x352   :  { %1158 = vmatpush1.msra.mxu0 %v6664_v42  ;;  %4779 = vmatpush3.msra.mxu1 %v6177_v27  ;;  %v6685_v27 = vld [vmem:[%s8655_s2 + $0x98] sm:$0xff] }
 0x353   :  { %1159 = vmatprep.subr.mxu0 %v6671_v24  ;;  %4780 = vmatprep.subr.mxu1 %v8804_v25 }
 0x354   :  { %1160 = vmatpush1.msra.mxu0 %v6678_v22  ;;  %4781 = vmatpush3.msra.mxu1 %v6186_v28  ;;  %v6699_v28 = vld [vmem:[%s8655_s2 + $0x80] sm:$0xff] }
 0x355   :  { %1161 = vmatprep.subr.mxu0 %v6685_v27  ;;  %4782 = vmatprep.subr.mxu1 %v8804_v25 }
 0x356   :  { %1162 = vmatpush1.msra.mxu0 %v6692_v45  ;;  %4783 = vmatpush3.msra.mxu1 %v6195_v29  ;;  %v6713_v29 = vld [vmem:[%s8655_s2 + $0x68] sm:$0xff] }
 0x357   :  { %1163 = vmatprep.subr.mxu0 %v6699_v28  ;;  %4784 = vmatprep.subr.mxu1 %v8804_v25 }
 0x358   :  { %1164 = vmatpush1.msra.mxu0 %v6706_v43  ;;  %4785 = vmatpush3.msra.mxu1 %v6204_v30  ;;  %v6727_v30 = vld [vmem:[%s8655_s2 + $0x50] sm:$0xff] }
 0x359   :  { %1165 = vmatprep.subr.mxu0 %v6713_v29  ;;  %4786 = vmatprep.subr.mxu1 %v8804_v25 }
 0x35a   :  { %1166 = vmatpush1.msra.mxu0 %v6720_v60  ;;  %4787 = vmatpush3.msra.mxu1 %v6213_v31  ;;  %v6741_v31 = vld [vmem:[%s8655_s2 + $0x38] sm:$0xff] }
 0x35b   :  { %1167 = vmatprep.subr.mxu0 %v6727_v30  ;;  %4788 = vmatprep.subr.mxu1 %v8804_v25  ;;  %8832 = vst [vmem:[#allocation27_spill] sm:$0xff] %v6741_v31 }
 0x35c   :  { %1168 = vmatpush1.msra.mxu0 %v6734_v46  ;;  %4789 = vmatpush3.msra.mxu1 %v6222_v32  ;;  %v6755_v32 = vld [vmem:[%s8655_s2 + $0x20] sm:$0xff] }
 0x35d   :  { %1169 = vmatprep.subr.mxu0 %v6741_v31  ;;  %4790 = vmatprep.subr.mxu1 %v8804_v25  ;;  %8834 = vst [vmem:[#allocation10_spill] sm:$0xff] %v6755_v32 }
 0x35e   :  { %1170 = vmatpush1.msra.mxu0 %v6748_v47  ;;  %4791 = vmatpush3.msra.mxu1 %v8820_v49  ;;  %v6776_v49 = vld [vmem:[%s8655_s2 + $0x170] sm:$0xff] }
 0x35f   :  { %1171 = vmatprep.subr.mxu0 %v6755_v32  ;;  %4792 = vmatprep.subr.mxu1 %v8804_v25  ;;  %8836 = vst [vmem:[#allocation11_spill] sm:$0xff] %v6776_v49 }
 0x360   :  { %1172 = vmatpush1.msra.mxu0 %v6762_v50  ;;  %4793 = vmatpush3.msra.mxu1 %v8823_v53 }
 0x361   :  { %1173 = vmatprep.subr.mxu0 %v8824_v54  ;;  %4794 = vmatprep.subr.mxu1 %v8804_v25 }
 0x362   :  { %1174 = vmatpush1.msra.mxu0 %v8825_v56  ;;  %1207 = vmatprep.mubr.f32.mxu0 %v8804_v25 }
 0x363   :  { %4795 = vmatpush3.msra.mxu1 %v8826_v58  ;;  %4796 = vmatprep.mubr.msk.f32.mxu1 %vm5723_vm0, %v8804_v25 }
 0x364   :  { %1353 = vmatprep.subr.mxu0 %v6776_v49  ;;  %4799 = vmatprep.subr.mxu1 %v8804_v25 }
 0x403   :  { %v999_v53 = vpop.f32.mrf.mxu0  ;;  %v1070_v54 = vpop.f32.mrf.mxu1 }
 0x404   :  { %v1000_v56 = vadd.f32 %v999_v53, %v8828_v0 }
 0x405   :  { %v1001_v52 = vpop.f32.mrf.mxu0  ;;  %v4763_v59 = vpop.f32.mrf.mxu1 }
 0x406   :  { %v1075_v61 = vrot.slane %v1000_v56, 5  ;;  %v1076_v58 = vrot.slane %v1000_v56, 6  ;;  %v1002_v1 = vadd.f32 %v1001_v52, %v6329_v57  ;;  %v1071_v52 = vadd.f32 %v1070_v54, %v8816_v41 }
 0x407   :  { %v1127_v54 = vrot.slane %v6548_v44, 7 }
 0x408   :  { %v1079_v2 = vadd.f32 %v1075_v61, %v8829_v10  ;;  %v1080_v3 = vadd.f32 %v1076_v58, %v8830_v13  ;;  %v1094_v7 = vrot.slane %v1002_v1, 5  ;;  %v1095_v8 = vrot.slane %v1002_v1, 6 }
 0x409   :  { %v1113_v58 = vrot.slane %v1071_v52, 5 }
 0x40a   :  { %v4094_v62 = vmul.f32 -1.442695, %v1079_v2  ;;  %v4095_v5 = vmul.f32 -1.442695, %v1080_v3  ;;  %v1098_v11 = vadd.f32 %v1094_v7, %v8815_v63  ;;  %v1099_v14 = vadd.f32 %v1095_v8, %v8831_v55 }
 0x40b   :  { %v1114_v2 = vrot.slane %v1071_v52, 6 }
 0x40c   :  { %5322 = vpow2.f32 %v4094_v62  ;;  %v4096_v16 = vmul.f32 -1.442695, %v1098_v11  ;;  %v4097_v17 = vmul.f32 -1.442695, %v1099_v14 }
 0x40d   :  { %5324 = vpow2.f32 %v4095_v5 }
 0x40e   :  { %5326 = vpow2.f32 %v4096_v16 }
 0x40f   :  { %5328 = vpow2.f32 %v4097_v17 }
 0x419   :  { %v5323_v40 = vpop.eup %5322 }
 0x41a   :  { %v5325_v23 = vpop.eup %5324  ;;  %v1087_v20 = vadd.f32 1.0, %v5323_v40 }
 0x41b   :  { %v1088_v35 = vadd.f32 1.0, %v5325_v23  ;;  %v5327_v53 = vpop.eup %5326  ;;  %v1128_v23 = vrot.slane %v6550_v19, 7 }
 0x41c   :  { %5330 = vrcp.f32 %v1087_v20  ;;  %v5329_v56 = vpop.eup %5328  ;;  %v1106_v59 = vadd.f32 1.0, %v5327_v53 }
 0x41d   :  { %5332 = vrcp.f32 %v1088_v35  ;;  %v1107_v61 = vadd.f32 1.0, %v5329_v56 }
 0x41e   :  { %5334 = vrcp.f32 %v1106_v59 }
 0x41f   :  { %5336 = vrcp.f32 %v1107_v61 }
 0x429   :  { %v5331_v1 = vpop.eup %5330 }
 0x42a   :  { %v5333_v3 = vpop.eup %5332  ;;  %v1117_v62 = vmul.f32 %v5331_v1, %v1113_v58  ;;  %v6810_v1 = vld [vmem:[%s8655_s2 + $0x178] sm:$0xff] }
 0x42b   :  { %v1118_v5 = vmul.f32 %v5333_v3, %v1114_v2  ;;  %v5335_v11 = vpop.eup %5334  ;;  %v6819_v2 = vld [vmem:[%s8655_s2 + $0x160] sm:$0xff]  ;;  %v6828_v3 = vld [vmem:[%s8655_s2 + $0x148] sm:$0xff] }
 0x42c   :  { %v1119_v7 = vadd.f32 %v1117_v62, %v6353_v39  ;;  %v5337_v14 = vpop.eup %5336  ;;  %v1123_v16 = vsub.f32 1.0, %v5335_v11  ;;  %v1131_v53 = vmul.f32 %v5335_v11, %v1127_v54  ;;  %v6837_v62 = vld [vmem:[%s8655_s2 + $0x130] sm:$0xff]  ;;  %v6900_v54 = vld [vmem:[%s8655_s2 + $0x88] sm:$0xff] }
 0x42d   :  { %v1120_v8 = vadd.f32 %v1118_v5, %v6355_v38  ;;  %v1124_v40 = vsub.f32 1.0, %v5337_v14  ;;  %v1132_v52 = vmul.f32 %v5337_v14, %v1128_v23  ;;  %v6846_v5 = vld [vmem:[%s8655_s2 + $0x118] sm:$0xff]  ;;  %v6873_v11 = vld [vmem:[%s8655_s2 + $0xd0] sm:$0xff]  ;;  %v6927_v23 = vld [vmem:[%s8655_s2 + $0x40] sm:$0xff] }
 0x42e   :  { %5338 = vtanh.f32 %v1119_v7  ;;  %v6855_v7 = vld [vmem:[%s8655_s2 + $0x100] sm:$0xff]  ;;  %v6882_v14 = vld [vmem:[%s8655_s2 + $0xb8] sm:$0xff]  ;;  %8838 = vst [vmem:[#allocation16_spill] sm:$0xff] %v6927_v23 }
 0x42f   :  { %5340 = vtanh.f32 %v1120_v8  ;;  %v6864_v8 = vld [vmem:[%s8655_s2 + $0xe8] sm:$0xff] }
 0x43b   :  { %v5339_v17 = vpop.eup %5338 }
 0x43c   :  { %v5341_v20 = vpop.eup %5340  ;;  %v1125_v35 = vmul.f32 %v5339_v17, %v1123_v16  ;;  %v6891_v16 = vld [vmem:[%s8655_s2 + $0xa0] sm:$0xff]  ;;  %v6909_v17 = vld [vmem:[%s8655_s2 + $0x70] sm:$0xff] }
 0x43d   :  { %v1126_v56 = vmul.f32 %v5341_v20, %v1124_v40  ;;  %v6918_v40 = vld [vmem:[%s8655_s2 + $0x58] sm:$0xff]  ;;  %v6936_v20 = vld [vmem:[%s8655_s2 + $0x28] sm:$0xff] }
 0x43e   :  { %v6791_v59 = vadd.f32 %v1131_v53, %v1125_v35  ;;  %8837 = vst [vmem:[#allocation12_spill] sm:$0xff] %v6918_v40  ;;  %8839 = vst [vmem:[#allocation13_spill] sm:$0xff] %v6936_v20  ;;  %v6942_v35 = vld [vmem:[%s8655_s2 + $0x8] sm:$0xff]  ;;  %v6949_v53 = vld [vmem:[%s8655_s2] sm:$0xff] }
 0x43f   :  { %v6793_v61 = vadd.f32 %v1132_v52, %v1126_v56  ;;  %8840 = vst [vmem:[#allocation14_spill] sm:$0xff] %v6942_v35  ;;  %8841 = vst [vmem:[#allocation17_spill] sm:$0xff] %v6949_v53  ;;  %v6956_v56 = vld [vmem:[%s8655_s2 + $0x10] sm:$0xff] }
 0x440   :  { %1135 = vst [vmem:[%s8660_s7] sm:$0x8] %v6791_v59  ;;  %v1139_v44 = vrot.slane %v6791_v59, 3  ;;  %8842 = vst [vmem:[#allocation8_spill] sm:$0xff] %v6956_v56 }
 0x441   :  { %1136 = vst [vmem:[%s8660_s7 + $0x10] sm:$0x8] %v6793_v61  ;;  %v1140_v19 = vrot.slane %v6793_v61, 2 }
 0x443   :  { %v1141_v58 = vsel %vm515_vm1, %v1140_v19, %v1139_v44 }
 0x444   :  { %1208 = vmatmul.mubr.f32.vlgmr.msra.gmra.mxu0 %v1141_v58  ;;  %4797 = vmatmul.mubr.f32.vlgmr.msra.gmra.mxu1 %v1141_v58 }
 0x445   :  { %1354 = vmatpush1.msra.mxu0 %v6566_v48  ;;  %4800 = vmatpush3.msra.mxu1 %v6810_v1 }
 0x446   :  { %1355 = vmatprep.subr.mxu0 %v6573_v37  ;;  %4801 = vmatprep.subr.mxu1 %v8804_v25 }
 0x447   :  { %1356 = vmatpush1.msra.mxu0 %v6580_v26  ;;  %4802 = vmatpush3.msra.mxu1 %v6819_v2 }
 0x448   :  { %1357 = vmatprep.subr.mxu0 %v6587_v6  ;;  %4803 = vmatprep.subr.mxu1 %v8804_v25 }
 0x449   :  { %1358 = vmatpush1.msra.mxu0 %v6594_v51  ;;  %4804 = vmatpush3.msra.mxu1 %v6828_v3 }
 0x44a   :  { %1359 = vmatprep.subr.mxu0 %v6601_v9  ;;  %4805 = vmatprep.subr.mxu1 %v8804_v25 }
 0x44b   :  { %1360 = vmatpush1.msra.mxu0 %v6608_v36  ;;  %4806 = vmatpush3.msra.mxu1 %v6837_v62 }
 0x44c   :  { %1361 = vmatprep.subr.mxu0 %v6615_v12  ;;  %4807 = vmatprep.subr.mxu1 %v8804_v25 }
 0x44d   :  { %1362 = vmatpush1.msra.mxu0 %v6622_v33  ;;  %4808 = vmatpush3.msra.mxu1 %v6846_v5 }
 0x44e   :  { %1363 = vmatprep.subr.mxu0 %v6629_v15  ;;  %4809 = vmatprep.subr.mxu1 %v8804_v25 }
 0x44f   :  { %1364 = vmatpush1.msra.mxu0 %v6636_v34  ;;  %4810 = vmatpush3.msra.mxu1 %v6855_v7 }
 0x450   :  { %1365 = vmatprep.subr.mxu0 %v6643_v18  ;;  %4811 = vmatprep.subr.mxu1 %v8804_v25 }
 0x451   :  { %1366 = vmatpush1.msra.mxu0 %v6650_v4  ;;  %4812 = vmatpush3.msra.mxu1 %v6864_v8 }
 0x452   :  { %1367 = vmatprep.subr.mxu0 %v6657_v21  ;;  %4813 = vmatprep.subr.mxu1 %v8804_v25 }
 0x453   :  { %1368 = vmatpush1.msra.mxu0 %v6664_v42  ;;  %4814 = vmatpush3.msra.mxu1 %v6873_v11 }
 0x454   :  { %1369 = vmatprep.subr.mxu0 %v6671_v24  ;;  %4815 = vmatprep.subr.mxu1 %v8804_v25 }
 0x455   :  { %1370 = vmatpush1.msra.mxu0 %v6678_v22  ;;  %4816 = vmatpush3.msra.mxu1 %v6882_v14 }
 0x456   :  { %1371 = vmatprep.subr.mxu0 %v6685_v27  ;;  %4817 = vmatprep.subr.mxu1 %v8804_v25 }
 0x457   :  { %1372 = vmatpush1.msra.mxu0 %v6692_v45  ;;  %4818 = vmatpush3.msra.mxu1 %v6891_v16 }
 0x458   :  { %1373 = vmatprep.subr.mxu0 %v6699_v28  ;;  %4819 = vmatprep.subr.mxu1 %v8804_v25 }
 0x459   :  { %1374 = vmatpush1.msra.mxu0 %v6706_v43  ;;  %4820 = vmatpush3.msra.mxu1 %v6900_v54 }
 0x45a   :  { %1375 = vmatprep.subr.mxu0 %v6713_v29  ;;  %4821 = vmatprep.subr.mxu1 %v8804_v25 }
 0x45b   :  { %1376 = vmatpush1.msra.mxu0 %v6720_v60  ;;  %4822 = vmatpush3.msra.mxu1 %v6909_v17 }
 0x45c   :  { %1377 = vmatprep.subr.mxu0 %v6727_v30  ;;  %4823 = vmatprep.subr.mxu1 %v8804_v25 }
 0x45d   :  { %1378 = vmatpush1.msra.mxu0 %v6734_v46  ;;  %4824 = vmatpush3.msra.mxu1 %v6918_v40 }
 0x45e   :  { %1379 = vmatprep.subr.mxu0 %v6741_v31  ;;  %4825 = vmatprep.subr.mxu1 %v8804_v25 }
 0x45f   :  { %1380 = vmatpush1.msra.mxu0 %v6748_v47  ;;  %4826 = vmatpush3.msra.mxu1 %v6927_v23 }
 0x460   :  { %1381 = vmatprep.subr.mxu0 %v6755_v32  ;;  %4827 = vmatprep.subr.mxu1 %v8804_v25 }
 0x461   :  { %1382 = vmatpush1.msra.mxu0 %v6762_v50  ;;  %4828 = vmatpush3.msra.mxu1 %v6936_v20 }
 0x462   :  { %1383 = vmatprep.subr.mxu0 %v6942_v35  ;;  %4829 = vmatprep.subr.mxu1 %v8804_v25 }
 0x463   :  { %1384 = vmatpush1.msra.mxu0 %v6949_v53  ;;  %1417 = vmatprep.mubr.f32.mxu0 %v8804_v25 }
 0x464   :  { %4830 = vmatpush3.msra.mxu1 %v6956_v56  ;;  %4831 = vmatprep.mubr.msk.f32.mxu1 %vm5723_vm0, %v8804_v25 }
 0x465   :  { %1563 = vmatprep.subr.mxu0 %v6776_v49  ;;  %4834 = vmatprep.subr.mxu1 %v8804_v25 }
 0x504   :  { %v1209_v52 = vpop.f32.mrf.mxu0  ;;  %v1280_v44 = vpop.f32.mrf.mxu1 }
 0x505   :  { %v1210_v19 = vadd.f32 %v1209_v52, %v8828_v0 }
 0x506   :  { %v1211_v58 = vpop.f32.mrf.mxu0  ;;  %v4798_v53 = vpop.f32.mrf.mxu1 }
 0x507   :  { %v1285_v35 = vrot.slane %v1210_v19, 4  ;;  %v1286_v20 = vrot.slane %v1210_v19, 5  ;;  %v1212_v50 = vadd.f32 %v1211_v58, %v6329_v57 }
 0x509   :  { %v1289_v32 = vadd.f32 %v1285_v35, %v8829_v10  ;;  %v1290_v56 = vadd.f32 %v1286_v20, %v8830_v13  ;;  %v1304_v31 = vrot.slane %v1212_v50, 4  ;;  %v1305_v49 = vrot.slane %v1212_v50, 5 }
 0x50a   :  { %v1281_v50 = vadd.f32 %v1280_v44, %v8816_v41  ;;  %v1337_v44 = vrot.slane %v6791_v59, 7 }
 0x50b   :  { %v4098_v23 = vmul.f32 -1.442695, %v1289_v32  ;;  %v4099_v47 = vmul.f32 -1.442695, %v1290_v56  ;;  %v1308_v40 = vadd.f32 %v1304_v31, %v8815_v63  ;;  %v1309_v52 = vadd.f32 %v1305_v49, %v8831_v55 }
 0x50c   :  { %v1323_v56 = vrot.slane %v1281_v50, 4  ;;  %v1324_v63 = vrot.slane %v1281_v50, 5 }
 0x50d   :  { %5342 = vpow2.f32 %v4098_v23  ;;  %v4100_v0 = vmul.f32 -1.442695, %v1308_v40  ;;  %v4101_v53 = vmul.f32 -1.442695, %v1309_v52 }
 0x50e   :  { %5344 = vpow2.f32 %v4099_v47 }
 0x50f   :  { %5346 = vpow2.f32 %v4100_v0 }
 0x510   :  { %5348 = vpow2.f32 %v4101_v53 }
 0x51a   :  { %v5343_v19 = vpop.eup %5342 }
 0x51b   :  { %v5345_v58 = vpop.eup %5344  ;;  %v1297_v57 = vadd.f32 1.0, %v5343_v19 }
 0x51c   :  { %v1298_v35 = vadd.f32 1.0, %v5345_v58  ;;  %v5347_v32 = vpop.eup %5346 }
 0x51d   :  { %5350 = vrcp.f32 %v1297_v57  ;;  %v5349_v20 = vpop.eup %5348  ;;  %v1316_v23 = vadd.f32 1.0, %v5347_v32 }
 0x51e   :  { %5352 = vrcp.f32 %v1298_v35  ;;  %v1317_v47 = vadd.f32 1.0, %v5349_v20  ;;  %v1338_v20 = vrot.slane %v6793_v61, 7 }
 0x51f   :  { %5354 = vrcp.f32 %v1316_v23 }
 0x520   :  { %5356 = vrcp.f32 %v1317_v47 }
 0x52a   :  { %v5351_v31 = vpop.eup %5350 }
 0x52b   :  { %v5353_v49 = vpop.eup %5352  ;;  %v1327_v40 = vmul.f32 %v5351_v31, %v1323_v56 }
 0x52c   :  { %v1328_v0 = vmul.f32 %v5353_v49, %v1324_v63  ;;  %v5355_v57 = vpop.eup %5354 }
 0x52d   :  { %v1329_v52 = vadd.f32 %v1327_v40, %v6353_v39  ;;  %v5357_v19 = vpop.eup %5356  ;;  %v1333_v58 = vsub.f32 1.0, %v5355_v57  ;;  %v1341_v23 = vmul.f32 %v5355_v57, %v1337_v44  ;;  %v8846_v57 = vld [vmem:[#allocation16_spill] sm:$0xff]  ;;  %v8849_v44 = vld [vmem:[#allocation13_spill] sm:$0xff] }
 0x52e   :  { %v1330_v53 = vadd.f32 %v1328_v0, %v6355_v38  ;;  %v1334_v32 = vsub.f32 1.0, %v5357_v19  ;;  %v1342_v47 = vmul.f32 %v5357_v19, %v1338_v20  ;;  %v8843_v0 = vld [vmem:[#allocation12_spill] sm:$0xff]  ;;  %v8847_v19 = vld [vmem:[#allocation10_spill] sm:$0xff] }
 0x52f   :  { %5358 = vtanh.f32 %v1329_v52  ;;  %v8844_v52 = vld [vmem:[#allocation27_spill] sm:$0xff]  ;;  %v8852_v20 = vld [vmem:[#allocation8_spill] sm:$0xff] }
 0x530   :  { %5360 = vtanh.f32 %v1330_v53  ;;  %v8845_v53 = vld [vmem:[#allocation9_spill] sm:$0xff] }
 0x53c   :  { %v5359_v35 = vpop.eup %5358 }
 0x53d   :  { %v5361_v50 = vpop.eup %5360  ;;  %v1335_v56 = vmul.f32 %v5359_v35, %v1333_v58  ;;  %v8848_v58 = vld [vmem:[#allocation15_spill] sm:$0xff]  ;;  %v8850_v35 = vld [vmem:[#allocation14_spill] sm:$0xff] }
 0x53e   :  { %v1336_v63 = vmul.f32 %v5361_v50, %v1334_v32  ;;  %v8851_v32 = vld [vmem:[#allocation17_spill] sm:$0xff]  ;;  %v8853_v50 = vld [vmem:[#allocation11_spill] sm:$0xff] }
 0x53f   :  { %v6974_v31 = vadd.f32 %v1341_v23, %v1335_v56 }
 0x540   :  { %v6976_v49 = vadd.f32 %v1342_v47, %v1336_v63  ;;  %v8854_v63 = vld [vmem:[#allocation19_spill] sm:$0xff] }
 0x541   :  { %1345 = vst [vmem:[%s8660_s7] sm:$0x10] %v6974_v31  ;;  %v1349_v59 = vrot.slane %v6974_v31, 4 }
 0x542   :  { %1346 = vst [vmem:[%s8660_s7 + $0x10] sm:$0x10] %v6976_v49  ;;  %v1350_v61 = vrot.slane %v6976_v49, 3 }
 0x544   :  { %v1351_v40 = vsel %vm515_vm1, %v1350_v61, %v1349_v59 }
 0x545   :  { %1418 = vmatmul.mubr.f32.vlgmr.msra.gmra.mxu0 %v1351_v40  ;;  %4832 = vmatmul.mubr.f32.vlgmr.msra.gmra.mxu1 %v1351_v40 }
 0x546   :  { %1564 = vmatpush1.msra.mxu0 %v6566_v48  ;;  %4835 = vmatpush3.msra.mxu1 %v6810_v1 }
 0x547   :  { %1565 = vmatprep.subr.mxu0 %v6573_v37  ;;  %4836 = vmatprep.subr.mxu1 %v8804_v25 }
 0x548   :  { %1566 = vmatpush1.msra.mxu0 %v6580_v26  ;;  %4837 = vmatpush3.msra.mxu1 %v6819_v2 }
 0x549   :  { %1567 = vmatprep.subr.mxu0 %v6587_v6  ;;  %4838 = vmatprep.subr.mxu1 %v8804_v25 }
 0x54a   :  { %1568 = vmatpush1.msra.mxu0 %v6594_v51  ;;  %4839 = vmatpush3.msra.mxu1 %v6828_v3 }
 0x54b   :  { %1569 = vmatprep.subr.mxu0 %v6601_v9  ;;  %4840 = vmatprep.subr.mxu1 %v8804_v25 }
 0x54c   :  { %1570 = vmatpush1.msra.mxu0 %v6608_v36  ;;  %4841 = vmatpush3.msra.mxu1 %v6837_v62 }
 0x54d   :  { %1571 = vmatprep.subr.mxu0 %v6615_v12  ;;  %4842 = vmatprep.subr.mxu1 %v8804_v25 }
 0x54e   :  { %1572 = vmatpush1.msra.mxu0 %v6622_v33  ;;  %4843 = vmatpush3.msra.mxu1 %v6846_v5 }
 0x54f   :  { %1573 = vmatprep.subr.mxu0 %v6629_v15  ;;  %4844 = vmatprep.subr.mxu1 %v8804_v25 }
 0x550   :  { %1574 = vmatpush1.msra.mxu0 %v6636_v34  ;;  %4845 = vmatpush3.msra.mxu1 %v6855_v7 }
 0x551   :  { %1575 = vmatprep.subr.mxu0 %v6643_v18  ;;  %4846 = vmatprep.subr.mxu1 %v8804_v25 }
 0x552   :  { %1576 = vmatpush1.msra.mxu0 %v6650_v4  ;;  %4847 = vmatpush3.msra.mxu1 %v6864_v8 }
 0x553   :  { %1577 = vmatprep.subr.mxu0 %v6657_v21  ;;  %4848 = vmatprep.subr.mxu1 %v8804_v25 }
 0x554   :  { %1578 = vmatpush1.msra.mxu0 %v6664_v42  ;;  %4849 = vmatpush3.msra.mxu1 %v6873_v11 }
 0x555   :  { %1579 = vmatprep.subr.mxu0 %v6671_v24  ;;  %4850 = vmatprep.subr.mxu1 %v8804_v25 }
 0x556   :  { %1580 = vmatpush1.msra.mxu0 %v6678_v22  ;;  %4851 = vmatpush3.msra.mxu1 %v6882_v14 }
 0x557   :  { %1581 = vmatprep.subr.mxu0 %v6685_v27  ;;  %4852 = vmatprep.subr.mxu1 %v8804_v25 }
 0x558   :  { %1582 = vmatpush1.msra.mxu0 %v6692_v45  ;;  %4853 = vmatpush3.msra.mxu1 %v6891_v16 }
 0x559   :  { %1583 = vmatprep.subr.mxu0 %v6699_v28  ;;  %4854 = vmatprep.subr.mxu1 %v8804_v25 }
 0x55a   :  { %1584 = vmatpush1.msra.mxu0 %v6706_v43  ;;  %4855 = vmatpush3.msra.mxu1 %v6900_v54 }
 0x55b   :  { %1585 = vmatprep.subr.mxu0 %v6713_v29  ;;  %4856 = vmatprep.subr.mxu1 %v8804_v25 }
 0x55c   :  { %1586 = vmatpush1.msra.mxu0 %v6720_v60  ;;  %4857 = vmatpush3.msra.mxu1 %v6909_v17 }
 0x55d   :  { %1587 = vmatprep.subr.mxu0 %v6727_v30  ;;  %4858 = vmatprep.subr.mxu1 %v8804_v25 }
 0x55e   :  { %1588 = vmatpush1.msra.mxu0 %v6734_v46  ;;  %4859 = vmatpush3.msra.mxu1 %v8843_v0 }
 0x55f   :  { %1589 = vmatprep.subr.mxu0 %v8844_v52  ;;  %4860 = vmatprep.subr.mxu1 %v8804_v25  ;;  %v8856_v52 = vld [vmem:[#allocation24_spill] sm:$0xff] }
 0x560   :  { %1590 = vmatpush1.msra.mxu0 %v8845_v53  ;;  %4861 = vmatpush3.msra.mxu1 %v8846_v57 }
 0x561   :  { %1591 = vmatprep.subr.mxu0 %v8847_v19  ;;  %4862 = vmatprep.subr.mxu1 %v8804_v25 }
 0x562   :  { %1592 = vmatpush1.msra.mxu0 %v8848_v58  ;;  %4863 = vmatpush3.msra.mxu1 %v8849_v44 }
 0x563   :  { %1593 = vmatprep.subr.mxu0 %v8850_v35  ;;  %4864 = vmatprep.subr.mxu1 %v8804_v25 }
 0x564   :  { %1594 = vmatpush1.msra.mxu0 %v8851_v32  ;;  %1627 = vmatprep.mubr.f32.mxu0 %v8804_v25  ;;  %v8855_v32 = vld [vmem:[#allocation21_spill] sm:$0xff] }
 0x565   :  { %4865 = vmatpush3.msra.mxu1 %v8852_v20  ;;  %4866 = vmatprep.mubr.msk.f32.mxu1 %vm5723_vm0, %v8804_v25 }
 0x566   :  { %1773 = vmatprep.subr.mxu0 %v8853_v50  ;;  %4869 = vmatprep.subr.mxu1 %v8804_v25 }
 0x605   :  { %v1419_v56 = vpop.f32.mrf.mxu0  ;;  %v1490_v23 = vpop.f32.mrf.mxu1 }
 0x606   :  { %v1420_v47 = vadd.f32 %v1419_v56, %v8854_v63 }
 0x607   :  { %v1421_v59 = vpop.f32.mrf.mxu0  ;;  %v4833_v61 = vpop.f32.mrf.mxu1 }
 0x608   :  { %v1495_v40 = vrot.slane %v1420_v47, 3  ;;  %v1496_v35 = vrot.slane %v1420_v47, 4  ;;  %v1422_v44 = vadd.f32 %v1421_v59, %v8855_v32 }
 0x60a   :  { %v1499_v58 = vadd.f32 %v1495_v40, %v8829_v10  ;;  %v1500_v20 = vadd.f32 %v1496_v35, %v8830_v13  ;;  %v1514_v53 = vrot.slane %v1422_v44, 3  ;;  %v1515_v50 = vrot.slane %v1422_v44, 4 }
 0x60b   :  { %v1491_v44 = vadd.f32 %v1490_v23, %v8816_v41  ;;  %v1547_v23 = vrot.slane %v6974_v31, 7 }
 0x60c   :  { %v4102_v19 = vmul.f32 -1.442695, %v1499_v58  ;;  %v4103_v57 = vmul.f32 -1.442695, %v1500_v20  ;;  %v1518_v0 = vadd.f32 %v1514_v53, %v8856_v52  ;;  %v1519_v56 = vadd.f32 %v1515_v50, %v8831_v55 }
 0x60d   :  { %v1533_v20 = vrot.slane %v1491_v44, 3  ;;  %v1534_v52 = vrot.slane %v1491_v44, 4 }
 0x60e   :  { %5362 = vpow2.f32 %v4102_v19  ;;  %v4104_v63 = vmul.f32 -1.442695, %v1518_v0  ;;  %v4105_v61 = vmul.f32 -1.442695, %v1519_v56 }
 0x60f   :  { %5364 = vpow2.f32 %v4103_v57 }
 0x610   :  { %5366 = vpow2.f32 %v4104_v63 }
 0x611   :  { %5368 = vpow2.f32 %v4105_v61 }
 0x61b   :  { %v5363_v47 = vpop.eup %5362 }
 0x61c   :  { %v5365_v59 = vpop.eup %5364  ;;  %v1507_v32 = vadd.f32 1.0, %v5363_v47 }
 0x61d   :  { %v1508_v40 = vadd.f32 1.0, %v5365_v59  ;;  %v5367_v58 = vpop.eup %5366 }
 0x61e   :  { %5370 = vrcp.f32 %v1507_v32  ;;  %v5369_v35 = vpop.eup %5368  ;;  %v1526_v19 = vadd.f32 1.0, %v5367_v58 }
 0x61f   :  { %5372 = vrcp.f32 %v1508_v40  ;;  %v1527_v57 = vadd.f32 1.0, %v5369_v35  ;;  %v1548_v35 = vrot.slane %v6976_v49, 7 }
 0x620   :  { %5374 = vrcp.f32 %v1526_v19 }
 0x621   :  { %5376 = vrcp.f32 %v1527_v57 }
 0x62b   :  { %v5371_v53 = vpop.eup %5370 }
 0x62c   :  { %v5373_v50 = vpop.eup %5372  ;;  %v1537_v0 = vmul.f32 %v5371_v53, %v1533_v20 }
 0x62d   :  { %v1538_v63 = vmul.f32 %v5373_v50, %v1534_v52  ;;  %v5375_v32 = vpop.eup %5374 }
 0x62e   :  { %v1539_v56 = vadd.f32 %v1537_v0, %v6353_v39  ;;  %v5377_v47 = vpop.eup %5376  ;;  %v1543_v59 = vsub.f32 1.0, %v5375_v32  ;;  %v1551_v19 = vmul.f32 %v5375_v32, %v1547_v23 }
 0x62f   :  { %v1540_v61 = vadd.f32 %v1538_v63, %v6355_v38  ;;  %v1544_v58 = vsub.f32 1.0, %v5377_v47  ;;  %v1552_v57 = vmul.f32 %v5377_v47, %v1548_v35 }
 0x630   :  { %5378 = vtanh.f32 %v1539_v56 }
 0x631   :  { %5380 = vtanh.f32 %v1540_v61 }
 0x63d   :  { %v5379_v40 = vpop.eup %5378 }
 0x63e   :  { %v5381_v44 = vpop.eup %5380  ;;  %v1545_v20 = vmul.f32 %v5379_v40, %v1543_v59 }
 0x63f   :  { %v1546_v52 = vmul.f32 %v5381_v44, %v1544_v58 }
 0x640   :  { %v7067_v53 = vadd.f32 %v1551_v19, %v1545_v20 }
 0x641   :  { %v7069_v50 = vadd.f32 %v1552_v57, %v1546_v52 }
 0x642   :  { %1555 = vst [vmem:[%s8660_s7] sm:$0x20] %v7067_v53  ;;  %v1559_v31 = vrot.slane %v7067_v53, 5  ;;  %v1757_v57 = vrot.slane %v7067_v53, 7 }
 0x643   :  { %1556 = vst [vmem:[%s8660_s7 + $0x10] sm:$0x20] %v7069_v50  ;;  %v1560_v49 = vrot.slane %v7069_v50, 4 }
 0x645   :  { %v1561_v0 = vsel %vm515_vm1, %v1560_v49, %v1559_v31 }
 0x646   :  { %1628 = vmatmul.mubr.f32.vlgmr.msra.gmra.mxu0 %v1561_v0  ;;  %4867 = vmatmul.mubr.f32.vlgmr.msra.gmra.mxu1 %v1561_v0  ;;  %v1758_v0 = vrot.slane %v7069_v50, 7 }
 0x647   :  { %1774 = vmatpush1.msra.mxu0 %v6566_v48  ;;  %4870 = vmatpush3.msra.mxu1 %v6810_v1  ;;  %v8857_v48 = vld [vmem:[#allocation12_spill] sm:$0xff] }
 0x648   :  { %1775 = vmatprep.subr.mxu0 %v6573_v37  ;;  %4871 = vmatprep.subr.mxu1 %v8804_v25  ;;  %v8858_v37 = vld [vmem:[#allocation27_spill] sm:$0xff] }
 0x649   :  { %1776 = vmatpush1.msra.mxu0 %v6580_v26  ;;  %4872 = vmatpush3.msra.mxu1 %v6819_v2  ;;  %v8859_v26 = vld [vmem:[#allocation9_spill] sm:$0xff]  ;;  %v8869_v2 = vld [vmem:[#allocation24_spill] sm:$0xff] }
 0x64a   :  { %1777 = vmatprep.subr.mxu0 %v6587_v6  ;;  %4873 = vmatprep.subr.mxu1 %v8804_v25  ;;  %v8860_v6 = vld [vmem:[#allocation16_spill] sm:$0xff] }
 0x64b   :  { %1778 = vmatpush1.msra.mxu0 %v6594_v51  ;;  %4874 = vmatpush3.msra.mxu1 %v6828_v3  ;;  %v8861_v51 = vld [vmem:[#allocation10_spill] sm:$0xff] }
 0x64c   :  { %1779 = vmatprep.subr.mxu0 %v6601_v9  ;;  %4875 = vmatprep.subr.mxu1 %v8804_v25  ;;  %v8862_v9 = vld [vmem:[#allocation15_spill] sm:$0xff] }
 0x64d   :  { %1780 = vmatpush1.msra.mxu0 %v6608_v36  ;;  %4876 = vmatpush3.msra.mxu1 %v6837_v62  ;;  %v8863_v36 = vld [vmem:[#allocation13_spill] sm:$0xff] }
 0x64e   :  { %1781 = vmatprep.subr.mxu0 %v6615_v12  ;;  %4877 = vmatprep.subr.mxu1 %v8804_v25  ;;  %v8864_v12 = vld [vmem:[#allocation14_spill] sm:$0xff] }
 0x64f   :  { %1782 = vmatpush1.msra.mxu0 %v6622_v33  ;;  %4878 = vmatpush3.msra.mxu1 %v6846_v5  ;;  %v8865_v33 = vld [vmem:[#allocation17_spill] sm:$0xff] }
 0x650   :  { %1783 = vmatprep.subr.mxu0 %v6629_v15  ;;  %4879 = vmatprep.subr.mxu1 %v8804_v25  ;;  %v8866_v15 = vld [vmem:[#allocation8_spill] sm:$0xff] }
 0x651   :  { %1784 = vmatpush1.msra.mxu0 %v6636_v34  ;;  %4880 = vmatpush3.msra.mxu1 %v6855_v7 }
 0x652   :  { %1785 = vmatprep.subr.mxu0 %v6643_v18  ;;  %4881 = vmatprep.subr.mxu1 %v8804_v25 }
 0x653   :  { %1786 = vmatpush1.msra.mxu0 %v6650_v4  ;;  %4882 = vmatpush3.msra.mxu1 %v6864_v8  ;;  %v8867_v4 = vld [vmem:[#allocation19_spill] sm:$0xff] }
 0x654   :  { %1787 = vmatprep.subr.mxu0 %v6657_v21  ;;  %4883 = vmatprep.subr.mxu1 %v8804_v25 }
 0x655   :  { %1788 = vmatpush1.msra.mxu0 %v6664_v42  ;;  %4884 = vmatpush3.msra.mxu1 %v6873_v11 }
 0x656   :  { %1789 = vmatprep.subr.mxu0 %v6671_v24  ;;  %4885 = vmatprep.subr.mxu1 %v8804_v25 }
 0x657   :  { %1790 = vmatpush1.msra.mxu0 %v6678_v22  ;;  %4886 = vmatpush3.msra.mxu1 %v6882_v14 }
 0x658   :  { %1791 = vmatprep.subr.mxu0 %v6685_v27  ;;  %4887 = vmatprep.subr.mxu1 %v8804_v25 }
 0x659   :  { %1792 = vmatpush1.msra.mxu0 %v6692_v45  ;;  %4888 = vmatpush3.msra.mxu1 %v6891_v16  ;;  %v8868_v45 = vld [vmem:[#allocation21_spill] sm:$0xff] }
 0x65a   :  { %1793 = vmatprep.subr.mxu0 %v6699_v28  ;;  %4889 = vmatprep.subr.mxu1 %v8804_v25 }
 0x65b   :  { %1794 = vmatpush1.msra.mxu0 %v6706_v43  ;;  %4890 = vmatpush3.msra.mxu1 %v6900_v54 }
 0x65c   :  { %1795 = vmatprep.subr.mxu0 %v6713_v29  ;;  %4891 = vmatprep.subr.mxu1 %v8804_v25 }
 0x65d   :  { %1796 = vmatpush1.msra.mxu0 %v6720_v60  ;;  %4892 = vmatpush3.msra.mxu1 %v6909_v17 }
 0x65e   :  { %1797 = vmatprep.subr.mxu0 %v6727_v30  ;;  %4893 = vmatprep.subr.mxu1 %v8804_v25 }
 0x65f   :  { %1798 = vmatpush1.msra.mxu0 %v6734_v46  ;;  %4894 = vmatpush3.msra.mxu1 %v8857_v48 }
 0x660   :  { %1799 = vmatprep.subr.mxu0 %v8858_v37  ;;  %4895 = vmatprep.subr.mxu1 %v8804_v25 }
 0x661   :  { %1800 = vmatpush1.msra.mxu0 %v8859_v26  ;;  %4896 = vmatpush3.msra.mxu1 %v8860_v6 }
 0x662   :  { %1801 = vmatprep.subr.mxu0 %v8861_v51  ;;  %4897 = vmatprep.subr.mxu1 %v8804_v25 }
 0x663   :  { %1802 = vmatpush1.msra.mxu0 %v8862_v9  ;;  %4898 = vmatpush3.msra.mxu1 %v8863_v36 }
 0x664   :  { %1803 = vmatprep.subr.mxu0 %v8864_v12  ;;  %4899 = vmatprep.subr.mxu1 %v8804_v25 }
 0x665   :  { %1804 = vmatpush1.msra.mxu0 %v8865_v33  ;;  %1837 = vmatprep.mubr.f32.mxu0 %v8804_v25  ;;  %v4160_v33 = vld [vmem:[%s8654_s1 + $0x2f0] sm:$0xff] }
 0x666   :  { %4900 = vmatpush3.msra.mxu1 %v8866_v15  ;;  %4901 = vmatprep.mubr.msk.f32.mxu1 %vm5723_vm0, %v8804_v25  ;;  %v4159_v15 = vld [vmem:[%s8654_s1 + $0x2e8] sm:$0xff] }
 0x667   :  { %2097 = vmatprep.subr.mxu0 %v4160_v33 }
 0x706   :  { %v1629_v34 = vpop.f32.mrf.mxu0  ;;  %v1700_v18 = vpop.f32.mrf.mxu1 }
 0x707   :  { %v1630_v21 = vadd.f32 %v1629_v34, %v8867_v4  ;;  %v1701_v63 = vadd.f32 %v1700_v18, %v8816_v41  ;;  %v4157_v34 = vld [vmem:[%s8654_s1 + $0x2d8] sm:$0xff] }
 0x708   :  { %v1631_v42 = vpop.f32.mrf.mxu0  ;;  %v4868_v24 = vpop.f32.mrf.mxu1  ;;  %v4161_v18 = vld [vmem:[%s8654_s1 + $0x2f8] sm:$0xff] }
 0x709   :  { %v1705_v22 = vrot.slane %v1630_v21, 2  ;;  %v1706_v27 = vrot.slane %v1630_v21, 3  ;;  %v1632_v28 = vadd.f32 %v1631_v42, %v8868_v45  ;;  %v1743_v32 = vrot.slane %v1701_v63, 2  ;;  %4904 = vmatprep.subr.mxu1 %v4161_v18  ;;  %v4156_v21 = vld [vmem:[%s8654_s1 + $0x2d0] sm:$0xff]  ;;  %v4154_v42 = vld [vmem:[%s8654_s1 + $0x2c0] sm:$0xff] }
 0x70a   :  { %v1744_v59 = vrot.slane %v1701_v63, 3  ;;  %v4158_v24 = vld [vmem:[%s8654_s1 + $0x2e0] sm:$0xff]  ;;  %v4133_v63 = vld [vmem:[%s8654_s1 + $0x218] sm:$0xff] }
 0x70b   :  { %v1709_v43 = vadd.f32 %v1705_v22, %v8829_v10  ;;  %v1710_v29 = vadd.f32 %v1706_v27, %v8830_v13  ;;  %v1724_v46 = vrot.slane %v1632_v28, 2  ;;  %v1725_v1 = vrot.slane %v1632_v28, 3  ;;  %v4153_v22 = vld [vmem:[%s8654_s1 + $0x2b8] sm:$0xff]  ;;  %v4151_v27 = vld [vmem:[%s8654_s1 + $0x2a8] sm:$0xff] }
 0x70c   :  { %v4155_v28 = vld [vmem:[%s8654_s1 + $0x2c8] sm:$0xff] }
 0x70d   :  { %v4106_v60 = vmul.f32 -1.442695, %v1709_v43  ;;  %v4107_v30 = vmul.f32 -1.442695, %v1710_v29  ;;  %v1728_v3 = vadd.f32 %v1724_v46, %v8869_v2  ;;  %v1729_v62 = vadd.f32 %v1725_v1, %v8831_v55  ;;  %v4150_v43 = vld [vmem:[%s8654_s1 + $0x2a0] sm:$0xff]  ;;  %v4148_v29 = vld [vmem:[%s8654_s1 + $0x290] sm:$0xff] }
 0x70e   :  { %v4145_v46 = vld [vmem:[%s8654_s1 + $0x278] sm:$0xff] }
 0x70f   :  { %5382 = vpow2.f32 %v4106_v60  ;;  %v4108_v5 = vmul.f32 -1.442695, %v1728_v3  ;;  %v4109_v7 = vmul.f32 -1.442695, %v1729_v62  ;;  %v4152_v60 = vld [vmem:[%s8654_s1 + $0x2b0] sm:$0xff]  ;;  %v4149_v1 = vld [vmem:[%s8654_s1 + $0x298] sm:$0xff] }
 0x710   :  { %5384 = vpow2.f32 %v4107_v30  ;;  %v4147_v30 = vld [vmem:[%s8654_s1 + $0x288] sm:$0xff]  ;;  %v4144_v3 = vld [vmem:[%s8654_s1 + $0x270] sm:$0xff]  ;;  %v4142_v62 = vld [vmem:[%s8654_s1 + $0x260] sm:$0xff] }
 0x711   :  { %5386 = vpow2.f32 %v4108_v5  ;;  %v4146_v5 = vld [vmem:[%s8654_s1 + $0x280] sm:$0xff] }
 0x712   :  { %5388 = vpow2.f32 %v4109_v7  ;;  %v4141_v7 = vld [vmem:[%s8654_s1 + $0x258] sm:$0xff] }
 0x71c   :  { %v5383_v8 = vpop.eup %5382 }
 0x71d   :  { %v5385_v11 = vpop.eup %5384  ;;  %v1717_v14 = vadd.f32 1.0, %v5383_v8  ;;  %v4139_v8 = vld [vmem:[%s8654_s1 + $0x248] sm:$0xff] }
 0x71e   :  { %v1718_v16 = vadd.f32 1.0, %v5385_v11  ;;  %v5387_v54 = vpop.eup %5386  ;;  %v4143_v11 = vld [vmem:[%s8654_s1 + $0x268] sm:$0xff] }
 0x71f   :  { %5390 = vrcp.f32 %v1717_v14  ;;  %v5389_v17 = vpop.eup %5388  ;;  %v1736_v56 = vadd.f32 1.0, %v5387_v54  ;;  %v4138_v14 = vld [vmem:[%s8654_s1 + $0x240] sm:$0xff]  ;;  %v4140_v54 = vld [vmem:[%s8654_s1 + $0x250] sm:$0xff] }
 0x720   :  { %5392 = vrcp.f32 %v1718_v16  ;;  %v1737_v61 = vadd.f32 1.0, %v5389_v17  ;;  %v4136_v16 = vld [vmem:[%s8654_s1 + $0x230] sm:$0xff]  ;;  %v4135_v17 = vld [vmem:[%s8654_s1 + $0x228] sm:$0xff] }
 0x721   :  { %5394 = vrcp.f32 %v1736_v56  ;;  %v4137_v56 = vld [vmem:[%s8654_s1 + $0x238] sm:$0xff] }
 0x722   :  { %5396 = vrcp.f32 %v1737_v61  ;;  %v4132_v61 = vld [vmem:[%s8654_s1 + $0x210] sm:$0xff] }
 0x72c   :  { %v5391_v47 = vpop.eup %5390 }
 0x72d   :  { %v5393_v23 = vpop.eup %5392  ;;  %v1747_v40 = vmul.f32 %v5391_v47, %v1743_v32  ;;  %v4130_v32 = vld [vmem:[%s8654_s1 + $0x200] sm:$0xff] }
 0x72e   :  { %v1748_v58 = vmul.f32 %v5393_v23, %v1744_v59  ;;  %v5395_v20 = vpop.eup %5394  ;;  %v4134_v47 = vld [vmem:[%s8654_s1 + $0x220] sm:$0xff]  ;;  %v4129_v59 = vld [vmem:[%s8654_s1 + $0x1f8] sm:$0xff]  ;;  %v4127_v23 = vld [vmem:[%s8654_s1 + $0x1e8] sm:$0xff] }
 0x72f   :  { %v1749_v35 = vadd.f32 %v1747_v40, %v6353_v39  ;;  %v5397_v19 = vpop.eup %5396  ;;  %v1753_v52 = vsub.f32 1.0, %v5395_v20  ;;  %v1761_v26 = vmul.f32 %v5395_v20, %v1757_v57  ;;  %v4131_v40 = vld [vmem:[%s8654_s1 + $0x208] sm:$0xff]  ;;  %v4120_v57 = vld [vmem:[%s8654_s1 + $0x1b0] sm:$0xff] }
 0x730   :  { %v1750_v44 = vadd.f32 %v1748_v58, %v6355_v38  ;;  %v1754_v49 = vsub.f32 1.0, %v5397_v19  ;;  %v1762_v51 = vmul.f32 %v5397_v19, %v1758_v0  ;;  %v4126_v58 = vld [vmem:[%s8654_s1 + $0x1e0] sm:$0xff]  ;;  %v4123_v20 = vld [vmem:[%s8654_s1 + $0x1c8] sm:$0xff]  ;;  %v4121_v19 = vld [vmem:[%s8654_s1 + $0x1b8] sm:$0xff] }
 0x731   :  { %5398 = vtanh.f32 %v1749_v35  ;;  %v4124_v35 = vld [vmem:[%s8654_s1 + $0x1d0] sm:$0xff]  ;;  %v4117_v0 = vld [vmem:[%s8654_s1 + $0x198] sm:$0xff] }
 0x732   :  { %5400 = vtanh.f32 %v1750_v44  ;;  %v4128_v44 = vld [vmem:[%s8654_s1 + $0x1f0] sm:$0xff] }
 0x73e   :  { %v5399_v31 = vpop.eup %5398 }
 0x73f   :  { %v5401_v48 = vpop.eup %5400  ;;  %v1755_v37 = vmul.f32 %v5399_v31, %v1753_v52  ;;  %v4125_v52 = vld [vmem:[%s8654_s1 + $0x1d8] sm:$0xff]  ;;  %v4118_v31 = vld [vmem:[%s8654_s1 + $0x1a0] sm:$0xff] }
 0x740   :  { %v1756_v6 = vmul.f32 %v5401_v48, %v1754_v49  ;;  %v4122_v49 = vld [vmem:[%s8654_s1 + $0x1c0] sm:$0xff]  ;;  %v4115_v48 = vld [vmem:[%s8654_s1 + $0x188] sm:$0xff] }
 0x741   :  { %v7158_v9 = vadd.f32 %v1761_v26, %v1755_v37  ;;  %v4119_v37 = vld [vmem:[%s8654_s1 + $0x1a8] sm:$0xff]  ;;  %v4114_v26 = vld [vmem:[%s8654_s1 + $0x180] sm:$0xff] }
 0x742   :  { %v7160_v36 = vadd.f32 %v1762_v51, %v1756_v6  ;;  %v4116_v6 = vld [vmem:[%s8654_s1 + $0x190] sm:$0xff] }
 0x743   :  { %1765 = vst [vmem:[%s8660_s7] sm:$0x40] %v7158_v9  ;;  %v1769_v53 = vrot.slane %v7158_v9, 6  ;;  %v7321_v51 = vld [vmem:[%s8655_s2 + $0x2f0] sm:$0xff] }
 0x744   :  { %1766 = vst [vmem:[%s8660_s7 + $0x10] sm:$0x40] %v7160_v36  ;;  %v1770_v50 = vrot.slane %v7160_v36, 5  ;;  %8870 = vst [vmem:[#allocation22_spill] sm:$0xff] %v7321_v51 }
 0x746   :  { %v1771_v12 = vsel %vm515_vm1, %v1770_v50, %v1769_v53 }
 0x747   :  { %1838 = vmatmul.mubr.f32.vlgmr.msra.gmra.mxu0 %v1771_v12  ;;  %4902 = vmatmul.mubr.f32.vlgmr.msra.gmra.mxu1 %v1771_v12 }
 0x748   :  { %2161 = vmatprep.mubr.f32.mxu0 %v8804_v25  ;;  %2098 = vmatpush1.msra.mxu0 %v4159_v15 }
 0x749   :  { %2099 = vmatprep.subr.mxu0 %v4157_v34  ;;  %4905 = vmatpush3.msra.mxu1 %v4161_v18 }
 0x74a   :  { %2100 = vmatpush1.msra.mxu0 %v4156_v21  ;;  %4906 = vmatprep.subr.mxu1 %v4158_v24 }
 0x74b   :  { %2101 = vmatprep.subr.mxu0 %v4154_v42  ;;  %4907 = vmatpush3.msra.mxu1 %v4158_v24 }
 0x74c   :  { %2102 = vmatpush1.msra.mxu0 %v4153_v22  ;;  %4908 = vmatprep.subr.mxu1 %v4155_v28 }
 0x74d   :  { %2103 = vmatprep.subr.mxu0 %v4151_v27  ;;  %4909 = vmatpush3.msra.mxu1 %v4155_v28 }
 0x74e   :  { %2104 = vmatpush1.msra.mxu0 %v4150_v43  ;;  %4910 = vmatprep.subr.mxu1 %v4152_v60 }
 0x74f   :  { %2105 = vmatprep.subr.mxu0 %v4148_v29  ;;  %4911 = vmatpush3.msra.mxu1 %v4152_v60 }
 0x750   :  { %2106 = vmatpush1.msra.mxu0 %v4147_v30  ;;  %4912 = vmatprep.subr.mxu1 %v4149_v1 }
 0x751   :  { %2107 = vmatprep.subr.mxu0 %v4145_v46  ;;  %4913 = vmatpush3.msra.mxu1 %v4149_v1 }
 0x752   :  { %2108 = vmatpush1.msra.mxu0 %v4144_v3  ;;  %4914 = vmatprep.subr.mxu1 %v4146_v5 }
 0x753   :  { %2109 = vmatprep.subr.mxu0 %v4142_v62  ;;  %4915 = vmatpush3.msra.mxu1 %v4146_v5 }
 0x754   :  { %2110 = vmatpush1.msra.mxu0 %v4141_v7  ;;  %4916 = vmatprep.subr.mxu1 %v4143_v11 }
 0x755   :  { %2111 = vmatprep.subr.mxu0 %v4139_v8  ;;  %4917 = vmatpush3.msra.mxu1 %v4143_v11 }
 0x756   :  { %2112 = vmatpush1.msra.mxu0 %v4138_v14  ;;  %4918 = vmatprep.subr.mxu1 %v4140_v54 }
 0x757   :  { %2113 = vmatprep.subr.mxu0 %v4136_v16  ;;  %4919 = vmatpush3.msra.mxu1 %v4140_v54 }
 0x758   :  { %2114 = vmatpush1.msra.mxu0 %v4135_v17  ;;  %4920 = vmatprep.subr.mxu1 %v4137_v56 }
 0x759   :  { %2115 = vmatprep.subr.mxu0 %v4133_v63  ;;  %4921 = vmatpush3.msra.mxu1 %v4137_v56 }
 0x75a   :  { %2116 = vmatpush1.msra.mxu0 %v4132_v61  ;;  %4922 = vmatprep.subr.mxu1 %v4134_v47 }
 0x75b   :  { %2117 = vmatprep.subr.mxu0 %v4130_v32  ;;  %4923 = vmatpush3.msra.mxu1 %v4134_v47  ;;  %v1968_v47 = vrot.slane %v7160_v36, 7  ;;  %v7353_v36 = vld [vmem:[%s8655_s2 + $0x2d8] sm:$0xff] }
 0x75c   :  { %2118 = vmatpush1.msra.mxu0 %v4129_v59  ;;  %4924 = vmatprep.subr.mxu1 %v4131_v40 }
 0x75d   :  { %2119 = vmatprep.subr.mxu0 %v4127_v23  ;;  %4925 = vmatpush3.msra.mxu1 %v4131_v40 }
 0x75e   :  { %2120 = vmatpush1.msra.mxu0 %v4126_v58  ;;  %4926 = vmatprep.subr.mxu1 %v4128_v44 }
 0x75f   :  { %2121 = vmatprep.subr.mxu0 %v4124_v35  ;;  %4927 = vmatpush3.msra.mxu1 %v4128_v44 }
 0x760   :  { %2122 = vmatpush1.msra.mxu0 %v4123_v20  ;;  %4928 = vmatprep.subr.mxu1 %v4125_v52 }
 0x761   :  { %2123 = vmatprep.subr.mxu0 %v4121_v19  ;;  %4929 = vmatpush3.msra.mxu1 %v4125_v52  ;;  %v7361_v52 = vld [vmem:[%s8655_s2 + $0x2d0] sm:$0xff] }
 0x762   :  { %2124 = vmatpush1.msra.mxu0 %v4120_v57  ;;  %4930 = vmatprep.subr.mxu1 %v4122_v49  ;;  %v7366_v57 = vld [vmem:[%s8655_s2 + $0x2f8] sm:$0xff] }
 0x763   :  { %2125 = vmatprep.subr.mxu0 %v4118_v31  ;;  %4931 = vmatpush3.msra.mxu1 %v4122_v49  ;;  %v7372_v31 = vld [vmem:[%s8655_s2 + $0x2c0] sm:$0xff]  ;;  %v7379_v49 = vld [vmem:[%s8655_s2 + $0x2b8] sm:$0xff] }
 0x764   :  { %2126 = vmatpush1.msra.mxu0 %v4117_v0  ;;  %4932 = vmatprep.subr.mxu1 %v4119_v37  ;;  %v7385_v0 = vld [vmem:[%s8655_s2 + $0x2a8] sm:$0xff] }
 0x765   :  { %2127 = vmatprep.subr.mxu0 %v4115_v48  ;;  %4933 = vmatpush3.msra.mxu1 %v4119_v37  ;;  %v7392_v48 = vld [vmem:[%s8655_s2 + $0x2a0] sm:$0xff] }
 0x766   :  { %2128 = vmatpush1.msra.mxu0 %v4114_v26  ;;  %4934 = vmatprep.subr.mxu1 %v4116_v6  ;;  %v7397_v37 = vld [vmem:[%s8655_s2 + $0x2e0] sm:$0xff]  ;;  %v7403_v26 = vld [vmem:[%s8655_s2 + $0x290] sm:$0xff] }
 0x767   :  { %2265 = vmatprep.subr.mxu0 %v7321_v51  ;;  %4935 = vmatpush3.msra.mxu1 %v4116_v6  ;;  %v7410_v6 = vld [vmem:[%s8655_s2 + $0x288] sm:$0xff] }
 0x768   :  { %4939 = vmatprep.subr.mxu1 %v8804_v25 }
 0x807   :  { %v1839_v53 = vpop.f32.mrf.mxu0  ;;  %v1910_v50 = vpop.f32.mrf.mxu1 }
 0x808   :  { %v1840_v12 = vadd.f32 %v1839_v53, %v8867_v4  ;;  %v1911_v62 = vadd.f32 %v1910_v50, %v8816_v41  ;;  %v1967_v41 = vrot.slane %v7158_v9, 7  ;;  %v7416_v53 = vld [vmem:[%s8655_s2 + $0x2c8] sm:$0xff]  ;;  %v7422_v50 = vld [vmem:[%s8655_s2 + $0x278] sm:$0xff] }
 0x809   :  { %v1841_v33 = vpop.f32.mrf.mxu0  ;;  %v4903_v15 = vpop.f32.mrf.mxu1 }
 0x80a   :  { %v1915_v34 = vrot.slane %v1840_v12, 1  ;;  %v1916_v18 = vrot.slane %v1840_v12, 2  ;;  %v1842_v21 = vadd.f32 %v1841_v33, %v8868_v45  ;;  %v1953_v8 = vrot.slane %v1911_v62, 1  ;;  %v7429_v12 = vld [vmem:[%s8655_s2 + $0x270] sm:$0xff]  ;;  %v7441_v15 = vld [vmem:[%s8655_s2 + $0x260] sm:$0xff] }
 0x80b   :  { %v1954_v11 = vrot.slane %v1911_v62, 2  ;;  %v7435_v33 = vld [vmem:[%s8655_s2 + $0x2b0] sm:$0xff]  ;;  %v7568_v62 = vld [vmem:[%s8655_s2 + $0x208] sm:$0xff] }
 0x80c   :  { %v1919_v42 = vadd.f32 %v1915_v34, %v8829_v10  ;;  %v1920_v24 = vadd.f32 %v1916_v18, %v8830_v13  ;;  %v1934_v28 = vrot.slane %v1842_v21, 1  ;;  %v1935_v43 = vrot.slane %v1842_v21, 2  ;;  %v7448_v34 = vld [vmem:[%s8655_s2 + $0x258] sm:$0xff]  ;;  %v7460_v21 = vld [vmem:[%s8655_s2 + $0x248] sm:$0xff] }
 0x80d   :  { %v7454_v18 = vld [vmem:[%s8655_s2 + $0x298] sm:$0xff] }
 0x80e   :  { %v4110_v22 = vmul.f32 -1.442695, %v1919_v42  ;;  %v4111_v27 = vmul.f32 -1.442695, %v1920_v24  ;;  %v1938_v29 = vadd.f32 %v1934_v28, %v8869_v2  ;;  %v1939_v4 = vadd.f32 %v1935_v43, %v8831_v55  ;;  %v7467_v42 = vld [vmem:[%s8655_s2 + $0x240] sm:$0xff]  ;;  %v7492_v28 = vld [vmem:[%s8655_s2 + $0x268] sm:$0xff] }
 0x80f   :  { %v7473_v24 = vld [vmem:[%s8655_s2 + $0x280] sm:$0xff]  ;;  %v7498_v43 = vld [vmem:[%s8655_s2 + $0x218] sm:$0xff] }
 0x810   :  { %5402 = vpow2.f32 %v4110_v22  ;;  %v4112_v60 = vmul.f32 -1.442695, %v1938_v29  ;;  %v4113_v30 = vmul.f32 -1.442695, %v1939_v4  ;;  %v7479_v22 = vld [vmem:[%s8655_s2 + $0x230] sm:$0xff] }
 0x811   :  { %5404 = vpow2.f32 %v4111_v27  ;;  %v7486_v27 = vld [vmem:[%s8655_s2 + $0x228] sm:$0xff]  ;;  %v7505_v29 = vld [vmem:[%s8655_s2 + $0x210] sm:$0xff] }
 0x812   :  { %5406 = vpow2.f32 %v4112_v60  ;;  %v7511_v4 = vld [vmem:[%s8655_s2 + $0x250] sm:$0xff]  ;;  %v7517_v60 = vld [vmem:[%s8655_s2 + $0x200] sm:$0xff] }
 0x813   :  { %5408 = vpow2.f32 %v4113_v30  ;;  %v7524_v30 = vld [vmem:[%s8655_s2 + $0x1f8] sm:$0xff] }
 0x81d   :  { %v5403_v46 = vpop.eup %5402 }
 0x81e   :  { %v5405_v45 = vpop.eup %5404  ;;  %v1927_v1 = vadd.f32 1.0, %v5403_v46  ;;  %v7530_v46 = vld [vmem:[%s8655_s2 + $0x238] sm:$0xff] }
 0x81f   :  { %v1928_v10 = vadd.f32 1.0, %v5405_v45  ;;  %v5407_v13 = vpop.eup %5406  ;;  %v7536_v45 = vld [vmem:[%s8655_s2 + $0x1e8] sm:$0xff] }
 0x820   :  { %5410 = vrcp.f32 %v1927_v1  ;;  %v5409_v3 = vpop.eup %5408  ;;  %v1946_v5 = vadd.f32 1.0, %v5407_v13  ;;  %v7543_v1 = vld [vmem:[%s8655_s2 + $0x1e0] sm:$0xff]  ;;  %v7555_v13 = vld [vmem:[%s8655_s2 + $0x1d0] sm:$0xff] }
 0x821   :  { %5412 = vrcp.f32 %v1928_v10  ;;  %v1947_v7 = vadd.f32 1.0, %v5409_v3  ;;  %v7549_v10 = vld [vmem:[%s8655_s2 + $0x220] sm:$0xff]  ;;  %v7562_v3 = vld [vmem:[%s8655_s2 + $0x1c8] sm:$0xff] }
 0x822   :  { %5414 = vrcp.f32 %v1946_v5  ;;  %v7574_v5 = vld [vmem:[%s8655_s2 + $0x1b8] sm:$0xff] }
 0x823   :  { %5416 = vrcp.f32 %v1947_v7  ;;  %8871 = vst [vmem:[#allocation23_spill] sm:$0xff] %v7574_v5  ;;  %v7581_v7 = vld [vmem:[%s8655_s2 + $0x1b0] sm:$0xff] }
 0x824   :  { %8872 = vst [vmem:[#allocation25_spill] sm:$0xff] %v7581_v7 }
 0x82d   :  { %v5411_v2 = vpop.eup %5410 }
 0x82e   :  { %v5413_v55 = vpop.eup %5412  ;;  %v1957_v14 = vmul.f32 %v5411_v2, %v1953_v8  ;;  %v7587_v8 = vld [vmem:[%s8655_s2 + $0x1f0] sm:$0xff]  ;;  %v7593_v2 = vld [vmem:[%s8655_s2 + $0x1a0] sm:$0xff] }
 0x82f   :  { %v1958_v16 = vmul.f32 %v5413_v55, %v1954_v11  ;;  %v5415_v63 = vpop.eup %5414  ;;  %8873 = vst [vmem:[#allocation11_spill] sm:$0xff] %v7593_v2  ;;  %v7600_v11 = vld [vmem:[%s8655_s2 + $0x198] sm:$0xff] }
 0x830   :  { %v1959_v54 = vadd.f32 %v1957_v14, %v6353_v39  ;;  %v5417_v56 = vpop.eup %5416  ;;  %v1963_v61 = vsub.f32 1.0, %v5415_v63  ;;  %v1971_v58 = vmul.f32 %v5415_v63, %v1967_v41  ;;  %8874 = vst [vmem:[#allocation12_spill] sm:$0xff] %v7600_v11  ;;  %v7606_v55 = vld [vmem:[%s8655_s2 + $0x1d8] sm:$0xff]  ;;  %v7612_v14 = vld [vmem:[%s8655_s2 + $0x188] sm:$0xff]  ;;  %v7643_v63 = vld [vmem:[%s8655_s2 + $0x190] sm:$0xff] }
 0x831   :  { %v1960_v17 = vadd.f32 %v1958_v16, %v6355_v38  ;;  %v1964_v59 = vsub.f32 1.0, %v5417_v56  ;;  %v1972_v44 = vmul.f32 %v5417_v56, %v1968_v47  ;;  %v7345_v38 = vld [vmem:[%s8655_s2 + $0x2e8] sm:$0xff]  ;;  %8875 = vst [vmem:[#allocation27_spill] sm:$0xff] %v7612_v14  ;;  %v7619_v16 = vld [vmem:[%s8655_s2 + $0x180] sm:$0xff]  ;;  %8879 = vst [vmem:[#allocation15_spill] sm:$0xff] %v7643_v63 }
 0x832   :  { %5418 = vtanh.f32 %v1959_v54  ;;  %8876 = vst [vmem:[#allocation9_spill] sm:$0xff] %v7619_v16  ;;  %v7625_v54 = vld [vmem:[%s8655_s2 + $0x1c0] sm:$0xff] }
 0x833   :  { %5420 = vtanh.f32 %v1960_v17  ;;  %8877 = vst [vmem:[#allocation16_spill] sm:$0xff] %v7625_v54  ;;  %v7634_v17 = vld [vmem:[%s8655_s2 + $0x1a8] sm:$0xff] }
 0x834   :  { %8878 = vst [vmem:[#allocation10_spill] sm:$0xff] %v7634_v17 }
 0x83f   :  { %v5419_v32 = vpop.eup %5418 }
 0x840   :  { %v5421_v23 = vpop.eup %5420  ;;  %v1965_v40 = vmul.f32 %v5419_v32, %v1963_v61  ;;  %v4211_v61 = vld [vmem:[%s8657_s4 + $0x3] sm:$0x7] }
 0x841   :  { %v1966_v35 = vmul.f32 %v5421_v23, %v1964_v59  ;;  %v4210_v32 = vld [vmem:[%s8656_s3 + $0x3] sm:$0x7] }
 0x842   :  { %v1973_v20 = vadd.f32 %v1971_v58, %v1965_v40  ;;  %v8880_v59 = vld [vmem:[#allocation18_spill] sm:$0xff] }
 0x843   :  { %v1974_v39 = vadd.f32 %v1972_v44, %v1966_v35  ;;  %v7727_v23 = vrot.slane %v4211_v61, %v8880_v59  ;;  %v2085_v40 = vrot.slane %v4210_v32, %v8880_v59  ;;  %v8882_v44 = vld [vmem:[#allocation20_spill] sm:$0xff] }
 0x844   :  { %1975 = vst [vmem:[%s8660_s7] sm:$0x80] %v1973_v20  ;;  %v7731_v20 = vrot.slane %v4211_v61, %v8882_v44 }
 0x845   :  { %1976 = vst [vmem:[%s8660_s7 + $0x10] sm:$0x80] %v1974_v39  ;;  %8881 = vst [vmem:[#allocation13_spill] sm:$0xff] %v7727_v23 }
 0x846   :  { %8883 = vst [vmem:[#allocation14_spill] sm:$0xff] %v7731_v20 }
 0x84b   :  { %v1977_v9 = vld [vmem:[%s8660_s7] sm:$0xff] }
 0x84c   :  { %2162 = vmatmul.mubr.f32.vlgmr.msra.gmra.mxu0 %v1977_v9  ;;  %4936 = vmatprep.mubr.f32.mxu1 %v1977_v9  ;;  %v1978_v19 = vld [vmem:[%s8660_s7 + $0x10] sm:$0xff] }
 0x84d   :  { %2266 = vmatpush1.msra.mxu0 %v7345_v38  ;;  %4937 = vmatmul.mubr.f32.vlgmr.msra.gmra.mxu1 %v1978_v19 }
 0x84e   :  { %2267 = vmatprep.subr.mxu0 %v7353_v36  ;;  %2167 = vmatprep.mubr.f32.mxu0 %v8804_v25 }
 0x84f   :  { %2268 = vmatpush1.msra.mxu0 %v7361_v52  ;;  %4940 = vmatpush3.msra.mxu1 %v7366_v57 }
 0x850   :  { %2269 = vmatprep.subr.mxu0 %v7372_v31  ;;  %2168 = vmatmul.mubr.f32.gmra.mxu0 %v1978_v19 }
 0x851   :  { %2270 = vmatpush1.msra.mxu0 %v7379_v49  ;;  %2329 = vmatprep.mubr.f32.mxu0 %v8804_v25 }
 0x852   :  { %2271 = vmatprep.subr.mxu0 %v7385_v0  ;;  %4941 = vmatprep.subr.mxu1 %v8804_v25 }
 0x853   :  { %2272 = vmatpush1.msra.mxu0 %v7392_v48  ;;  %4942 = vmatpush3.msra.mxu1 %v7397_v37 }
 0x854   :  { %2273 = vmatprep.subr.mxu0 %v7403_v26  ;;  %4943 = vmatprep.subr.mxu1 %v8804_v25 }
 0x855   :  { %2274 = vmatpush1.msra.mxu0 %v7410_v6  ;;  %4944 = vmatpush3.msra.mxu1 %v7416_v53 }
 0x856   :  { %2275 = vmatprep.subr.mxu0 %v7422_v50  ;;  %4945 = vmatprep.subr.mxu1 %v8804_v25 }
 0x857   :  { %2276 = vmatpush1.msra.mxu0 %v7429_v12  ;;  %4946 = vmatpush3.msra.mxu1 %v7435_v33 }
 0x858   :  { %2277 = vmatprep.subr.mxu0 %v7441_v15  ;;  %4947 = vmatprep.subr.mxu1 %v8804_v25 }
 0x859   :  { %2278 = vmatpush1.msra.mxu0 %v7448_v34  ;;  %4948 = vmatpush3.msra.mxu1 %v7454_v18 }
 0x85a   :  { %2279 = vmatprep.subr.mxu0 %v7460_v21  ;;  %4949 = vmatprep.subr.mxu1 %v8804_v25 }
 0x85b   :  { %2280 = vmatpush1.msra.mxu0 %v7467_v42  ;;  %4950 = vmatpush3.msra.mxu1 %v7473_v24 }
 0x85c   :  { %2281 = vmatprep.subr.mxu0 %v7479_v22  ;;  %4951 = vmatprep.subr.mxu1 %v8804_v25 }
 0x85d   :  { %2282 = vmatpush1.msra.mxu0 %v7486_v27  ;;  %4952 = vmatpush3.msra.mxu1 %v7492_v28 }
 0x85e   :  { %2283 = vmatprep.subr.mxu0 %v7498_v43  ;;  %4953 = vmatprep.subr.mxu1 %v8804_v25 }
 0x85f   :  { %2284 = vmatpush1.msra.mxu0 %v7505_v29  ;;  %4954 = vmatpush3.msra.mxu1 %v7511_v4 }
 0x860   :  { %2285 = vmatprep.subr.mxu0 %v7517_v60  ;;  %4955 = vmatprep.subr.mxu1 %v8804_v25 }
 0x861   :  { %2286 = vmatpush1.msra.mxu0 %v7524_v30  ;;  %4956 = vmatpush3.msra.mxu1 %v7530_v46 }
 0x862   :  { %2287 = vmatprep.subr.mxu0 %v7536_v45  ;;  %4957 = vmatprep.subr.mxu1 %v8804_v25 }
 0x863   :  { %2288 = vmatpush1.msra.mxu0 %v7543_v1  ;;  %4958 = vmatpush3.msra.mxu1 %v7549_v10 }
 0x864   :  { %2289 = vmatprep.subr.mxu0 %v7555_v13  ;;  %4959 = vmatprep.subr.mxu1 %v8804_v25 }
 0x865   :  { %2290 = vmatpush1.msra.mxu0 %v7562_v3  ;;  %4960 = vmatpush3.msra.mxu1 %v7568_v62 }
 0x866   :  { %2291 = vmatprep.subr.mxu0 %v7574_v5  ;;  %4961 = vmatprep.subr.mxu1 %v8804_v25 }
 0x867   :  { %2292 = vmatpush1.msra.mxu0 %v7581_v7  ;;  %4962 = vmatpush3.msra.mxu1 %v7587_v8 }
 0x868   :  { %2293 = vmatprep.subr.mxu0 %v7593_v2  ;;  %4963 = vmatprep.subr.mxu1 %v8804_v25 }
 0x869   :  { %2294 = vmatpush1.msra.mxu0 %v7600_v11  ;;  %4964 = vmatpush3.msra.mxu1 %v7606_v55 }
 0x86a   :  { %2295 = vmatprep.subr.mxu0 %v7612_v14  ;;  %4965 = vmatprep.subr.mxu1 %v8804_v25 }
 0x86b   :  { %2296 = vmatpush1.msra.mxu0 %v7619_v16  ;;  %4966 = vmatpush3.msra.mxu1 %v7625_v54 }
 0x86c   :  { %2330 = vmatmul.mubr.f32.vlgmr.msra.gmra.mxu0 %v8804_v25  ;;  %4967 = vmatprep.subr.mxu1 %v8804_v25 }
 0x86d   :  { %4968 = vmatpush3.msra.mxu1 %v7634_v17  ;;  %4971 = vmatprep.mubr.msk.f32.mxu1 %vm5723_vm0, %v8804_v25 }
 0x86e   :  { %4969 = vmatprep.subr.mxu1 %v8804_v25  ;;  %2468 = vmatprep.subr.mxu0 %v7321_v51 }
 0x86f   :  { %4970 = vmatpush3.msra.mxu1 %v7643_v63  ;;  %2469 = vmatpush1.msra.mxu0 %v7345_v38 }
 0x870   :  { %4972 = vmatmul.mubr.f32.vlgmr.msra.gmra.mxu1 %v8804_v25  ;;  %4974 = vmatprep.subr.mxu1 %v8804_v25 }
 0x871   :  { %4975 = vmatpush3.msra.mxu1 %v7366_v57  ;;  %2470 = vmatprep.subr.mxu0 %v7353_v36 }
 0x872   :  { %4976 = vmatprep.subr.mxu1 %v8804_v25  ;;  %2471 = vmatpush1.msra.mxu0 %v7361_v52 }
 0x873   :  { %4977 = vmatpush3.msra.mxu1 %v7397_v37  ;;  %2472 = vmatprep.subr.mxu0 %v7372_v31 }
 0x874   :  { %4978 = vmatprep.subr.mxu1 %v8804_v25  ;;  %2473 = vmatpush1.msra.mxu0 %v7379_v49 }
 0x875   :  { %4979 = vmatpush3.msra.mxu1 %v7416_v53  ;;  %2474 = vmatprep.subr.mxu0 %v7385_v0 }
 0x876   :  { %4980 = vmatprep.subr.mxu1 %v8804_v25  ;;  %2475 = vmatpush1.msra.mxu0 %v7392_v48 }
 0x877   :  { %4981 = vmatpush3.msra.mxu1 %v7435_v33  ;;  %2476 = vmatprep.subr.mxu0 %v7403_v26 }
 0x878   :  { %4982 = vmatprep.subr.mxu1 %v8804_v25  ;;  %2477 = vmatpush1.msra.mxu0 %v7410_v6 }
 0x879   :  { %4983 = vmatpush3.msra.mxu1 %v7454_v18  ;;  %2478 = vmatprep.subr.mxu0 %v7422_v50 }
 0x87a   :  { %4984 = vmatprep.subr.mxu1 %v8804_v25  ;;  %2479 = vmatpush1.msra.mxu0 %v7429_v12 }
 0x87b   :  { %4985 = vmatpush3.msra.mxu1 %v7473_v24  ;;  %2480 = vmatprep.subr.mxu0 %v7441_v15 }
 0x87c   :  { %4986 = vmatprep.subr.mxu1 %v8804_v25  ;;  %2481 = vmatpush1.msra.mxu0 %v7448_v34 }
 0x87d   :  { %4987 = vmatpush3.msra.mxu1 %v7492_v28  ;;  %2482 = vmatprep.subr.mxu0 %v7460_v21 }
 0x87e   :  { %4988 = vmatprep.subr.mxu1 %v8804_v25  ;;  %2483 = vmatpush1.msra.mxu0 %v7467_v42 }
 0x87f   :  { %4989 = vmatpush3.msra.mxu1 %v7511_v4  ;;  %2484 = vmatprep.subr.mxu0 %v7479_v22 }
 0x880   :  { %4990 = vmatprep.subr.mxu1 %v8804_v25  ;;  %2485 = vmatpush1.msra.mxu0 %v7486_v27 }
 0x881   :  { %4991 = vmatpush3.msra.mxu1 %v7530_v46  ;;  %2486 = vmatprep.subr.mxu0 %v7498_v43 }
 0x882   :  { %4992 = vmatprep.subr.mxu1 %v8804_v25  ;;  %2487 = vmatpush1.msra.mxu0 %v7505_v29 }
 0x883   :  { %4993 = vmatpush3.msra.mxu1 %v7549_v10  ;;  %2488 = vmatprep.subr.mxu0 %v7517_v60 }
 0x884   :  { %4994 = vmatprep.subr.mxu1 %v8804_v25  ;;  %2489 = vmatpush1.msra.mxu0 %v7524_v30 }
 0x885   :  { %4995 = vmatpush3.msra.mxu1 %v7568_v62  ;;  %2490 = vmatprep.subr.mxu0 %v7536_v45 }
 0x886   :  { %4996 = vmatprep.subr.mxu1 %v8804_v25  ;;  %2491 = vmatpush1.msra.mxu0 %v7543_v1 }
 0x887   :  { %4997 = vmatpush3.msra.mxu1 %v7587_v8  ;;  %2492 = vmatprep.subr.mxu0 %v7555_v13 }
 0x888   :  { %4998 = vmatprep.subr.mxu1 %v8804_v25  ;;  %2493 = vmatpush1.msra.mxu0 %v7562_v3 }
 0x889   :  { %4999 = vmatpush3.msra.mxu1 %v7606_v55  ;;  %2494 = vmatprep.subr.mxu0 %v7574_v5 }
 0x88a   :  { %5000 = vmatprep.subr.mxu1 %v8804_v25  ;;  %2495 = vmatpush1.msra.mxu0 %v7581_v7 }
 0x88b   :  { %5001 = vmatpush3.msra.mxu1 %v7625_v54  ;;  %2496 = vmatprep.subr.mxu0 %v7593_v2 }
 0x88c   :  { %5002 = vmatprep.subr.mxu1 %v8804_v25  ;;  %2497 = vmatpush1.msra.mxu0 %v7600_v11 }
 0x88d   :  { %5003 = vmatpush3.msra.mxu1 %v7634_v17  ;;  %2498 = vmatprep.subr.mxu0 %v7612_v14 }
 0x88e   :  { %5004 = vmatprep.subr.mxu1 %v8804_v25  ;;  %2499 = vmatpush1.msra.mxu0 %v7619_v16 }
 0x88f   :  { %2532 = vmatprep.mubr.f32.mxu0 %v8804_v25  ;;  %5005 = vmatpush3.msra.mxu1 %v7643_v63 }
 0x890   :  { %5006 = vmatprep.mubr.msk.f32.mxu1 %vm5723_vm0, %v8804_v25  ;;  %2673 = vmatprep.subr.mxu0 %v7321_v51  ;;  %v2089_v51 = vrot.slane %v4210_v32, %v8882_v44 }
 0x891   :  { %5009 = vmatprep.subr.mxu1 %v8804_v25 }
 0x90c   :  { %v2163_v56 = vpop.f32.mrf.mxu0 }
 0x90d   :  { %v4938_v58 = vpop.f32.mrf.mxu1  ;;  %v7733_v9 = vadd.f32 %v2163_v56, %v2085_v40 }
 0x90e   :  { %v2165_v41 = vpop.f32.mrf.mxu0 }
 0x90f   :  { %8884 = vst [vmem:[#allocation17_spill] sm:$0xff] %v7733_v9  ;;  %v2240_v63 = vpop.f32.mrf.mxu1  ;;  %v7742_v56 = vadd.f32 %v2165_v41, %v2089_v51 }
 0x910   :  { %v2169_v47 = vpop.f32.mrf.mxu0 }
 0x911   :  { %v7737_v14 = vadd.f32 %v2169_v47, %v2085_v40  ;;  %8886 = vst [vmem:[#allocation19_spill] sm:$0xff] %v7742_v56 }
 0x912   :  { %v2171_v35 = vpop.f32.mrf.mxu0 }
 0x913   :  { %8885 = vst [vmem:[#allocation8_spill] sm:$0xff] %v7737_v14  ;;  %v7744_v44 = vadd.f32 %v2171_v35, %v2089_v51 }
 0x915   :  { %8887 = vst [vmem:[#allocation21_spill] sm:$0xff] %v7744_v44 }
 0x92c   :  { %v2331_v39 = vpop.f32.mrf.mxu0 }
 0x92d   :  { %v2332_v19 = vadd.f32 %v2331_v39, %v7727_v23 }
 0x92e   :  { %v2333_v16 = vpop.f32.mrf.mxu0 }
 0x92f   :  { %v2407_v17 = vrot.slane %v2332_v19, 1  ;;  %v2410_v11 = vadd.f32 %v2332_v19, %v7733_v9  ;;  %v2334_v59 = vadd.f32 %v2333_v16, %v7731_v20 }
 0x930   :  { %v2402_v2 = vpop.f32.mrf.mxu1 }
 0x931   :  { %v2411_v54 = vadd.f32 %v2407_v17, %v7737_v14  ;;  %v4212_v7 = vmul.f32 -1.442695, %v2410_v11  ;;  %v2425_v23 = vrot.slane %v2334_v59, 1  ;;  %v2428_v47 = vadd.f32 %v2334_v59, %v7742_v56 }
 0x932   :  { %v4973_v5 = vpop.f32.mrf.mxu1 }
 0x933   :  { %5422 = vpow2.f32 %v4212_v7  ;;  %v4213_v39 = vmul.f32 -1.442695, %v2411_v54  ;;  %v2429_v40 = vadd.f32 %v2425_v23, %v7744_v44  ;;  %v4214_v19 = vmul.f32 -1.442695, %v2428_v47  ;;  %v8888_v7 = vld [vmem:[#allocation26_spill] sm:$0xff] }
 0x934   :  { %v7749_v54 = vrot.slane %v4211_v61, %v8888_v7  ;;  %v2093_v23 = vrot.slane %v4210_v32, %v8888_v7 }
 0x935   :  { %5424 = vpow2.f32 %v4213_v39  ;;  %v4215_v9 = vmul.f32 -1.442695, %v2429_v40 }
 0x936   :  { %5426 = vpow2.f32 %v4214_v19  ;;  %8889 = vst [vmem:[#allocation24_spill] sm:$0xff] %v7749_v54  ;;  %v2403_v41 = vadd.f32 %v2402_v2, %v7749_v54 }
 0x937   :  { %5428 = vpow2.f32 %v4215_v9  ;;  %v7753_v9 = vadd.f32 %v2240_v63, %v2093_v23 }
 0x938   :  { %v2443_v47 = vrot.slane %v2403_v41, 1 }
 0x940   :  { %v5423_v16 = vpop.eup %5422 }
 0x941   :  { %v2418_v17 = vadd.f32 1.0, %v5423_v16 }
 0x942   :  { %v5425_v11 = vpop.eup %5424 }
 0x943   :  { %v2419_v5 = vadd.f32 1.0, %v5425_v11  ;;  %5430 = vrcp.f32 %v2418_v17  ;;  %v5427_v51 = vpop.eup %5426  ;;  %v7755_v17 = vadd.f32 %v4938_v58, %v2093_v23 }
 0x944   :  { %v5429_v35 = vpop.eup %5428  ;;  %v2436_v59 = vadd.f32 1.0, %v5427_v51 }
 0x945   :  { %5432 = vrcp.f32 %v2419_v5  ;;  %v2437_v39 = vadd.f32 1.0, %v5429_v35 }
 0x946   :  { %5434 = vrcp.f32 %v2436_v59 }
 0x947   :  { %5436 = vrcp.f32 %v2437_v39 }
 0x950   :  { %v5431_v40 = vpop.eup %5430 }
 0x951   :  { %v2446_v19 = vmul.f32 %v5431_v40, %v2403_v41 }
 0x952   :  { %v5433_v16 = vpop.eup %5432 }
 0x953   :  { %v2447_v61 = vmul.f32 %v5433_v16, %v2443_v47  ;;  %v2448_v11 = vadd.f32 %v2446_v19, %v7753_v9  ;;  %v5435_v5 = vpop.eup %5434  ;;  %v8890_v47 = vld [vmem:[#allocation23_spill] sm:$0xff]  ;;  %v8891_v19 = vld [vmem:[#allocation25_spill] sm:$0xff]  ;;  %v8892_v16 = vld [vmem:[#allocation16_spill] sm:$0xff] }
 0x954   :  { %v5437_v32 = vpop.eup %5436  ;;  %v2452_v7 = vsub.f32 1.0, %v5435_v5  ;;  %v2456_v54 = vmul.f32 0.0, %v5435_v5  ;;  %v8896_v5 = vld [vmem:[#allocation27_spill] sm:$0xff] }
 0x955   :  { %v2449_v2 = vadd.f32 %v2447_v61, %v7755_v17  ;;  %5438 = vtanh.f32 %v2448_v11  ;;  %v2453_v35 = vsub.f32 1.0, %v5437_v32  ;;  %v2457_v40 = vmul.f32 0.0, %v5437_v32  ;;  %v8893_v61 = vld [vmem:[#allocation11_spill] sm:$0xff]  ;;  %v8894_v11 = vld [vmem:[#allocation12_spill] sm:$0xff]  ;;  %v8897_v32 = vld [vmem:[#allocation9_spill] sm:$0xff] }
 0x957   :  { %5440 = vtanh.f32 %v2449_v2  ;;  %v8895_v2 = vld [vmem:[#allocation10_spill] sm:$0xff] }
 0x962   :  { %v5439_v51 = vpop.eup %5438 }
 0x963   :  { %v2454_v63 = vmul.f32 %v5439_v51, %v2452_v7  ;;  %v8898_v7 = vld [vmem:[#allocation15_spill] sm:$0xff]  ;;  %v8899_v51 = vld [vmem:[#allocation22_spill] sm:$0xff] }
 0x964   :  { %v5441_v59 = vpop.eup %5440 }
 0x965   :  { %v2455_v41 = vmul.f32 %v5441_v59, %v2453_v35  ;;  %v7759_v58 = vadd.f32 %v2456_v54, %v2454_v63  ;;  %v8900_v59 = vld [vmem:[#allocation13_spill] sm:$0xff] }
 0x967   :  { %v7761_v23 = vadd.f32 %v2457_v40, %v2455_v41  ;;  %4216 = vst [vmem:[%s8660_s7 + $0x8] sm:$0x1] %v7759_v58 }
 0x969   :  { %4217 = vst [vmem:[%s8660_s7 + $0x18] sm:$0x1] %v7761_v23  ;;  %v8753_v39 = vrot.slane %v7761_v23, 7 }
 0x96b   :  { %v2466_v54 = vsel %vm515_vm1, %v8753_v39, %v7759_v58 }
 0x96c   :  { %2533 = vmatmul.mubr.f32.vlgmr.msra.gmra.mxu0 %v2466_v54  ;;  %5007 = vmatmul.mubr.f32.vlgmr.msra.gmra.mxu1 %v2466_v54 }
 0x96d   :  { %2674 = vmatpush1.msra.mxu0 %v7345_v38  ;;  %5010 = vmatpush3.msra.mxu1 %v7366_v57 }
 0x96e   :  { %2675 = vmatprep.subr.mxu0 %v7353_v36  ;;  %5011 = vmatprep.subr.mxu1 %v8804_v25 }
 0x96f   :  { %2676 = vmatpush1.msra.mxu0 %v7361_v52  ;;  %5012 = vmatpush3.msra.mxu1 %v7397_v37 }
 0x970   :  { %2677 = vmatprep.subr.mxu0 %v7372_v31  ;;  %5013 = vmatprep.subr.mxu1 %v8804_v25 }
 0x971   :  { %2678 = vmatpush1.msra.mxu0 %v7379_v49  ;;  %5014 = vmatpush3.msra.mxu1 %v7416_v53 }
 0x972   :  { %2679 = vmatprep.subr.mxu0 %v7385_v0  ;;  %5015 = vmatprep.subr.mxu1 %v8804_v25 }
 0x973   :  { %2680 = vmatpush1.msra.mxu0 %v7392_v48  ;;  %5016 = vmatpush3.msra.mxu1 %v7435_v33 }
 0x974   :  { %2681 = vmatprep.subr.mxu0 %v7403_v26  ;;  %5017 = vmatprep.subr.mxu1 %v8804_v25 }
 0x975   :  { %2682 = vmatpush1.msra.mxu0 %v7410_v6  ;;  %5018 = vmatpush3.msra.mxu1 %v7454_v18 }
 0x976   :  { %2683 = vmatprep.subr.mxu0 %v7422_v50  ;;  %5019 = vmatprep.subr.mxu1 %v8804_v25 }
 0x977   :  { %2684 = vmatpush1.msra.mxu0 %v7429_v12  ;;  %5020 = vmatpush3.msra.mxu1 %v7473_v24 }
 0x978   :  { %2685 = vmatprep.subr.mxu0 %v7441_v15  ;;  %5021 = vmatprep.subr.mxu1 %v8804_v25 }
 0x979   :  { %2686 = vmatpush1.msra.mxu0 %v7448_v34  ;;  %5022 = vmatpush3.msra.mxu1 %v7492_v28 }
 0x97a   :  { %2687 = vmatprep.subr.mxu0 %v7460_v21  ;;  %5023 = vmatprep.subr.mxu1 %v8804_v25 }
 0x97b   :  { %2688 = vmatpush1.msra.mxu0 %v7467_v42  ;;  %5024 = vmatpush3.msra.mxu1 %v7511_v4 }
 0x97c   :  { %2689 = vmatprep.subr.mxu0 %v7479_v22  ;;  %5025 = vmatprep.subr.mxu1 %v8804_v25 }
 0x97d   :  { %2690 = vmatpush1.msra.mxu0 %v7486_v27  ;;  %5026 = vmatpush3.msra.mxu1 %v7530_v46 }
 0x97e   :  { %2691 = vmatprep.subr.mxu0 %v7498_v43  ;;  %5027 = vmatprep.subr.mxu1 %v8804_v25 }
 0x97f   :  { %2692 = vmatpush1.msra.mxu0 %v7505_v29  ;;  %5028 = vmatpush3.msra.mxu1 %v7549_v10 }
 0x980   :  { %2693 = vmatprep.subr.mxu0 %v7517_v60  ;;  %5029 = vmatprep.subr.mxu1 %v8804_v25 }
 0x981   :  { %2694 = vmatpush1.msra.mxu0 %v7524_v30  ;;  %5030 = vmatpush3.msra.mxu1 %v7568_v62 }
 0x982   :  { %2695 = vmatprep.subr.mxu0 %v7536_v45  ;;  %5031 = vmatprep.subr.mxu1 %v8804_v25 }
 0x983   :  { %2696 = vmatpush1.msra.mxu0 %v7543_v1  ;;  %5032 = vmatpush3.msra.mxu1 %v7587_v8 }
 0x984   :  { %2697 = vmatprep.subr.mxu0 %v7555_v13  ;;  %5033 = vmatprep.subr.mxu1 %v8804_v25 }
 0x985   :  { %2698 = vmatpush1.msra.mxu0 %v7562_v3  ;;  %5034 = vmatpush3.msra.mxu1 %v7606_v55 }
 0x986   :  { %2699 = vmatprep.subr.mxu0 %v8890_v47  ;;  %5035 = vmatprep.subr.mxu1 %v8804_v25 }
 0x987   :  { %2700 = vmatpush1.msra.mxu0 %v8891_v19  ;;  %5036 = vmatpush3.msra.mxu1 %v8892_v16 }
 0x988   :  { %2701 = vmatprep.subr.mxu0 %v8893_v61  ;;  %5037 = vmatprep.subr.mxu1 %v8804_v25 }
 0x989   :  { %2702 = vmatpush1.msra.mxu0 %v8894_v11  ;;  %5038 = vmatpush3.msra.mxu1 %v8895_v2  ;;  %v8901_v2 = vld [vmem:[#allocation17_spill] sm:$0xff] }
 0x98a   :  { %2703 = vmatprep.subr.mxu0 %v8896_v5  ;;  %5039 = vmatprep.subr.mxu1 %v8804_v25 }
 0x98b   :  { %2704 = vmatpush1.msra.mxu0 %v8897_v32  ;;  %2737 = vmatprep.mubr.f32.mxu0 %v8804_v25 }
 0x98c   :  { %5040 = vmatpush3.msra.mxu1 %v8898_v7  ;;  %5041 = vmatprep.mubr.msk.f32.mxu1 %vm5723_vm0, %v8804_v25 }
 0x98d   :  { %2883 = vmatprep.subr.mxu0 %v8899_v51  ;;  %5044 = vmatprep.subr.mxu1 %v8804_v25 }
 0xa2c   :  { %v2534_v35 = vpop.f32.mrf.mxu0  ;;  %v2605_v63 = vpop.f32.mrf.mxu1 }
 0xa2d   :  { %v2535_v41 = vadd.f32 %v2534_v35, %v8900_v59 }
 0xa2e   :  { %v2536_v40 = vpop.f32.mrf.mxu0  ;;  %v5008_v54 = vpop.f32.mrf.mxu1 }
 0xa2f   :  { %v2610_v39 = vrot.slane %v2535_v41, 7  ;;  %v2614_v32 = vadd.f32 %v2535_v41, %v7737_v14  ;;  %v2537_v5 = vadd.f32 %v2536_v40, %v7731_v20 }
 0xa31   :  { %v2613_v7 = vadd.f32 %v2610_v39, %v8901_v2  ;;  %v4219_v11 = vmul.f32 -1.442695, %v2614_v32  ;;  %v2628_v16 = vrot.slane %v2537_v5, 7  ;;  %v2632_v51 = vadd.f32 %v2537_v5, %v7744_v44 }
 0xa33   :  { %v4218_v61 = vmul.f32 -1.442695, %v2613_v7  ;;  %5442 = vpow2.f32 %v4219_v11  ;;  %v2631_v19 = vadd.f32 %v2628_v16, %v7742_v56  ;;  %v4221_v47 = vmul.f32 -1.442695, %v2632_v51  ;;  %v8902_v7 = vld [vmem:[#allocation24_spill] sm:$0xff] }
 0xa34   :  { %v2606_v11 = vadd.f32 %v2605_v63, %v8902_v7  ;;  %v2659_v63 = vrot.slane %v7759_v58, 7 }
 0xa35   :  { %5444 = vpow2.f32 %v4218_v61  ;;  %v4220_v35 = vmul.f32 -1.442695, %v2631_v19 }
 0xa36   :  { %5446 = vpow2.f32 %v4221_v47  ;;  %v2646_v5 = vrot.slane %v2606_v11, 7 }
 0xa37   :  { %5448 = vpow2.f32 %v4220_v35 }
 0xa40   :  { %v5443_v54 = vpop.eup %5442 }
 0xa41   :  { %v2622_v59 = vadd.f32 1.0, %v5443_v54 }
 0xa42   :  { %v5445_v41 = vpop.eup %5444 }
 0xa43   :  { %v2621_v14 = vadd.f32 1.0, %v5445_v41  ;;  %5450 = vrcp.f32 %v2622_v59  ;;  %v5447_v39 = vpop.eup %5446 }
 0xa44   :  { %v5449_v32 = vpop.eup %5448  ;;  %v2640_v40 = vadd.f32 1.0, %v5447_v39 }
 0xa45   :  { %5452 = vrcp.f32 %v2621_v14  ;;  %v2639_v61 = vadd.f32 1.0, %v5449_v32 }
 0xa46   :  { %5454 = vrcp.f32 %v2640_v40 }
 0xa47   :  { %5456 = vrcp.f32 %v2639_v61 }
 0xa50   :  { %v5451_v2 = vpop.eup %5450 }
 0xa51   :  { %v2650_v44 = vmul.f32 %v5451_v2, %v2606_v11  ;;  %v8903_v2 = vrot.slane %v7761_v23, 7 }
 0xa52   :  { %v5453_v16 = vpop.eup %5452 }
 0xa53   :  { %v2649_v19 = vmul.f32 %v5453_v16, %v2646_v5  ;;  %v2652_v47 = vadd.f32 %v2650_v44, %v7755_v17  ;;  %v5455_v14 = vpop.eup %5454 }
 0xa54   :  { %v5457_v59 = vpop.eup %5456  ;;  %v2656_v35 = vsub.f32 1.0, %v5455_v14  ;;  %v2663_v32 = vmul.f32 %v5455_v14, %v8903_v2  ;;  %v8915_v14 = vld [vmem:[#allocation17_spill] sm:$0xff] }
 0xa55   :  { %v2651_v51 = vadd.f32 %v2649_v19, %v7753_v9  ;;  %5458 = vtanh.f32 %v2652_v47  ;;  %v2655_v41 = vsub.f32 1.0, %v5457_v59  ;;  %v2662_v5 = vmul.f32 %v5457_v59, %v2659_v63 }
 0xa57   :  { %5460 = vtanh.f32 %v2651_v51 }
 0xa62   :  { %v5459_v54 = vpop.eup %5458 }
 0xa63   :  { %v2658_v39 = vmul.f32 %v5459_v54, %v2656_v35  ;;  %v8916_v35 = vld [vmem:[#allocation8_spill] sm:$0xff] }
 0xa64   :  { %v5461_v11 = vpop.eup %5460 }
 0xa65   :  { %v2657_v40 = vmul.f32 %v5461_v11, %v2655_v41  ;;  %v7855_v44 = vadd.f32 %v2663_v32, %v2658_v39  ;;  %v8917_v11 = vld [vmem:[#allocation21_spill] sm:$0xff] }
 0xa67   :  { %v7857_v61 = vadd.f32 %v2662_v5, %v2657_v40  ;;  %4223 = vst [vmem:[%s8660_s7 + $0x18] sm:$0x2] %v7855_v44 }
 0xa69   :  { %4222 = vst [vmem:[%s8660_s7 + $0x8] sm:$0x2] %v7857_v61  ;;  %v2670_v58 = vrot.slane %v7857_v61, 1 }
 0xa6b   :  { %v2671_v23 = vsel %vm515_vm1, %v7855_v44, %v2670_v58 }
 0xa6c   :  { %2738 = vmatmul.mubr.f32.vlgmr.msra.gmra.mxu0 %v2671_v23  ;;  %5042 = vmatmul.mubr.f32.vlgmr.msra.gmra.mxu1 %v2671_v23 }
 0xa6d   :  { %2884 = vmatpush1.msra.mxu0 %v7345_v38  ;;  %5045 = vmatpush3.msra.mxu1 %v7366_v57  ;;  %v8904_v38 = vld [vmem:[#allocation23_spill] sm:$0xff] }
 0xa6e   :  { %2885 = vmatprep.subr.mxu0 %v7353_v36  ;;  %5046 = vmatprep.subr.mxu1 %v8804_v25  ;;  %v8905_v36 = vld [vmem:[#allocation25_spill] sm:$0xff]  ;;  %v8907_v57 = vld [vmem:[#allocation11_spill] sm:$0xff] }
 0xa6f   :  { %2886 = vmatpush1.msra.mxu0 %v7361_v52  ;;  %5047 = vmatpush3.msra.mxu1 %v7397_v37  ;;  %v8906_v52 = vld [vmem:[#allocation16_spill] sm:$0xff]  ;;  %v8912_v37 = vld [vmem:[#allocation15_spill] sm:$0xff] }
 0xa70   :  { %2887 = vmatprep.subr.mxu0 %v7372_v31  ;;  %5048 = vmatprep.subr.mxu1 %v8804_v25  ;;  %v8908_v31 = vld [vmem:[#allocation12_spill] sm:$0xff] }
 0xa71   :  { %2888 = vmatpush1.msra.mxu0 %v7379_v49  ;;  %5049 = vmatpush3.msra.mxu1 %v7416_v53  ;;  %v8909_v49 = vld [vmem:[#allocation10_spill] sm:$0xff] }
 0xa72   :  { %2889 = vmatprep.subr.mxu0 %v7385_v0  ;;  %5050 = vmatprep.subr.mxu1 %v8804_v25  ;;  %v8910_v0 = vld [vmem:[#allocation27_spill] sm:$0xff] }
 0xa73   :  { %2890 = vmatpush1.msra.mxu0 %v7392_v48  ;;  %5051 = vmatpush3.msra.mxu1 %v7435_v33  ;;  %v8911_v48 = vld [vmem:[#allocation9_spill] sm:$0xff] }
 0xa74   :  { %2891 = vmatprep.subr.mxu0 %v7403_v26  ;;  %5052 = vmatprep.subr.mxu1 %v8804_v25  ;;  %v7938_v26 = vld [vmem:[%s8655_s2 + $0x2f0] sm:$0xff] }
 0xa75   :  { %2892 = vmatpush1.msra.mxu0 %v7410_v6  ;;  %5053 = vmatpush3.msra.mxu1 %v7454_v18  ;;  %8913 = vst [vmem:[#allocation18_spill] sm:$0xff] %v7938_v26 }
 0xa76   :  { %2893 = vmatprep.subr.mxu0 %v7422_v50  ;;  %5054 = vmatprep.subr.mxu1 %v8804_v25 }
 0xa77   :  { %2894 = vmatpush1.msra.mxu0 %v7429_v12  ;;  %5055 = vmatpush3.msra.mxu1 %v7473_v24  ;;  %v8914_v12 = vld [vmem:[#allocation13_spill] sm:$0xff] }
 0xa78   :  { %2895 = vmatprep.subr.mxu0 %v7441_v15  ;;  %5056 = vmatprep.subr.mxu1 %v8804_v25 }
 0xa79   :  { %2896 = vmatpush1.msra.mxu0 %v7448_v34  ;;  %5057 = vmatpush3.msra.mxu1 %v7492_v28 }
 0xa7a   :  { %2897 = vmatprep.subr.mxu0 %v7460_v21  ;;  %5058 = vmatprep.subr.mxu1 %v8804_v25 }
 0xa7b   :  { %2898 = vmatpush1.msra.mxu0 %v7467_v42  ;;  %5059 = vmatpush3.msra.mxu1 %v7511_v4 }
 0xa7c   :  { %2899 = vmatprep.subr.mxu0 %v7479_v22  ;;  %5060 = vmatprep.subr.mxu1 %v8804_v25 }
 0xa7d   :  { %2900 = vmatpush1.msra.mxu0 %v7486_v27  ;;  %5061 = vmatpush3.msra.mxu1 %v7530_v46 }
 0xa7e   :  { %2901 = vmatprep.subr.mxu0 %v7498_v43  ;;  %5062 = vmatprep.subr.mxu1 %v8804_v25 }
 0xa7f   :  { %2902 = vmatpush1.msra.mxu0 %v7505_v29  ;;  %5063 = vmatpush3.msra.mxu1 %v7549_v10 }
 0xa80   :  { %2903 = vmatprep.subr.mxu0 %v7517_v60  ;;  %5064 = vmatprep.subr.mxu1 %v8804_v25 }
 0xa81   :  { %2904 = vmatpush1.msra.mxu0 %v7524_v30  ;;  %5065 = vmatpush3.msra.mxu1 %v7568_v62 }
 0xa82   :  { %2905 = vmatprep.subr.mxu0 %v7536_v45  ;;  %5066 = vmatprep.subr.mxu1 %v8804_v25 }
 0xa83   :  { %2906 = vmatpush1.msra.mxu0 %v7543_v1  ;;  %5067 = vmatpush3.msra.mxu1 %v7587_v8 }
 0xa84   :  { %2907 = vmatprep.subr.mxu0 %v7555_v13  ;;  %5068 = vmatprep.subr.mxu1 %v8804_v25 }
 0xa85   :  { %2908 = vmatpush1.msra.mxu0 %v7562_v3  ;;  %5069 = vmatpush3.msra.mxu1 %v7606_v55 }
 0xa86   :  { %2909 = vmatprep.subr.mxu0 %v8904_v38  ;;  %5070 = vmatprep.subr.mxu1 %v8804_v25 }
 0xa87   :  { %2910 = vmatpush1.msra.mxu0 %v8905_v36  ;;  %5071 = vmatpush3.msra.mxu1 %v8906_v52 }
 0xa88   :  { %2911 = vmatprep.subr.mxu0 %v8907_v57  ;;  %5072 = vmatprep.subr.mxu1 %v8804_v25 }
 0xa89   :  { %2912 = vmatpush1.msra.mxu0 %v8908_v31  ;;  %5073 = vmatpush3.msra.mxu1 %v8909_v49 }
 0xa8a   :  { %2913 = vmatprep.subr.mxu0 %v8910_v0  ;;  %5074 = vmatprep.subr.mxu1 %v8804_v25 }
 0xa8b   :  { %2914 = vmatpush1.msra.mxu0 %v8911_v48  ;;  %2947 = vmatprep.mubr.f32.mxu0 %v8804_v25 }
 0xa8c   :  { %5075 = vmatpush3.msra.mxu1 %v8912_v37  ;;  %5076 = vmatprep.mubr.msk.f32.mxu1 %vm5723_vm0, %v8804_v25 }
 0xa8d   :  { %3093 = vmatprep.subr.mxu0 %v7938_v26  ;;  %5079 = vmatprep.subr.mxu1 %v8804_v25 }
 0xb2c   :  { %v2739_v6 = vpop.f32.mrf.mxu0  ;;  %v2810_v50 = vpop.f32.mrf.mxu1 }
 0xb2d   :  { %v2740_v15 = vadd.f32 %v2739_v6, %v8914_v12 }
 0xb2e   :  { %v2741_v34 = vpop.f32.mrf.mxu0  ;;  %v5043_v16 = vpop.f32.mrf.mxu1 }
 0xb2f   :  { %v2815_v19 = vrot.slane %v2740_v15, 6  ;;  %v2816_v47 = vrot.slane %v2740_v15, 7  ;;  %v2742_v51 = vadd.f32 %v2741_v34, %v7731_v20 }
 0xb31   :  { %v2819_v59 = vadd.f32 %v2815_v19, %v8915_v14  ;;  %v2820_v54 = vadd.f32 %v2816_v47, %v8916_v35  ;;  %v2834_v39 = vrot.slane %v2742_v51, 6  ;;  %v2835_v2 = vrot.slane %v2742_v51, 7 }
 0xb32   :  { %v2811_v47 = vadd.f32 %v2810_v50, %v8902_v7  ;;  %v2867_v50 = vrot.slane %v7857_v61, 7 }
 0xb33   :  { %v4224_v63 = vmul.f32 -1.442695, %v2819_v59  ;;  %v4225_v41 = vmul.f32 -1.442695, %v2820_v54  ;;  %v2838_v32 = vadd.f32 %v2834_v39, %v7742_v56  ;;  %v2839_v40 = vadd.f32 %v2835_v2, %v8917_v11 }
 0xb34   :  { %v2853_v54 = vrot.slane %v2811_v47, 6 }
 0xb35   :  { %5462 = vpow2.f32 %v4224_v63  ;;  %v4226_v5 = vmul.f32 -1.442695, %v2838_v32  ;;  %v4227_v58 = vmul.f32 -1.442695, %v2839_v40 }
 0xb36   :  { %5464 = vpow2.f32 %v4225_v41  ;;  %v2854_v41 = vrot.slane %v2811_v47, 7 }
 0xb37   :  { %5466 = vpow2.f32 %v4226_v5 }
 0xb38   :  { %5468 = vpow2.f32 %v4227_v58 }
 0xb42   :  { %v5463_v23 = vpop.eup %5462 }
 0xb43   :  { %v5465_v6 = vpop.eup %5464  ;;  %v2827_v15 = vadd.f32 1.0, %v5463_v23 }
 0xb44   :  { %v2828_v34 = vadd.f32 1.0, %v5465_v6  ;;  %v5467_v16 = vpop.eup %5466 }
 0xb45   :  { %5470 = vrcp.f32 %v2827_v15  ;;  %v5469_v19 = vpop.eup %5468  ;;  %v2846_v51 = vadd.f32 1.0, %v5467_v16 }
 0xb46   :  { %5472 = vrcp.f32 %v2828_v34  ;;  %v2847_v59 = vadd.f32 1.0, %v5469_v19  ;;  %v2868_v34 = vrot.slane %v7855_v44, 7 }
 0xb47   :  { %5474 = vrcp.f32 %v2846_v51 }
 0xb48   :  { %5476 = vrcp.f32 %v2847_v59 }
 0xb52   :  { %v5471_v63 = vpop.eup %5470 }
 0xb53   :  { %v5473_v39 = vpop.eup %5472  ;;  %v2857_v2 = vmul.f32 %v5471_v63, %v2853_v54 }
 0xb54   :  { %v2858_v32 = vmul.f32 %v5473_v39, %v2854_v41  ;;  %v5475_v58 = vpop.eup %5474 }
 0xb55   :  { %v2859_v40 = vadd.f32 %v2857_v2, %v7753_v9  ;;  %v5477_v23 = vpop.eup %5476  ;;  %v2863_v6 = vsub.f32 1.0, %v5475_v58  ;;  %v2871_v51 = vmul.f32 %v5475_v58, %v2867_v50  ;;  %v7971_v2 = vld [vmem:[%s8655_s2 + $0x2e8] sm:$0xff]  ;;  %v7996_v58 = vld [vmem:[%s8655_s2 + $0x2e0] sm:$0xff] }
 0xb56   :  { %v2860_v5 = vadd.f32 %v2858_v32, %v7755_v17  ;;  %v2864_v16 = vsub.f32 1.0, %v5477_v23  ;;  %v2872_v59 = vmul.f32 %v5477_v23, %v2868_v34  ;;  %v7977_v32 = vld [vmem:[%s8655_s2 + $0x2f8] sm:$0xff]  ;;  %v8002_v23 = vld [vmem:[%s8655_s2 + $0x2c0] sm:$0xff]  ;;  %v8016_v50 = vld [vmem:[%s8655_s2 + $0x2a8] sm:$0xff] }
 0xb57   :  { %5478 = vtanh.f32 %v2859_v40  ;;  %v7983_v40 = vld [vmem:[%s8655_s2 + $0x2d8] sm:$0xff]  ;;  %v8037_v34 = vld [vmem:[%s8655_s2 + $0x288] sm:$0xff] }
 0xb58   :  { %5480 = vtanh.f32 %v2860_v5  ;;  %v7990_v5 = vld [vmem:[%s8655_s2 + $0x2d0] sm:$0xff] }
 0xb64   :  { %v5479_v15 = vpop.eup %5478 }
 0xb65   :  { %v5481_v19 = vpop.eup %5480  ;;  %v2865_v47 = vmul.f32 %v5479_v15, %v2863_v6  ;;  %v8009_v6 = vld [vmem:[%s8655_s2 + $0x2b8] sm:$0xff]  ;;  %v8023_v15 = vld [vmem:[%s8655_s2 + $0x2a0] sm:$0xff] }
 0xb66   :  { %v2866_v54 = vmul.f32 %v5481_v19, %v2864_v16  ;;  %v8051_v16 = vld [vmem:[%s8655_s2 + $0x270] sm:$0xff]  ;;  %v8065_v19 = vld [vmem:[%s8655_s2 + $0x258] sm:$0xff] }
 0xb67   :  { %v7953_v63 = vadd.f32 %v2871_v51, %v2865_v47 }
 0xb68   :  { %v7955_v41 = vadd.f32 %v2872_v59, %v2866_v54 }
 0xb69   :  { %4228 = vst [vmem:[%s8660_s7 + $0x8] sm:$0x4] %v7953_v63  ;;  %v2879_v61 = vrot.slane %v7953_v63, 2 }
 0xb6a   :  { %4229 = vst [vmem:[%s8660_s7 + $0x18] sm:$0x4] %v7955_v41  ;;  %v2880_v44 = vrot.slane %v7955_v41, 1 }
 0xb6c   :  { %v2881_v39 = vsel %vm515_vm1, %v2880_v44, %v2879_v61 }
 0xb6d   :  { %2948 = vmatmul.mubr.f32.vlgmr.msra.gmra.mxu0 %v2881_v39  ;;  %5077 = vmatmul.mubr.f32.vlgmr.msra.gmra.mxu1 %v2881_v39 }
 0xb6e   :  { %3094 = vmatpush1.msra.mxu0 %v7971_v2  ;;  %5080 = vmatpush3.msra.mxu1 %v7977_v32 }
 0xb6f   :  { %3095 = vmatprep.subr.mxu0 %v7983_v40  ;;  %5081 = vmatprep.subr.mxu1 %v8804_v25 }
 0xb70   :  { %3096 = vmatpush1.msra.mxu0 %v7990_v5  ;;  %5082 = vmatpush3.msra.mxu1 %v7996_v58 }
 0xb71   :  { %3097 = vmatprep.subr.mxu0 %v8002_v23  ;;  %5083 = vmatprep.subr.mxu1 %v8804_v25 }
 0xb72   :  { %3098 = vmatpush1.msra.mxu0 %v8009_v6  ;;  %5084 = vmatpush3.msra.mxu1 %v7416_v53  ;;  %v8030_v53 = vld [vmem:[%s8655_s2 + $0x290] sm:$0xff] }
 0xb73   :  { %3099 = vmatprep.subr.mxu0 %v8016_v50  ;;  %5085 = vmatprep.subr.mxu1 %v8804_v25 }
 0xb74   :  { %3100 = vmatpush1.msra.mxu0 %v8023_v15  ;;  %5086 = vmatpush3.msra.mxu1 %v7435_v33  ;;  %v8044_v33 = vld [vmem:[%s8655_s2 + $0x278] sm:$0xff] }
 0xb75   :  { %3101 = vmatprep.subr.mxu0 %v8030_v53  ;;  %5087 = vmatprep.subr.mxu1 %v8804_v25 }
 0xb76   :  { %3102 = vmatpush1.msra.mxu0 %v8037_v34  ;;  %5088 = vmatpush3.msra.mxu1 %v7454_v18  ;;  %v8058_v18 = vld [vmem:[%s8655_s2 + $0x260] sm:$0xff] }
 0xb77   :  { %3103 = vmatprep.subr.mxu0 %v8044_v33  ;;  %5089 = vmatprep.subr.mxu1 %v8804_v25 }
 0xb78   :  { %3104 = vmatpush1.msra.mxu0 %v8051_v16  ;;  %5090 = vmatpush3.msra.mxu1 %v7473_v24 }
 0xb79   :  { %3105 = vmatprep.subr.mxu0 %v8058_v18  ;;  %5091 = vmatprep.subr.mxu1 %v8804_v25 }
 0xb7a   :  { %3106 = vmatpush1.msra.mxu0 %v8065_v19  ;;  %5092 = vmatpush3.msra.mxu1 %v7492_v28 }
 0xb7b   :  { %3107 = vmatprep.subr.mxu0 %v7460_v21  ;;  %5093 = vmatprep.subr.mxu1 %v8804_v25 }
 0xb7c   :  { %3108 = vmatpush1.msra.mxu0 %v7467_v42  ;;  %5094 = vmatpush3.msra.mxu1 %v7511_v4 }
 0xb7d   :  { %3109 = vmatprep.subr.mxu0 %v7479_v22  ;;  %5095 = vmatprep.subr.mxu1 %v8804_v25 }
 0xb7e   :  { %3110 = vmatpush1.msra.mxu0 %v7486_v27  ;;  %5096 = vmatpush3.msra.mxu1 %v7530_v46 }
 0xb7f   :  { %3111 = vmatprep.subr.mxu0 %v7498_v43  ;;  %5097 = vmatprep.subr.mxu1 %v8804_v25 }
 0xb80   :  { %3112 = vmatpush1.msra.mxu0 %v7505_v29  ;;  %5098 = vmatpush3.msra.mxu1 %v7549_v10 }
 0xb81   :  { %3113 = vmatprep.subr.mxu0 %v7517_v60  ;;  %5099 = vmatprep.subr.mxu1 %v8804_v25 }
 0xb82   :  { %3114 = vmatpush1.msra.mxu0 %v7524_v30  ;;  %5100 = vmatpush3.msra.mxu1 %v7568_v62 }
 0xb83   :  { %3115 = vmatprep.subr.mxu0 %v7536_v45  ;;  %5101 = vmatprep.subr.mxu1 %v8804_v25 }
 0xb84   :  { %3116 = vmatpush1.msra.mxu0 %v7543_v1  ;;  %5102 = vmatpush3.msra.mxu1 %v7587_v8 }
 0xb85   :  { %3117 = vmatprep.subr.mxu0 %v7555_v13  ;;  %5103 = vmatprep.subr.mxu1 %v8804_v25 }
 0xb86   :  { %3118 = vmatpush1.msra.mxu0 %v7562_v3  ;;  %5104 = vmatpush3.msra.mxu1 %v7606_v55 }
 0xb87   :  { %3119 = vmatprep.subr.mxu0 %v8904_v38  ;;  %5105 = vmatprep.subr.mxu1 %v8804_v25 }
 0xb88   :  { %3120 = vmatpush1.msra.mxu0 %v8905_v36  ;;  %5106 = vmatpush3.msra.mxu1 %v8906_v52 }
 0xb89   :  { %3121 = vmatprep.subr.mxu0 %v8907_v57  ;;  %5107 = vmatprep.subr.mxu1 %v8804_v25 }
 0xb8a   :  { %3122 = vmatpush1.msra.mxu0 %v8908_v31  ;;  %5108 = vmatpush3.msra.mxu1 %v8909_v49 }
 0xb8b   :  { %3123 = vmatprep.subr.mxu0 %v8910_v0  ;;  %5109 = vmatprep.subr.mxu1 %v8804_v25 }
 0xb8c   :  { %3124 = vmatpush1.msra.mxu0 %v8911_v48  ;;  %3157 = vmatprep.mubr.f32.mxu0 %v8804_v25 }
 0xb8d   :  { %5110 = vmatpush3.msra.mxu1 %v8912_v37  ;;  %5111 = vmatprep.mubr.msk.f32.mxu1 %vm5723_vm0, %v8804_v25 }
 0xb8e   :  { %3303 = vmatprep.subr.mxu0 %v7938_v26  ;;  %5114 = vmatprep.subr.mxu1 %v8804_v25 }
 0xc2d   :  { %v2949_v21 = vpop.f32.mrf.mxu0  ;;  %v3020_v42 = vpop.f32.mrf.mxu1 }
 0xc2e   :  { %v2950_v24 = vadd.f32 %v2949_v21, %v8914_v12  ;;  %v3021_v31 = vadd.f32 %v3020_v42, %v8902_v7  ;;  %v3077_v42 = vrot.slane %v7953_v63, 7 }
 0xc2f   :  { %v2951_v22 = vpop.f32.mrf.mxu0  ;;  %v5078_v27 = vpop.f32.mrf.mxu1 }
 0xc30   :  { %v3025_v28 = vrot.slane %v2950_v24, 5  ;;  %v3026_v43 = vrot.slane %v2950_v24, 6  ;;  %v2952_v29 = vadd.f32 %v2951_v22, %v7731_v20  ;;  %v3063_v48 = vrot.slane %v3021_v31, 5 }
 0xc31   :  { %v3064_v47 = vrot.slane %v3021_v31, 6  ;;  %v8222_v31 = vld [vmem:[%s8655_s2 + $0x238] sm:$0xff] }
 0xc32   :  { %v3029_v4 = vadd.f32 %v3025_v28, %v8915_v14  ;;  %v3030_v60 = vadd.f32 %v3026_v43, %v8916_v35  ;;  %v3044_v45 = vrot.slane %v2952_v29, 5  ;;  %v3045_v1 = vrot.slane %v2952_v29, 6 }
 0xc33   :  { %v3078_v28 = vrot.slane %v7955_v41, 7 }
 0xc34   :  { %v4230_v30 = vmul.f32 -1.442695, %v3029_v4  ;;  %v4231_v46 = vmul.f32 -1.442695, %v3030_v60  ;;  %v3048_v10 = vadd.f32 %v3044_v45, %v7742_v56  ;;  %v3049_v13 = vadd.f32 %v3045_v1, %v8917_v11 }
 0xc36   :  { %5482 = vpow2.f32 %v4230_v30  ;;  %v4232_v3 = vmul.f32 -1.442695, %v3048_v10  ;;  %v4233_v62 = vmul.f32 -1.442695, %v3049_v13  ;;  %v8148_v10 = vld [vmem:[%s8655_s2 + $0x2c8] sm:$0xff]  ;;  %v8157_v13 = vld [vmem:[%s8655_s2 + $0x2b0] sm:$0xff] }
 0xc37   :  { %5484 = vpow2.f32 %v4231_v46 }
 0xc38   :  { %5486 = vpow2.f32 %v4232_v3  ;;  %v8166_v3 = vld [vmem:[%s8655_s2 + $0x298] sm:$0xff] }
 0xc39   :  { %5488 = vpow2.f32 %v4233_v62  ;;  %v8175_v62 = vld [vmem:[%s8655_s2 + $0x280] sm:$0xff] }
 0xc43   :  { %v5483_v8 = vpop.eup %5482 }
 0xc44   :  { %v5485_v55 = vpop.eup %5484  ;;  %v3037_v38 = vadd.f32 1.0, %v5483_v8  ;;  %v8184_v8 = vld [vmem:[%s8655_s2 + $0x268] sm:$0xff] }
 0xc45   :  { %v3038_v36 = vadd.f32 1.0, %v5485_v55  ;;  %v5487_v52 = vpop.eup %5486  ;;  %v8190_v55 = vld [vmem:[%s8655_s2 + $0x248] sm:$0xff] }
 0xc46   :  { %5490 = vrcp.f32 %v3037_v38  ;;  %v5489_v57 = vpop.eup %5488  ;;  %v3056_v49 = vadd.f32 1.0, %v5487_v52  ;;  %v8197_v38 = vld [vmem:[%s8655_s2 + $0x240] sm:$0xff]  ;;  %v8209_v52 = vld [vmem:[%s8655_s2 + $0x230] sm:$0xff] }
 0xc47   :  { %5492 = vrcp.f32 %v3038_v36  ;;  %v3057_v0 = vadd.f32 1.0, %v5489_v57  ;;  %v8203_v36 = vld [vmem:[%s8655_s2 + $0x250] sm:$0xff]  ;;  %v8216_v57 = vld [vmem:[%s8655_s2 + $0x228] sm:$0xff] }
 0xc48   :  { %5494 = vrcp.f32 %v3056_v49  ;;  %v8228_v49 = vld [vmem:[%s8655_s2 + $0x218] sm:$0xff] }
 0xc49   :  { %5496 = vrcp.f32 %v3057_v0  ;;  %v8235_v0 = vld [vmem:[%s8655_s2 + $0x210] sm:$0xff] }
 0xc53   :  { %v5491_v37 = vpop.eup %5490 }
 0xc54   :  { %v5493_v51 = vpop.eup %5492  ;;  %v3067_v54 = vmul.f32 %v5491_v37, %v3063_v48  ;;  %v8241_v48 = vld [vmem:[%s8655_s2 + $0x220] sm:$0xff] }
 0xc55   :  { %v3068_v59 = vmul.f32 %v5493_v51, %v3064_v47  ;;  %v5495_v39 = vpop.eup %5494  ;;  %v8247_v37 = vld [vmem:[%s8655_s2 + $0x200] sm:$0xff]  ;;  %v8254_v47 = vld [vmem:[%s8655_s2 + $0x1f8] sm:$0xff]  ;;  %v8260_v51 = vld [vmem:[%s8655_s2 + $0x208] sm:$0xff] }
 0xc56   :  { %v3069_v61 = vadd.f32 %v3067_v54, %v7753_v9  ;;  %v5497_v21 = vpop.eup %5496  ;;  %v3073_v24 = vsub.f32 1.0, %v5495_v39  ;;  %v3081_v4 = vmul.f32 %v5495_v39, %v3077_v42  ;;  %v8266_v54 = vld [vmem:[%s8655_s2 + $0x1e8] sm:$0xff]  ;;  %v8311_v42 = vld [vmem:[%s8655_s2 + $0x1b0] sm:$0xff] }
 0xc57   :  { %v3070_v44 = vadd.f32 %v3068_v59, %v7755_v17  ;;  %v3074_v27 = vsub.f32 1.0, %v5497_v21  ;;  %v3082_v30 = vmul.f32 %v5497_v21, %v3078_v28  ;;  %v8273_v59 = vld [vmem:[%s8655_s2 + $0x1e0] sm:$0xff]  ;;  %v8292_v39 = vld [vmem:[%s8655_s2 + $0x1c8] sm:$0xff]  ;;  %v8298_v21 = vld [vmem:[%s8655_s2 + $0x1d8] sm:$0xff]  ;;  %8920 = vst [vmem:[#allocation22_spill] sm:$0xff] %v8311_v42 }
 0xc58   :  { %5498 = vtanh.f32 %v3069_v61  ;;  %v8279_v61 = vld [vmem:[%s8655_s2 + $0x1f0] sm:$0xff]  ;;  %8918 = vst [vmem:[#allocation20_spill] sm:$0xff] %v8298_v21  ;;  %v8330_v28 = vld [vmem:[%s8655_s2 + $0x198] sm:$0xff] }
 0xc59   :  { %5500 = vtanh.f32 %v3070_v44  ;;  %v8285_v44 = vld [vmem:[%s8655_s2 + $0x1d0] sm:$0xff]  ;;  %8923 = vst [vmem:[#allocation25_spill] sm:$0xff] %v8330_v28 }
 0xc65   :  { %v5499_v22 = vpop.eup %5498 }
 0xc66   :  { %v5501_v43 = vpop.eup %5500  ;;  %v3075_v29 = vmul.f32 %v5499_v22, %v3073_v24  ;;  %v8304_v24 = vld [vmem:[%s8655_s2 + $0x1b8] sm:$0xff]  ;;  %v8317_v22 = vld [vmem:[%s8655_s2 + $0x1c0] sm:$0xff] }
 0xc67   :  { %v3076_v60 = vmul.f32 %v5501_v43, %v3074_v27  ;;  %8919 = vst [vmem:[#allocation26_spill] sm:$0xff] %v8304_v24  ;;  %8921 = vst [vmem:[#allocation24_spill] sm:$0xff] %v8317_v22  ;;  %v8323_v27 = vld [vmem:[%s8655_s2 + $0x1a0] sm:$0xff]  ;;  %v8336_v43 = vld [vmem:[%s8655_s2 + $0x1a8] sm:$0xff] }
 0xc68   :  { %v8121_v46 = vadd.f32 %v3081_v4, %v3075_v29  ;;  %8922 = vst [vmem:[#allocation23_spill] sm:$0xff] %v8323_v27  ;;  %8924 = vst [vmem:[#allocation16_spill] sm:$0xff] %v8336_v43  ;;  %v8342_v29 = vld [vmem:[%s8655_s2 + $0x188] sm:$0xff]  ;;  %v8349_v4 = vld [vmem:[%s8655_s2 + $0x180] sm:$0xff] }
 0xc69   :  { %v8123_v45 = vadd.f32 %v3082_v30, %v3076_v60  ;;  %8925 = vst [vmem:[#allocation11_spill] sm:$0xff] %v8342_v29  ;;  %8926 = vst [vmem:[#allocation12_spill] sm:$0xff] %v8349_v4  ;;  %v8356_v60 = vld [vmem:[%s8655_s2 + $0x190] sm:$0xff] }
 0xc6a   :  { %4234 = vst [vmem:[%s8660_s7 + $0x8] sm:$0x8] %v8121_v46  ;;  %v3089_v63 = vrot.slane %v8121_v46, 3  ;;  %8927 = vst [vmem:[#allocation10_spill] sm:$0xff] %v8356_v60 }
 0xc6b   :  { %4235 = vst [vmem:[%s8660_s7 + $0x18] sm:$0x8] %v8123_v45  ;;  %v3090_v41 = vrot.slane %v8123_v45, 2 }
 0xc6d   :  { %v3091_v1 = vsel %vm515_vm1, %v3090_v41, %v3089_v63 }
 0xc6e   :  { %3158 = vmatmul.mubr.f32.vlgmr.msra.gmra.mxu0 %v3091_v1  ;;  %5112 = vmatmul.mubr.f32.vlgmr.msra.gmra.mxu1 %v3091_v1 }
 0xc6f   :  { %3304 = vmatpush1.msra.mxu0 %v7971_v2  ;;  %5115 = vmatpush3.msra.mxu1 %v7977_v32 }
 0xc70   :  { %3305 = vmatprep.subr.mxu0 %v7983_v40  ;;  %5116 = vmatprep.subr.mxu1 %v8804_v25 }
 0xc71   :  { %3306 = vmatpush1.msra.mxu0 %v7990_v5  ;;  %5117 = vmatpush3.msra.mxu1 %v7996_v58 }
 0xc72   :  { %3307 = vmatprep.subr.mxu0 %v8002_v23  ;;  %5118 = vmatprep.subr.mxu1 %v8804_v25 }
 0xc73   :  { %3308 = vmatpush1.msra.mxu0 %v8009_v6  ;;  %5119 = vmatpush3.msra.mxu1 %v8148_v10 }
 0xc74   :  { %3309 = vmatprep.subr.mxu0 %v8016_v50  ;;  %5120 = vmatprep.subr.mxu1 %v8804_v25 }
 0xc75   :  { %3310 = vmatpush1.msra.mxu0 %v8023_v15  ;;  %5121 = vmatpush3.msra.mxu1 %v8157_v13 }
 0xc76   :  { %3311 = vmatprep.subr.mxu0 %v8030_v53  ;;  %5122 = vmatprep.subr.mxu1 %v8804_v25 }
 0xc77   :  { %3312 = vmatpush1.msra.mxu0 %v8037_v34  ;;  %5123 = vmatpush3.msra.mxu1 %v8166_v3 }
 0xc78   :  { %3313 = vmatprep.subr.mxu0 %v8044_v33  ;;  %5124 = vmatprep.subr.mxu1 %v8804_v25 }
 0xc79   :  { %3314 = vmatpush1.msra.mxu0 %v8051_v16  ;;  %5125 = vmatpush3.msra.mxu1 %v8175_v62 }
 0xc7a   :  { %3315 = vmatprep.subr.mxu0 %v8058_v18  ;;  %5126 = vmatprep.subr.mxu1 %v8804_v25 }
 0xc7b   :  { %3316 = vmatpush1.msra.mxu0 %v8065_v19  ;;  %5127 = vmatpush3.msra.mxu1 %v8184_v8 }
 0xc7c   :  { %3317 = vmatprep.subr.mxu0 %v8190_v55  ;;  %5128 = vmatprep.subr.mxu1 %v8804_v25 }
 0xc7d   :  { %3318 = vmatpush1.msra.mxu0 %v8197_v38  ;;  %5129 = vmatpush3.msra.mxu1 %v8203_v36 }
 0xc7e   :  { %3319 = vmatprep.subr.mxu0 %v8209_v52  ;;  %5130 = vmatprep.subr.mxu1 %v8804_v25 }
 0xc7f   :  { %3320 = vmatpush1.msra.mxu0 %v8216_v57  ;;  %5131 = vmatpush3.msra.mxu1 %v8222_v31 }
 0xc80   :  { %3321 = vmatprep.subr.mxu0 %v8228_v49  ;;  %5132 = vmatprep.subr.mxu1 %v8804_v25 }
 0xc81   :  { %3322 = vmatpush1.msra.mxu0 %v8235_v0  ;;  %5133 = vmatpush3.msra.mxu1 %v8241_v48 }
 0xc82   :  { %3323 = vmatprep.subr.mxu0 %v8247_v37  ;;  %5134 = vmatprep.subr.mxu1 %v8804_v25 }
 0xc83   :  { %3324 = vmatpush1.msra.mxu0 %v8254_v47  ;;  %5135 = vmatpush3.msra.mxu1 %v8260_v51 }
 0xc84   :  { %3325 = vmatprep.subr.mxu0 %v8266_v54  ;;  %5136 = vmatprep.subr.mxu1 %v8804_v25 }
 0xc85   :  { %3326 = vmatpush1.msra.mxu0 %v8273_v59  ;;  %5137 = vmatpush3.msra.mxu1 %v8279_v61 }
 0xc86   :  { %3327 = vmatprep.subr.mxu0 %v8285_v44  ;;  %5138 = vmatprep.subr.mxu1 %v8804_v25 }
 0xc87   :  { %3328 = vmatpush1.msra.mxu0 %v8292_v39  ;;  %5139 = vmatpush3.msra.mxu1 %v8298_v21 }
 0xc88   :  { %3329 = vmatprep.subr.mxu0 %v8304_v24  ;;  %5140 = vmatprep.subr.mxu1 %v8804_v25 }
 0xc89   :  { %3330 = vmatpush1.msra.mxu0 %v8311_v42  ;;  %5141 = vmatpush3.msra.mxu1 %v8317_v22 }
 0xc8a   :  { %3331 = vmatprep.subr.mxu0 %v8323_v27  ;;  %5142 = vmatprep.subr.mxu1 %v8804_v25 }
 0xc8b   :  { %3332 = vmatpush1.msra.mxu0 %v8330_v28  ;;  %5143 = vmatpush3.msra.mxu1 %v8336_v43 }
 0xc8c   :  { %3333 = vmatprep.subr.mxu0 %v8342_v29  ;;  %5144 = vmatprep.subr.mxu1 %v8804_v25 }
 0xc8d   :  { %3334 = vmatpush1.msra.mxu0 %v8349_v4  ;;  %3367 = vmatprep.mubr.f32.mxu0 %v8804_v25 }
 0xc8e   :  { %5145 = vmatpush3.msra.mxu1 %v8356_v60  ;;  %5146 = vmatprep.mubr.msk.f32.mxu1 %vm5723_vm0, %v8804_v25 }
 0xc8f   :  { %3513 = vmatprep.subr.mxu0 %v7938_v26  ;;  %5149 = vmatprep.subr.mxu1 %v8804_v25 }
 0xd2e   :  { %v3159_v30 = vpop.f32.mrf.mxu0  ;;  %v3230_v63 = vpop.f32.mrf.mxu1 }
 0xd2f   :  { %v3160_v41 = vadd.f32 %v3159_v30, %v8914_v12 }
 0xd30   :  { %v3161_v1 = vpop.f32.mrf.mxu0  ;;  %v5113_v4 = vpop.f32.mrf.mxu1 }
 0xd31   :  { %v3235_v29 = vrot.slane %v3160_v41, 4  ;;  %v3236_v43 = vrot.slane %v3160_v41, 5  ;;  %v3162_v28 = vadd.f32 %v3161_v1, %v7731_v20 }
 0xd33   :  { %v3239_v27 = vadd.f32 %v3235_v29, %v8915_v14  ;;  %v3240_v60 = vadd.f32 %v3236_v43, %v8916_v35  ;;  %v3254_v24 = vrot.slane %v3162_v28, 4  ;;  %v3255_v26 = vrot.slane %v3162_v28, 5 }
 0xd34   :  { %v3231_v28 = vadd.f32 %v3230_v63, %v8902_v7  ;;  %v3287_v63 = vrot.slane %v8121_v46, 7 }
 0xd35   :  { %v4236_v22 = vmul.f32 -1.442695, %v3239_v27  ;;  %v4237_v42 = vmul.f32 -1.442695, %v3240_v60  ;;  %v3258_v21 = vadd.f32 %v3254_v24, %v7742_v56  ;;  %v3259_v30 = vadd.f32 %v3255_v26, %v8917_v11 }
 0xd36   :  { %v3273_v60 = vrot.slane %v3231_v28, 4  ;;  %v3274_v56 = vrot.slane %v3231_v28, 5 }
 0xd37   :  { %5502 = vpow2.f32 %v4236_v22  ;;  %v4238_v12 = vmul.f32 -1.442695, %v3258_v21  ;;  %v4239_v4 = vmul.f32 -1.442695, %v3259_v30 }
 0xd38   :  { %5504 = vpow2.f32 %v4237_v42 }
 0xd39   :  { %5506 = vpow2.f32 %v4238_v12 }
 0xd3a   :  { %5508 = vpow2.f32 %v4239_v4 }
 0xd44   :  { %v5503_v41 = vpop.eup %5502 }
 0xd45   :  { %v5505_v1 = vpop.eup %5504  ;;  %v3247_v20 = vadd.f32 1.0, %v5503_v41 }
 0xd46   :  { %v3248_v29 = vadd.f32 1.0, %v5505_v1  ;;  %v5507_v27 = vpop.eup %5506 }
 0xd47   :  { %5510 = vrcp.f32 %v3247_v20  ;;  %v5509_v43 = vpop.eup %5508  ;;  %v3266_v22 = vadd.f32 1.0, %v5507_v27 }
 0xd48   :  { %5512 = vrcp.f32 %v3248_v29  ;;  %v3267_v42 = vadd.f32 1.0, %v5509_v43  ;;  %v3288_v43 = vrot.slane %v8123_v45, 7 }
 0xd49   :  { %5514 = vrcp.f32 %v3266_v22 }
 0xd4a   :  { %5516 = vrcp.f32 %v3267_v42 }
 0xd54   :  { %v5511_v24 = vpop.eup %5510 }
 0xd55   :  { %v5513_v26 = vpop.eup %5512  ;;  %v3277_v21 = vmul.f32 %v5511_v24, %v3273_v60 }
 0xd56   :  { %v3278_v12 = vmul.f32 %v5513_v26, %v3274_v56  ;;  %v5515_v20 = vpop.eup %5514 }
 0xd57   :  { %v3279_v30 = vadd.f32 %v3277_v21, %v7753_v9  ;;  %v5517_v41 = vpop.eup %5516  ;;  %v3283_v1 = vsub.f32 1.0, %v5515_v20  ;;  %v3291_v22 = vmul.f32 %v5515_v20, %v3287_v63  ;;  %v8931_v20 = vld [vmem:[#allocation24_spill] sm:$0xff] }
 0xd58   :  { %v3280_v4 = vadd.f32 %v3278_v12, %v7755_v17  ;;  %v3284_v27 = vsub.f32 1.0, %v5517_v41  ;;  %v3292_v42 = vmul.f32 %v5517_v41, %v3288_v43  ;;  %v8928_v12 = vld [vmem:[#allocation20_spill] sm:$0xff]  ;;  %v8932_v41 = vld [vmem:[#allocation23_spill] sm:$0xff]  ;;  %v8937_v43 = vld [vmem:[#allocation10_spill] sm:$0xff] }
 0xd59   :  { %5518 = vtanh.f32 %v3279_v30  ;;  %v8929_v30 = vld [vmem:[#allocation26_spill] sm:$0xff]  ;;  %v8934_v63 = vld [vmem:[#allocation16_spill] sm:$0xff] }
 0xd5a   :  { %5520 = vtanh.f32 %v3280_v4  ;;  %v8930_v4 = vld [vmem:[#allocation22_spill] sm:$0xff] }
 0xd66   :  { %v5519_v29 = vpop.eup %5518 }
 0xd67   :  { %v5521_v28 = vpop.eup %5520  ;;  %v3285_v60 = vmul.f32 %v5519_v29, %v3283_v1  ;;  %v8933_v1 = vld [vmem:[#allocation25_spill] sm:$0xff]  ;;  %v8935_v29 = vld [vmem:[#allocation11_spill] sm:$0xff] }
 0xd68   :  { %v3286_v56 = vmul.f32 %v5521_v28, %v3284_v27  ;;  %v8936_v27 = vld [vmem:[#allocation12_spill] sm:$0xff]  ;;  %v8938_v28 = vld [vmem:[#allocation18_spill] sm:$0xff] }
 0xd69   :  { %v8374_v24 = vadd.f32 %v3291_v22, %v3285_v60 }
 0xd6a   :  { %v8376_v26 = vadd.f32 %v3292_v42, %v3286_v56  ;;  %v8939_v56 = vld [vmem:[#allocation13_spill] sm:$0xff] }
 0xd6b   :  { %4240 = vst [vmem:[%s8660_s7 + $0x8] sm:$0x10] %v8374_v24  ;;  %v3299_v46 = vrot.slane %v8374_v24, 4 }
 0xd6c   :  { %4241 = vst [vmem:[%s8660_s7 + $0x18] sm:$0x10] %v8376_v26  ;;  %v3300_v45 = vrot.slane %v8376_v26, 3 }
 0xd6e   :  { %v3301_v21 = vsel %vm515_vm1, %v3300_v45, %v3299_v46 }
 0xd6f   :  { %3368 = vmatmul.mubr.f32.vlgmr.msra.gmra.mxu0 %v3301_v21  ;;  %5147 = vmatmul.mubr.f32.vlgmr.msra.gmra.mxu1 %v3301_v21 }
 0xd70   :  { %3514 = vmatpush1.msra.mxu0 %v7971_v2  ;;  %5150 = vmatpush3.msra.mxu1 %v7977_v32 }
 0xd71   :  { %3515 = vmatprep.subr.mxu0 %v7983_v40  ;;  %5151 = vmatprep.subr.mxu1 %v8804_v25 }
 0xd72   :  { %3516 = vmatpush1.msra.mxu0 %v7990_v5  ;;  %5152 = vmatpush3.msra.mxu1 %v7996_v58 }
 0xd73   :  { %3517 = vmatprep.subr.mxu0 %v8002_v23  ;;  %5153 = vmatprep.subr.mxu1 %v8804_v25 }
 0xd74   :  { %3518 = vmatpush1.msra.mxu0 %v8009_v6  ;;  %5154 = vmatpush3.msra.mxu1 %v8148_v10 }
 0xd75   :  { %3519 = vmatprep.subr.mxu0 %v8016_v50  ;;  %5155 = vmatprep.subr.mxu1 %v8804_v25 }
 0xd76   :  { %3520 = vmatpush1.msra.mxu0 %v8023_v15  ;;  %5156 = vmatpush3.msra.mxu1 %v8157_v13 }
 0xd77   :  { %3521 = vmatprep.subr.mxu0 %v8030_v53  ;;  %5157 = vmatprep.subr.mxu1 %v8804_v25 }
 0xd78   :  { %3522 = vmatpush1.msra.mxu0 %v8037_v34  ;;  %5158 = vmatpush3.msra.mxu1 %v8166_v3 }
 0xd79   :  { %3523 = vmatprep.subr.mxu0 %v8044_v33  ;;  %5159 = vmatprep.subr.mxu1 %v8804_v25 }
 0xd7a   :  { %3524 = vmatpush1.msra.mxu0 %v8051_v16  ;;  %5160 = vmatpush3.msra.mxu1 %v8175_v62 }
 0xd7b   :  { %3525 = vmatprep.subr.mxu0 %v8058_v18  ;;  %5161 = vmatprep.subr.mxu1 %v8804_v25 }
 0xd7c   :  { %3526 = vmatpush1.msra.mxu0 %v8065_v19  ;;  %5162 = vmatpush3.msra.mxu1 %v8184_v8 }
 0xd7d   :  { %3527 = vmatprep.subr.mxu0 %v8190_v55  ;;  %5163 = vmatprep.subr.mxu1 %v8804_v25 }
 0xd7e   :  { %3528 = vmatpush1.msra.mxu0 %v8197_v38  ;;  %5164 = vmatpush3.msra.mxu1 %v8203_v36 }
 0xd7f   :  { %3529 = vmatprep.subr.mxu0 %v8209_v52  ;;  %5165 = vmatprep.subr.mxu1 %v8804_v25 }
 0xd80   :  { %3530 = vmatpush1.msra.mxu0 %v8216_v57  ;;  %5166 = vmatpush3.msra.mxu1 %v8222_v31 }
 0xd81   :  { %3531 = vmatprep.subr.mxu0 %v8228_v49  ;;  %5167 = vmatprep.subr.mxu1 %v8804_v25 }
 0xd82   :  { %3532 = vmatpush1.msra.mxu0 %v8235_v0  ;;  %5168 = vmatpush3.msra.mxu1 %v8241_v48 }
 0xd83   :  { %3533 = vmatprep.subr.mxu0 %v8247_v37  ;;  %5169 = vmatprep.subr.mxu1 %v8804_v25 }
 0xd84   :  { %3534 = vmatpush1.msra.mxu0 %v8254_v47  ;;  %5170 = vmatpush3.msra.mxu1 %v8260_v51 }
 0xd85   :  { %3535 = vmatprep.subr.mxu0 %v8266_v54  ;;  %5171 = vmatprep.subr.mxu1 %v8804_v25 }
 0xd86   :  { %3536 = vmatpush1.msra.mxu0 %v8273_v59  ;;  %5172 = vmatpush3.msra.mxu1 %v8279_v61 }
 0xd87   :  { %3537 = vmatprep.subr.mxu0 %v8285_v44  ;;  %5173 = vmatprep.subr.mxu1 %v8804_v25 }
 0xd88   :  { %3538 = vmatpush1.msra.mxu0 %v8292_v39  ;;  %5174 = vmatpush3.msra.mxu1 %v8928_v12 }
 0xd89   :  { %3539 = vmatprep.subr.mxu0 %v8929_v30  ;;  %5175 = vmatprep.subr.mxu1 %v8804_v25  ;;  %v8941_v30 = vld [vmem:[#allocation19_spill] sm:$0xff] }
 0xd8a   :  { %3540 = vmatpush1.msra.mxu0 %v8930_v4  ;;  %5176 = vmatpush3.msra.mxu1 %v8931_v20 }
 0xd8b   :  { %3541 = vmatprep.subr.mxu0 %v8932_v41  ;;  %5177 = vmatprep.subr.mxu1 %v8804_v25 }
 0xd8c   :  { %3542 = vmatpush1.msra.mxu0 %v8933_v1  ;;  %5178 = vmatpush3.msra.mxu1 %v8934_v63 }
 0xd8d   :  { %3543 = vmatprep.subr.mxu0 %v8935_v29  ;;  %5179 = vmatprep.subr.mxu1 %v8804_v25 }
 0xd8e   :  { %3544 = vmatpush1.msra.mxu0 %v8936_v27  ;;  %3577 = vmatprep.mubr.f32.mxu0 %v8804_v25  ;;  %v8940_v27 = vld [vmem:[#allocation14_spill] sm:$0xff] }
 0xd8f   :  { %5180 = vmatpush3.msra.mxu1 %v8937_v43  ;;  %5181 = vmatprep.mubr.msk.f32.mxu1 %vm5723_vm0, %v8804_v25 }
 0xd90   :  { %3723 = vmatprep.subr.mxu0 %v8938_v28  ;;  %5184 = vmatprep.subr.mxu1 %v8804_v25 }
 0xe2f   :  { %v3369_v60 = vpop.f32.mrf.mxu0  ;;  %v3440_v22 = vpop.f32.mrf.mxu1 }
 0xe30   :  { %v3370_v42 = vadd.f32 %v3369_v60, %v8939_v56 }
 0xe31   :  { %v3371_v46 = vpop.f32.mrf.mxu0  ;;  %v5148_v45 = vpop.f32.mrf.mxu1 }
 0xe32   :  { %v3445_v21 = vrot.slane %v3370_v42, 3  ;;  %v3446_v29 = vrot.slane %v3370_v42, 4  ;;  %v3372_v63 = vadd.f32 %v3371_v46, %v8940_v27 }
 0xe34   :  { %v3449_v1 = vadd.f32 %v3445_v21, %v8915_v14  ;;  %v3450_v43 = vadd.f32 %v3446_v29, %v8916_v35  ;;  %v3464_v4 = vrot.slane %v3372_v63, 3  ;;  %v3465_v28 = vrot.slane %v3372_v63, 4 }
 0xe35   :  { %v3441_v63 = vadd.f32 %v3440_v22, %v8902_v7  ;;  %v3497_v22 = vrot.slane %v8374_v24, 7 }
 0xe36   :  { %v4242_v41 = vmul.f32 -1.442695, %v3449_v1  ;;  %v4243_v20 = vmul.f32 -1.442695, %v3450_v43  ;;  %v3468_v12 = vadd.f32 %v3464_v4, %v8941_v30  ;;  %v3469_v60 = vadd.f32 %v3465_v28, %v8917_v11 }
 0xe37   :  { %v3483_v43 = vrot.slane %v3441_v63, 3  ;;  %v3484_v30 = vrot.slane %v3441_v63, 4 }
 0xe38   :  { %5522 = vpow2.f32 %v4242_v41  ;;  %v4244_v56 = vmul.f32 -1.442695, %v3468_v12  ;;  %v4245_v45 = vmul.f32 -1.442695, %v3469_v60 }
 0xe39   :  { %5524 = vpow2.f32 %v4243_v20 }
 0xe3a   :  { %5526 = vpow2.f32 %v4244_v56 }
 0xe3b   :  { %5528 = vpow2.f32 %v4245_v45 }
 0xe45   :  { %v5523_v42 = vpop.eup %5522 }
 0xe46   :  { %v5525_v46 = vpop.eup %5524  ;;  %v3457_v27 = vadd.f32 1.0, %v5523_v42 }
 0xe47   :  { %v3458_v21 = vadd.f32 1.0, %v5525_v46  ;;  %v5527_v1 = vpop.eup %5526 }
 0xe48   :  { %5530 = vrcp.f32 %v3457_v27  ;;  %v5529_v29 = vpop.eup %5528  ;;  %v3476_v41 = vadd.f32 1.0, %v5527_v1 }
 0xe49   :  { %5532 = vrcp.f32 %v3458_v21  ;;  %v3477_v20 = vadd.f32 1.0, %v5529_v29  ;;  %v3498_v29 = vrot.slane %v8376_v26, 7 }
 0xe4a   :  { %5534 = vrcp.f32 %v3476_v41 }
 0xe4b   :  { %5536 = vrcp.f32 %v3477_v20 }
 0xe55   :  { %v5531_v4 = vpop.eup %5530 }
 0xe56   :  { %v5533_v28 = vpop.eup %5532  ;;  %v3487_v12 = vmul.f32 %v5531_v4, %v3483_v43 }
 0xe57   :  { %v3488_v56 = vmul.f32 %v5533_v28, %v3484_v30  ;;  %v5535_v27 = vpop.eup %5534 }
 0xe58   :  { %v3489_v60 = vadd.f32 %v3487_v12, %v7753_v9  ;;  %v5537_v42 = vpop.eup %5536  ;;  %v3493_v46 = vsub.f32 1.0, %v5535_v27  ;;  %v3501_v41 = vmul.f32 %v5535_v27, %v3497_v22 }
 0xe59   :  { %v3490_v45 = vadd.f32 %v3488_v56, %v7755_v17  ;;  %v3494_v1 = vsub.f32 1.0, %v5537_v42  ;;  %v3502_v20 = vmul.f32 %v5537_v42, %v3498_v29 }
 0xe5a   :  { %5538 = vtanh.f32 %v3489_v60 }
 0xe5b   :  { %5540 = vtanh.f32 %v3490_v45 }
 0xe67   :  { %v5539_v21 = vpop.eup %5538 }
 0xe68   :  { %v5541_v63 = vpop.eup %5540  ;;  %v3495_v43 = vmul.f32 %v5539_v21, %v3493_v46 }
 0xe69   :  { %v3496_v30 = vmul.f32 %v5541_v63, %v3494_v1 }
 0xe6a   :  { %v8467_v4 = vadd.f32 %v3501_v41, %v3495_v43 }
 0xe6b   :  { %v8469_v28 = vadd.f32 %v3502_v20, %v3496_v30 }
 0xe6c   :  { %4246 = vst [vmem:[%s8660_s7 + $0x8] sm:$0x20] %v8467_v4  ;;  %v3509_v24 = vrot.slane %v8467_v4, 5  ;;  %v3707_v30 = vrot.slane %v8467_v4, 7 }
 0xe6d   :  { %4247 = vst [vmem:[%s8660_s7 + $0x18] sm:$0x20] %v8469_v28  ;;  %v3510_v26 = vrot.slane %v8469_v28, 4 }
 0xe6f   :  { %v3511_v12 = vsel %vm515_vm1, %v3510_v26, %v3509_v24  ;;  %v3708_v26 = vrot.slane %v8469_v28, 7 }
 0xe70   :  { %3578 = vmatmul.mubr.f32.vlgmr.msra.gmra.mxu0 %v3511_v12  ;;  %5182 = vmatmul.mubr.f32.vlgmr.msra.gmra.mxu1 %v3511_v12 }
 0xe71   :  { %3724 = vmatpush1.msra.mxu0 %v7971_v2  ;;  %5185 = vmatpush3.msra.mxu1 %v7977_v32  ;;  %v8942_v2 = vld [vmem:[#allocation20_spill] sm:$0xff]  ;;  %v8943_v32 = vld [vmem:[#allocation26_spill] sm:$0xff] }
 0xe72   :  { %3725 = vmatprep.subr.mxu0 %v7983_v40  ;;  %5186 = vmatprep.subr.mxu1 %v8804_v25  ;;  %v8944_v40 = vld [vmem:[#allocation22_spill] sm:$0xff] }
 0xe73   :  { %3726 = vmatpush1.msra.mxu0 %v7990_v5  ;;  %5187 = vmatpush3.msra.mxu1 %v7996_v58  ;;  %v8945_v5 = vld [vmem:[#allocation24_spill] sm:$0xff]  ;;  %v8946_v58 = vld [vmem:[#allocation23_spill] sm:$0xff] }
 0xe74   :  { %3727 = vmatprep.subr.mxu0 %v8002_v23  ;;  %5188 = vmatprep.subr.mxu1 %v8804_v25  ;;  %v8947_v23 = vld [vmem:[#allocation25_spill] sm:$0xff] }
 0xe75   :  { %3728 = vmatpush1.msra.mxu0 %v8009_v6  ;;  %5189 = vmatpush3.msra.mxu1 %v8148_v10  ;;  %v8948_v6 = vld [vmem:[#allocation16_spill] sm:$0xff] }
 0xe76   :  { %3729 = vmatprep.subr.mxu0 %v8016_v50  ;;  %5190 = vmatprep.subr.mxu1 %v8804_v25  ;;  %v8949_v50 = vld [vmem:[#allocation11_spill] sm:$0xff] }
 0xe77   :  { %3730 = vmatpush1.msra.mxu0 %v8023_v15  ;;  %5191 = vmatpush3.msra.mxu1 %v8157_v13  ;;  %v8950_v15 = vld [vmem:[#allocation12_spill] sm:$0xff] }
 0xe78   :  { %3731 = vmatprep.subr.mxu0 %v8030_v53  ;;  %5192 = vmatprep.subr.mxu1 %v8804_v25  ;;  %v8951_v53 = vld [vmem:[#allocation10_spill] sm:$0xff] }
 0xe79   :  { %3732 = vmatpush1.msra.mxu0 %v8037_v34  ;;  %5193 = vmatpush3.msra.mxu1 %v8166_v3 }
 0xe7a   :  { %3733 = vmatprep.subr.mxu0 %v8044_v33  ;;  %5194 = vmatprep.subr.mxu1 %v8804_v25 }
 0xe7b   :  { %3734 = vmatpush1.msra.mxu0 %v8051_v16  ;;  %5195 = vmatpush3.msra.mxu1 %v8175_v62  ;;  %v8952_v16 = vld [vmem:[#allocation13_spill] sm:$0xff]  ;;  %v8953_v62 = vld [vmem:[#allocation14_spill] sm:$0xff] }
 0xe7c   :  { %3735 = vmatprep.subr.mxu0 %v8058_v18  ;;  %5196 = vmatprep.subr.mxu1 %v8804_v25 }
 0xe7d   :  { %3736 = vmatpush1.msra.mxu0 %v8065_v19  ;;  %5197 = vmatpush3.msra.mxu1 %v8184_v8 }
 0xe7e   :  { %3737 = vmatprep.subr.mxu0 %v8190_v55  ;;  %5198 = vmatprep.subr.mxu1 %v8804_v25 }
 0xe7f   :  { %3738 = vmatpush1.msra.mxu0 %v8197_v38  ;;  %5199 = vmatpush3.msra.mxu1 %v8203_v36 }
 0xe80   :  { %3739 = vmatprep.subr.mxu0 %v8209_v52  ;;  %5200 = vmatprep.subr.mxu1 %v8804_v25 }
 0xe81   :  { %3740 = vmatpush1.msra.mxu0 %v8216_v57  ;;  %5201 = vmatpush3.msra.mxu1 %v8222_v31 }
 0xe82   :  { %3741 = vmatprep.subr.mxu0 %v8228_v49  ;;  %5202 = vmatprep.subr.mxu1 %v8804_v25 }
 0xe83   :  { %3742 = vmatpush1.msra.mxu0 %v8235_v0  ;;  %5203 = vmatpush3.msra.mxu1 %v8241_v48 }
 0xe84   :  { %3743 = vmatprep.subr.mxu0 %v8247_v37  ;;  %5204 = vmatprep.subr.mxu1 %v8804_v25 }
 0xe85   :  { %3744 = vmatpush1.msra.mxu0 %v8254_v47  ;;  %5205 = vmatpush3.msra.mxu1 %v8260_v51 }
 0xe86   :  { %3745 = vmatprep.subr.mxu0 %v8266_v54  ;;  %5206 = vmatprep.subr.mxu1 %v8804_v25 }
 0xe87   :  { %3746 = vmatpush1.msra.mxu0 %v8273_v59  ;;  %5207 = vmatpush3.msra.mxu1 %v8279_v61 }
 0xe88   :  { %3747 = vmatprep.subr.mxu0 %v8285_v44  ;;  %5208 = vmatprep.subr.mxu1 %v8804_v25 }
 0xe89   :  { %3748 = vmatpush1.msra.mxu0 %v8292_v39  ;;  %5209 = vmatpush3.msra.mxu1 %v8942_v2 }
 0xe8a   :  { %3749 = vmatprep.subr.mxu0 %v8943_v32  ;;  %5210 = vmatprep.subr.mxu1 %v8804_v25 }
 0xe8b   :  { %3750 = vmatpush1.msra.mxu0 %v8944_v40  ;;  %5211 = vmatpush3.msra.mxu1 %v8945_v5 }
 0xe8c   :  { %3751 = vmatprep.subr.mxu0 %v8946_v58  ;;  %5212 = vmatprep.subr.mxu1 %v8804_v25 }
 0xe8d   :  { %3752 = vmatpush1.msra.mxu0 %v8947_v23  ;;  %5213 = vmatpush3.msra.mxu1 %v8948_v6 }
 0xe8e   :  { %3753 = vmatprep.subr.mxu0 %v8949_v50  ;;  %5214 = vmatprep.subr.mxu1 %v8804_v25  ;;  %v3944_v50 = vld [vmem:[%s8658_s5 + $0x78] sm:$0xff] }
 0xe8f   :  { %3754 = vmatpush1.msra.mxu0 %v8950_v15  ;;  %3787 = vmatprep.mubr.f32.mxu0 %v8804_v25  ;;  %v3943_v15 = vld [vmem:[%s8658_s5 + $0x70] sm:$0xff] }
 0xe90   :  { %5215 = vmatpush3.msra.mxu1 %v8951_v53  ;;  %5216 = vmatprep.mubr.msk.f32.mxu1 %vm5723_vm0, %v8804_v25  ;;  %v8954_v25 = vld [vmem:[#allocation19_spill] sm:$0xff] }
 0xe91   :  { %5219 = vmatprep.subr.mxu0 %v3944_v50  ;;  %v3942_v53 = vld [vmem:[%s8658_s5 + $0x68] sm:$0xff] }
 0xf30   :  { %v3579_v34 = vpop.f32.mrf.mxu0  ;;  %v3650_v33 = vpop.f32.mrf.mxu1 }
 0xf31   :  { %v3580_v18 = vadd.f32 %v3579_v34, %v8952_v16  ;;  %v3651_v39 = vadd.f32 %v3650_v33, %v8902_v7  ;;  %v3941_v34 = vld [vmem:[%s8658_s5 + $0x60] sm:$0xff]  ;;  %v3940_v33 = vld [vmem:[%s8658_s5 + $0x58] sm:$0xff] }
 0xf32   :  { %v3581_v19 = vpop.f32.mrf.mxu0  ;;  %v5183_v10 = vpop.f32.mrf.mxu1 }
 0xf33   :  { %v3655_v13 = vrot.slane %v3580_v18, 2  ;;  %v3656_v3 = vrot.slane %v3580_v18, 3  ;;  %v3582_v8 = vadd.f32 %v3581_v19, %v8953_v62  ;;  %v3693_v45 = vrot.slane %v3651_v39, 2  ;;  %v3939_v18 = vld [vmem:[%s8658_s5 + $0x50] sm:$0xff]  ;;  %v3938_v19 = vld [vmem:[%s8658_s5 + $0x48] sm:$0xff]  ;;  %v3937_v10 = vld [vmem:[%s8658_s5 + $0x40] sm:$0xff] }
 0xf34   :  { %v3694_v42 = vrot.slane %v3651_v39, 3 }
 0xf35   :  { %v3659_v55 = vadd.f32 %v3655_v13, %v8915_v14  ;;  %v3660_v38 = vadd.f32 %v3656_v3, %v8916_v35  ;;  %v3674_v57 = vrot.slane %v3582_v8, 2  ;;  %v3675_v31 = vrot.slane %v3582_v8, 3  ;;  %v3936_v13 = vld [vmem:[%s8658_s5 + $0x38] sm:$0xff]  ;;  %v3935_v3 = vld [vmem:[%s8658_s5 + $0x30] sm:$0xff]  ;;  %v3934_v8 = vld [vmem:[%s8658_s5 + $0x28] sm:$0xff] }
 0xf37   :  { %v4248_v36 = vmul.f32 -1.442695, %v3659_v55  ;;  %v4249_v52 = vmul.f32 -1.442695, %v3660_v38  ;;  %v3678_v49 = vadd.f32 %v3674_v57, %v8954_v25  ;;  %v3679_v0 = vadd.f32 %v3675_v31, %v8917_v11  ;;  %v3933_v55 = vld [vmem:[%s8658_s5 + $0x20] sm:$0xff]  ;;  %v3932_v38 = vld [vmem:[%s8658_s5 + $0x18] sm:$0xff] }
 0xf38   :  { %v3929_v57 = vld [vmem:[%s8658_s5] sm:$0xff] }
 0xf39   :  { %5542 = vpow2.f32 %v4248_v36  ;;  %v4250_v48 = vmul.f32 -1.442695, %v3678_v49  ;;  %v4251_v37 = vmul.f32 -1.442695, %v3679_v0  ;;  %v3931_v36 = vld [vmem:[%s8658_s5 + $0x10] sm:$0xff] }
 0xf3a   :  { %5544 = vpow2.f32 %v4249_v52  ;;  %v3930_v52 = vld [vmem:[%s8658_s5 + $0x8] sm:$0xff] }
 0xf3b   :  { %5546 = vpow2.f32 %v4250_v48 }
 0xf3c   :  { %5548 = vpow2.f32 %v4251_v37 }
 0xf46   :  { %v5543_v47 = vpop.eup %5542 }
 0xf47   :  { %v5545_v51 = vpop.eup %5544  ;;  %v3667_v54 = vadd.f32 1.0, %v5543_v47 }
 0xf48   :  { %v3668_v59 = vadd.f32 1.0, %v5545_v51  ;;  %v5547_v61 = vpop.eup %5546 }
 0xf49   :  { %5550 = vrcp.f32 %v3667_v54  ;;  %v5549_v44 = vpop.eup %5548  ;;  %v3686_v56 = vadd.f32 1.0, %v5547_v61 }
 0xf4a   :  { %5552 = vrcp.f32 %v3668_v59  ;;  %v3687_v60 = vadd.f32 1.0, %v5549_v44 }
 0xf4b   :  { %5554 = vrcp.f32 %v3686_v56 }
 0xf4c   :  { %5556 = vrcp.f32 %v3687_v60 }
 0xf56   :  { %v5551_v27 = vpop.eup %5550 }
 0xf57   :  { %v5553_v46 = vpop.eup %5552  ;;  %v3697_v22 = vmul.f32 %v5551_v27, %v3693_v45 }
 0xf58   :  { %v3698_v21 = vmul.f32 %v5553_v46, %v3694_v42  ;;  %v5555_v63 = vpop.eup %5554 }
 0xf59   :  { %v3699_v1 = vadd.f32 %v3697_v22, %v7753_v9  ;;  %v5557_v43 = vpop.eup %5556  ;;  %v3703_v41 = vsub.f32 1.0, %v5555_v63  ;;  %v3711_v32 = vmul.f32 %v5555_v63, %v3707_v30 }
 0xf5a   :  { %v3700_v29 = vadd.f32 %v3698_v21, %v7755_v17  ;;  %v3704_v24 = vsub.f32 1.0, %v5557_v43  ;;  %v3712_v5 = vmul.f32 %v5557_v43, %v3708_v26 }
 0xf5b   :  { %5558 = vtanh.f32 %v3699_v1 }
 0xf5c   :  { %5560 = vtanh.f32 %v3700_v29 }
 0xf68   :  { %v5559_v20 = vpop.eup %5558 }
 0xf69   :  { %v5561_v12 = vpop.eup %5560  ;;  %v3705_v2 = vmul.f32 %v5559_v20, %v3703_v41 }
 0xf6a   :  { %v3706_v40 = vmul.f32 %v5561_v12, %v3704_v24 }
 0xf6b   :  { %v8558_v58 = vadd.f32 %v3711_v32, %v3705_v2 }
 0xf6c   :  { %v8560_v23 = vadd.f32 %v3712_v5, %v3706_v40 }
 0xf6d   :  { %4252 = vst [vmem:[%s8660_s7 + $0x8] sm:$0x40] %v8558_v58  ;;  %v3719_v4 = vrot.slane %v8558_v58, 6 }
 0xf6e   :  { %4253 = vst [vmem:[%s8660_s7 + $0x18] sm:$0x40] %v8560_v23  ;;  %v3720_v28 = vrot.slane %v8560_v23, 5  ;;  %v3918_v5 = vrot.slane %v8560_v23, 7  ;;  %v4262_v23 = vld [vmem:[%s8659_s6] ss:$0 sm:$0xff] }
 0xf70   :  { %v3721_v6 = vsel %vm515_vm1, %v3720_v28, %v3719_v4 }
 0xf71   :  { %3788 = vmatmul.mubr.f32.vlgmr.msra.gmra.mxu0 %v3721_v6  ;;  %5217 = vmatmul.mubr.f32.vlgmr.msra.gmra.mxu1 %v3721_v6 }
 0xf72   :  { %5220 = vmatpush3.msra.mxu0 %v3944_v50 }
 0xf73   :  { %5221 = vmatprep.subr.mxu0 %v3943_v15 }
 0xf74   :  { %5222 = vmatpush3.msra.mxu0 %v3943_v15 }
 0xf75   :  { %5223 = vmatprep.subr.mxu0 %v3942_v53 }
 0xf76   :  { %5224 = vmatpush3.msra.mxu0 %v3942_v53 }
 0xf77   :  { %5225 = vmatprep.subr.mxu0 %v3941_v34 }
 0xf78   :  { %5226 = vmatpush3.msra.mxu0 %v3941_v34 }
 0xf79   :  { %5227 = vmatprep.subr.mxu0 %v3940_v33 }
 0xf7a   :  { %5228 = vmatpush3.msra.mxu0 %v3940_v33 }
 0xf7b   :  { %5229 = vmatprep.subr.mxu0 %v3939_v18 }
 0xf7c   :  { %5230 = vmatpush3.msra.mxu0 %v3939_v18 }
 0xf7d   :  { %5231 = vmatprep.subr.mxu0 %v3938_v19 }
 0xf7e   :  { %5232 = vmatpush3.msra.mxu0 %v3938_v19 }
 0xf7f   :  { %5233 = vmatprep.subr.mxu0 %v3937_v10 }
 0xf80   :  { %5234 = vmatpush3.msra.mxu0 %v3937_v10 }
 0xf81   :  { %5235 = vmatprep.subr.mxu0 %v3936_v13 }
 0xf82   :  { %5236 = vmatpush3.msra.mxu0 %v3936_v13 }
 0xf83   :  { %5237 = vmatprep.subr.mxu0 %v3935_v3 }
 0xf84   :  { %5238 = vmatpush3.msra.mxu0 %v3935_v3 }
 0xf85   :  { %5239 = vmatprep.subr.mxu0 %v3934_v8 }
 0xf86   :  { %5240 = vmatpush3.msra.mxu0 %v3934_v8 }
 0xf87   :  { %5241 = vmatprep.subr.mxu0 %v3933_v55 }
 0xf88   :  { %5242 = vmatpush3.msra.mxu0 %v3933_v55 }
 0xf89   :  { %5243 = vmatprep.subr.mxu0 %v3932_v38 }
 0xf8a   :  { %5244 = vmatpush3.msra.mxu0 %v3932_v38 }
 0xf8b   :  { %5245 = vmatprep.subr.mxu0 %v3931_v36 }
 0xf8c   :  { %5246 = vmatpush3.msra.mxu0 %v3931_v36 }
 0xf8d   :  { %5247 = vmatprep.subr.mxu0 %v3930_v52 }
 0xf8e   :  { %5248 = vmatpush3.msra.mxu0 %v3930_v52 }
 0xf8f   :  { %5249 = vmatprep.subr.mxu0 %v3929_v57 }
 0xf90   :  { %5250 = vmatpush3.msra.mxu0 %v3929_v57 }
0x1031   :  { %v3789_v31 = vpop.f32.mrf.mxu0  ;;  %v3860_v49 = vpop.f32.mrf.mxu1 }
0x1032   :  { %v3790_v0 = vadd.f32 %v3789_v31, %v8952_v16  ;;  %v3861_v1 = vadd.f32 %v3860_v49, %v8902_v7  ;;  %v3917_v7 = vrot.slane %v8558_v58, 7 }
0x1033   :  { %v3791_v48 = vpop.f32.mrf.mxu0  ;;  %v5218_v37 = vpop.f32.mrf.mxu1 }
0x1034   :  { %v3865_v47 = vrot.slane %v3790_v0, 1  ;;  %v3866_v51 = vrot.slane %v3790_v0, 2  ;;  %v3792_v54 = vadd.f32 %v3791_v48, %v8953_v62  ;;  %v3903_v43 = vrot.slane %v3861_v1, 1 }
0x1035   :  { %v3904_v41 = vrot.slane %v3861_v1, 2 }
0x1036   :  { %v3869_v59 = vadd.f32 %v3865_v47, %v8915_v14  ;;  %v3870_v61 = vadd.f32 %v3866_v51, %v8916_v35  ;;  %v3884_v56 = vrot.slane %v3792_v54, 1  ;;  %v3885_v60 = vrot.slane %v3792_v54, 2 }
0x1038   :  { %v4254_v44 = vmul.f32 -1.442695, %v3869_v59  ;;  %v4255_v39 = vmul.f32 -1.442695, %v3870_v61  ;;  %v3888_v45 = vadd.f32 %v3884_v56, %v8954_v25  ;;  %v3889_v16 = vadd.f32 %v3885_v60, %v8917_v11 }
0x103a   :  { %5562 = vpow2.f32 %v4254_v44  ;;  %v4256_v27 = vmul.f32 -1.442695, %v3888_v45  ;;  %v4257_v42 = vmul.f32 -1.442695, %v3889_v16 }
0x103b   :  { %5564 = vpow2.f32 %v4255_v39 }
0x103c   :  { %5566 = vpow2.f32 %v4256_v27 }
0x103d   :  { %5568 = vpow2.f32 %v4257_v42 }
0x1047   :  { %v5563_v46 = vpop.eup %5562 }
0x1048   :  { %v5565_v62 = vpop.eup %5564  ;;  %v3877_v22 = vadd.f32 1.0, %v5563_v46 }
0x1049   :  { %v3878_v14 = vadd.f32 1.0, %v5565_v62  ;;  %v5567_v35 = vpop.eup %5566 }
0x104a   :  { %5570 = vrcp.f32 %v3877_v22  ;;  %v5569_v21 = vpop.eup %5568  ;;  %v3896_v29 = vadd.f32 1.0, %v5567_v35 }
0x104b   :  { %5572 = vrcp.f32 %v3878_v14  ;;  %v3897_v63 = vadd.f32 1.0, %v5569_v21 }
0x104c   :  { %5574 = vrcp.f32 %v3896_v29 }
0x104d   :  { %5576 = vrcp.f32 %v3897_v63 }
0x1057   :  { %v5571_v25 = vpop.eup %5570 }
0x1058   :  { %v5573_v11 = vpop.eup %5572  ;;  %v3907_v30 = vmul.f32 %v5571_v25, %v3903_v43 }
0x1059   :  { %v3908_v20 = vmul.f32 %v5573_v11, %v3904_v41  ;;  %v5575_v12 = vpop.eup %5574 }
0x105a   :  { %v3909_v24 = vadd.f32 %v3907_v30, %v7753_v9  ;;  %v5577_v2 = vpop.eup %5576  ;;  %v3913_v32 = vsub.f32 1.0, %v5575_v12  ;;  %v3921_v50 = vmul.f32 %v5575_v12, %v3917_v7 }
0x105b   :  { %v3910_v26 = vadd.f32 %v3908_v20, %v7755_v17  ;;  %v3914_v4 = vsub.f32 1.0, %v5577_v2  ;;  %v3922_v53 = vmul.f32 %v5577_v2, %v3918_v5 }
0x105c   :  { %5578 = vtanh.f32 %v3909_v24 }
0x105d   :  { %5580 = vtanh.f32 %v3910_v26 }
0x1069   :  { %v5579_v40 = vpop.eup %5578 }
0x106a   :  { %v5581_v28 = vpop.eup %5580  ;;  %v3915_v6 = vmul.f32 %v5579_v40, %v3913_v32 }
0x106b   :  { %v3916_v15 = vmul.f32 %v5581_v28, %v3914_v4 }
0x106c   :  { %v3923_v34 = vadd.f32 %v3921_v50, %v3915_v6 }
0x106d   :  { %v3924_v9 = vadd.f32 %v3922_v53, %v3916_v15 }
0x106e   :  { %4258 = vst [vmem:[%s8660_s7 + $0x8] sm:$0x80] %v3923_v34 }
0x106f   :  { %4259 = vst [vmem:[%s8660_s7 + $0x18] sm:$0x80] %v3924_v9 }
0x1075   :  { %v4260_v17 = vld [vmem:[%s8660_s7 + $0x8] sm:$0xff] }
0x1076   :  { %5251 = vmatprep.mubr.f32.mxu0 %v4260_v17  ;;  %v4261_v58 = vld [vmem:[%s8660_s7 + $0x18] sm:$0xff] }
0x1077   :  { %5252 = vmatmul.mubr.f32.vlgmr.msra.gmra.mxu0 %v4261_v58 }
0x1137   :  { %v5253_v33 = vpop.f32.mrf.mxu0 }
0x1138   :  { %v4024_v18 = vadd.f32 %v5253_v33, %v4262_v23 }
0x1139   :  { %v4018_v19 = vpop.f32.mrf.mxu0 }
0x113a   :  { %4028 = vst [vmem:[#allocation2 + $0x8] sm:$0xff] %v4024_v18  ;;  %v4035_v10 = vrot.slane %v4024_v18, 4  ;;  %v4019_v13 = vadd.f32 %v4262_v23, %v4018_v19 }
0x113c   :  { %v4036_v3 = vadd.f32 %v4035_v10, %v4024_v18  ;;  %4027 = vst [vmem:[#allocation2] sm:$0xff] %v4019_v13  ;;  %v4029_v8 = vrot.slane %v4019_v13, 4 }
0x113d   :  { %5689 = shalt.err (!%p5686_p4)
}
0x113e   :  { %s5725_s6 = smov 128   ;;  %s5726_s7 = smov 8   ;;  %v4037_v55 = vrot.slane %v4036_v3, 2  ;;  %v4030_v38 = vadd.f32 %v4029_v8, %v4019_v13 }
0x113f   :  { %4059 = dma.vmem_to_hbm [thread:$0]  %s4054_s19, 256, %s8661_s8, [#allocation3], %s5725_s6, %s5725_s6, %s5726_s7  }
0x1140   :  { %v4038_v36 = vadd.f32 %v4037_v55, %v4036_v3  ;;  %v4031_v52 = vrot.slane %v4030_v38, 2  ;;  %s5727_s23 = smov [#allocation4]  }
0x1141   :  { %s4065_s0 = sshll.u32 %s5727_s23, 4  ;;  %s4066_s0 = int_to_ptr.vmem [resolvable:$true] %s4065_s0 }
0x1142   :  { %v4039_v57 = vrot.slane %v4038_v36, 1  ;;  %v4032_v31 = vadd.f32 %v4031_v52, %v4030_v38  ;;  %s5698_s24 = scalar_lea.vmem %s4066_s0, 32  ;;  %p5703_p6 = scmp.lt.s32.totalorder %s4066_s0, %s4066_s0 }
0x1143   :  { %p5699_p5 = scmp.ne.s32.totalorder %s4066_s0, %s5698_s24  ;;  %p5704_p7 = scmp.lt.s32.totalorder %s5698_s24, %s5698_s24 }
0x1144   :  { %v4040_v49 = vadd.f32 %v4039_v57, %v4038_v36  ;;  %v4033_v0 = vrot.slane %v4032_v31, 1 }
0x1145   :  { %p5705_p8 = por %p5704_p7, %p5703_p6 }
0x1146   :  { %v4034_v48 = vadd.f32 %v4033_v0, %v4032_v31  ;;  %v4043_v37 = vmul.f32 0.125, %v4040_v49 }
0x1147   :  { %p5706_p9 = pnand %p5705_p8, %p5699_p5 }
0x1148   :  { %v4042_v47 = vmul.f32 0.125, %v4034_v48  ;;  %4045 = vst [vmem:[#allocation4 + $0x1] sm:$0x1] %v4043_v37 }
0x114a   :  { %4044 = vst [vmem:[#allocation4] sm:$0x1] %v4042_v47 }
0x114b   :  { %5709 = shalt.err (!%p5706_p9)
}
0x114c   :  { %s5728_s8 = smov 16   ;;  %s5729_s25 = smov 1  }
0x114d   :  { %4071 = dma.vmem_to_hbm [thread:$0]  %s4066_s0, 32, %s8662_s9, [#allocation5], %s5728_s8, %s5728_s8, %s5729_s25  }
0x114e   :  { %5718 = dma.done.wait [#allocation3], 256  }
0x114f   :  { %5719 = vsyncadd [#allocation3], 4294967040 }
0x1150   :  { %5720 = dma.done.wait [#allocation5], 32  }
0x1151   :  { %5721 = vsyncadd [#allocation5], 4294967264 }
0x1152   :  { %4080 = vsyncpa [#allocation3], 1 }
0x1153   :  { %4081 = vsyncpa [#allocation5], 1 }

</bundles_post_ra>
